<compile_context>
chip_gen: v5e
topology: v5e:2x2
jax: 0.10.0
libtpu: 0.0.40
codegen_flags: <defaults>
</compile_context>

<pallas_src>
import jax
import jax.numpy as jnp
from jax.experimental import pallas as pl
from jax.experimental.pallas import tpu as pltpu

LANE = 128
SUBLANE = 8


def _round_up(n, m):
    return ((n + m - 1) // m) * m


def _pad_axis(a, axis, mult):
    pad = (-a.shape[axis]) % mult
    if pad == 0:
        return a
    widths = [(0, 0)] * a.ndim
    widths[axis] = (0, pad)
    return jnp.pad(a, widths)


def _vmem_capacity_bytes():
    try:
        cap = int(pltpu.get_tpu_info().vmem_capacity_bytes)
        if cap > 0:
            return cap
    except Exception:
        pass
    return 64 * 1024 * 1024  # conservative: v7x per-TensorCore VMEM


def _elementwise_dtype():
    # bf16 VALU exists on v6e / v7x; v5e and older have no bf16 VPU -> f32 there.
    try:
        kind = jax.devices()[0].device_kind.lower()
    except Exception:
        kind = ""
    if any(g in kind for g in ("v2", "v3", "v4", "v5")):
        return jnp.float32
    return jnp.bfloat16


def _make_joint_critic_kernel(num_hidden):
    """Ref order: xp, yp, [w_h, b_h]*num_hidden, w_out_row, b_out(SMEM), out."""

    def kernel(xp_ref, yp_ref, *refs):
        param_refs, out_ref = refs[:-1], refs[-1]
        rt, hid = xp_ref.shape          # x rows in this tile (output sublanes)
        ct = yp_ref.shape[0]            # y rows in this tile (output lanes)

        # Layer 1 for every (x_row, y_row) pair in the tile:
        #   h[r, c, :] = relu(x[r] @ Wx + y[c] @ Wy + b1)
        # xp / yp are precomputed in the wrapper; b1 is folded into yp.
        h = jnp.maximum(xp_ref[...][:, None, :] + yp_ref[...][None, :, :], 0)
        h = h.astype(jnp.bfloat16).reshape(rt * ct, hid)   # bf16 activation store

        idx = 0
        for _ in range(num_hidden):
            w = param_refs[idx][...]        # (hid_p, hid_p) bf16
            b = param_refs[idx + 1][...]    # (1, hid_p)     f32
            idx += 2
            h = jnp.dot(h, w, preferred_element_type=jnp.float32)
            h = jnp.maximum(h + b, 0.0).astype(jnp.bfloat16)

        w_out = param_refs[idx][...]        # (1, hid_p) f32
        b_out = param_refs[idx + 1][0]      # scalar (SMEM)

        # Final Linear(H, 1) as VPU multiply + lane (XLU) reduction, f32.
        h3 = h.reshape(rt, ct, hid)
        scores = jnp.sum(h3 * w_out[None, :, :], axis=-1) + b_out   # (rt, ct) f32
        out_ref[...] = scores.astype(out_ref.dtype)

    return kernel


def _select_tiles(B, hid_p, vmem_limit, weight_bytes):
    """Derive (row_tile, col_tile) from hid_p and the VMEM budget."""
    act_budget = max(vmem_limit // 2 - weight_bytes, 4 * 1024 * 1024)
    # peak ~= 3 live (rt*ct, hid_p) f32-sized temporaries (matmul acc in/out)
    max_pairs = max(act_budget // (3 * hid_p * 4), SUBLANE * LANE)

    col_cap = _round_up(B, LANE)
    col_tile = LANE
    for cand in (512, 256, 128):            # lane-dense, unmasked output stores
        if cand <= col_cap and SUBLANE * cand <= max_pairs:
            col_tile = cand
            break

    row_tile = max(SUBLANE, min(256, ((max_pairs // col_tile) // SUBLANE) * SUBLANE))
    row_tile = min(row_tile, _round_up(B, SUBLANE))

    # v7x has 2 TensorCores: make sure the 'parallel' grid has >= 2 steps.
    if B >= 16:
        steps = (_round_up(B, row_tile) // row_tile) * (_round_up(B, col_tile) // col_tile)
        if steps < 2:
            row_tile = max(SUBLANE,
                           _round_up((_round_up(B, SUBLANE) + 1) // 2, SUBLANE))
    return row_tile, col_tile


def init_joint_critic_params(key, dim, hidden_dim, layers):
    """mlp(dim*2, hidden_dim, 1, layers, 'relu'):
       Linear(2*dim, H)+ReLU, `layers` x [Linear(H, H)+ReLU], Linear(H, 1).
       Uniform(-1/sqrt(fan_in), +1/sqrt(fan_in)) init like PyTorch."""
    sizes = [2 * dim] + [hidden_dim] * (layers + 1) + [1]
    params = []
    for fan_in, fan_out in zip(sizes[:-1], sizes[1:]):
        key, kw, kb = jax.random.split(key, 3)
        bound = 1.0 / float(fan_in) ** 0.5
        w = jax.random.uniform(kw, (fan_in, fan_out), jnp.float32, -bound, bound)
        b = jax.random.uniform(kb, (1, fan_out), jnp.float32, -bound, bound)
        params.append((w, b))
    return params


def joint_critic_forward(x, y, params):
    """Replicates JointCritic.forward(x, y):
       out[a, b] = MLP(concat(x[a], y[b])), i.e. torch's reshape(scores,[B,B]).t()."""
    B, dim = x.shape
    num_hidden = len(params) - 2
    hidden_dim = params[0][0].shape[1]
    hid_p = _round_up(hidden_dim, LANE)
    elem_dtype = _elementwise_dtype()

    # ---- padded / cast parameters (zero padding is mathematically inert) ----
    w1, b1 = params[0]
    weight_ops = []
    for w, b in params[1:-1]:
        weight_ops.append(_pad_axis(_pad_axis(w, 0, LANE), 1, LANE).astype(jnp.bfloat16))
        weight_ops.append(_pad_axis(b, 1, LANE).astype(jnp.float32))
    w_out, b_out = params[-1]
    weight_ops.append(_pad_axis(w_out.T, 1, LANE).astype(jnp.float32))  # (1, hid_p)
    b_out_s = b_out.reshape(1).astype(jnp.float32)                      # scalar -> SMEM

    weight_bytes = sum(int(a.size) * a.dtype.itemsize for a in weight_ops)

    vmem_cap = _vmem_capacity_bytes()
    vmem_limit = min(int(vmem_cap * 0.7), 100 * 1024 * 1024)

    row_tile, col_tile = _select_tiles(B, hid_p, vmem_limit, weight_bytes)
    b_rows = _round_up(B, row_tile)
    b_cols = _round_up(B, col_tile)

    # ---- layer-1 projections hoisted out of the grid (computed once) ----
    x_p = _pad_axis(x, 0, row_tile)                 # (b_rows, dim), pad rows are zero
    y_p = _pad_axis(y, 0, col_tile)                 # (b_cols, dim)
    xp = jnp.dot(x_p, w1[:dim])                     # (b_rows, hidden_dim) f32
    yp = jnp.dot(y_p, w1[dim:]) + b1                # (b_cols, hidden_dim) f32, b1 folded
    xp = _pad_axis(xp, 1, LANE).astype(elem_dtype)  # (b_rows, hid_p)
    yp = _pad_axis(yp, 1, LANE).astype(elem_dtype)  # (b_cols, hid_p)

    in_specs = [
        pl.BlockSpec((row_tile, hid_p), lambda i, j: (i, 0)),   # xp tile
        pl.BlockSpec((col_tile, hid_p), lambda i, j: (j, 0)),   # yp tile
    ]
    for arr in weight_ops:   # grid-invariant params -> single-buffered VMEM residency
        in_specs.append(pl.BlockSpec(arr.shape, lambda i, j: (0, 0),
                                     pipeline_mode=pl.Buffered(1)))
    in_specs.append(pl.BlockSpec(memory_space=pltpu.MemorySpace.SMEM))  # b_out scalar

    flops = (2 * b_rows * b_cols * hid_p * hid_p * num_hidden
             + 4 * b_rows * b_cols * hid_p)
    bytes_accessed = ((b_rows + b_cols) * hid_p * jnp.dtype(elem_dtype).itemsize
                      + weight_bytes + b_rows * b_cols * 4)

    kernel = _make_joint_critic_kernel(num_hidden)

    out = pl.pallas_call(
        kernel,
        out_shape=jax.ShapeDtypeStruct((b_rows, b_cols), jnp.float32),
        grid=(b_rows // row_tile, b_cols // col_tile),
        in_specs=in_specs,
        out_specs=pl.BlockSpec((row_tile, col_tile), lambda i, j: (i, j)),
        compiler_params=pltpu.CompilerParams(
            dimension_semantics=("parallel", "parallel"),
            vmem_limit_bytes=vmem_limit,
        ),
        cost_estimate=pl.CostEstimate(
            flops=int(flops), transcendentals=0, bytes_accessed=int(bytes_accessed)),
    )(xp, yp, *weight_ops, b_out_s)
    return out[:B, :B]


if __name__ == "__main__":
    key = jax.random.PRNGKey(0)
    B, dim, hidden_dim, layers = 8, 16, 32, 2

    k1, k2, k3 = jax.random.split(key, 3)
    x = jax.random.normal(k1, (B, dim), jnp.float32)
    y = jax.random.normal(k2, (B, dim), jnp.float32)
    params = init_joint_critic_params(k3, dim, hidden_dim, layers)

    out = jax.block_until_ready(joint_critic_forward(x, y, params))
    assert out.shape == (B, B)

    elem_dtype = _elementwise_dtype()

    # Reference 1: mirrors the kernel's mixed-precision arithmetic exactly.
    def ref_matched(x, y, params):
        w1, b1 = params[0]
        xp = jnp.dot(x, w1[:dim]).astype(elem_dtype)
        yp = (jnp.dot(y, w1[dim:]) + b1).astype(elem_dtype)
        h = jnp.maximum(xp[:, None, :] + yp[None, :, :], 0)
        h = h.astype(jnp.bfloat16).reshape(B * B, -1)
        for w, b in params[1:-1]:
            h = jnp.dot(h, w.astype(jnp.bfloat16), preferred_element_type=jnp.float32)
            h = jnp.maximum(h + b, 0.0).astype(jnp.bfloat16)
        w_o, b_o = params[-1]
        scores = jnp.sum(h.astype(jnp.float32) * w_o[:, 0][None, :], axis=-1) + b_o[0, 0]
        return scores.reshape(B, B)

    # Reference 2: exact f32 semantics of the PyTorch module (concat MLP + .t()).
    def ref_torch_f32(x, y, params):
        x_t = jnp.broadcast_to(x[None, :, :], (B, B, dim))
        y_t = jnp.broadcast_to(y[:, None, :], (B, B, dim))
        h = jnp.concatenate([x_t, y_t], axis=2).reshape(B * B, 2 * dim)
        for l, (w, b) in enumerate(params):
            h = h @ w + b
            if l < len(params) - 1:
                h = jnp.maximum(h, 0.0)
        return h.reshape(B, B).T

    r1 = ref_matched(x, y, params)
    r2 = ref_torch_f32(x, y, params)
    assert jnp.allclose(out, r1, atol=2e-2, rtol=2e-2), float(jnp.max(jnp.abs(out - r1)))
    assert jnp.allclose(out, r2, atol=8e-2, rtol=8e-2), float(jnp.max(jnp.abs(out - r2)))
    print("KERNEL_OK")
</pallas_src>

<mosaic_0001>
module attributes {stable_mosaic.version = 11 : i64} {
  func.func @kernel(%arg0: i32, %arg1: i32, %arg2: memref<8x128xbf16, #tpu.memory_space<vmem>>, %arg3: memref<128x128xbf16, #tpu.memory_space<vmem>>, %arg4: memref<128x128xbf16, #tpu.memory_space<vmem>>, %arg5: memref<1x128xf32, #tpu.memory_space<vmem>>, %arg6: memref<128x128xbf16, #tpu.memory_space<vmem>>, %arg7: memref<1x128xf32, #tpu.memory_space<vmem>>, %arg8: memref<1x128xf32, #tpu.memory_space<vmem>>, %arg9: memref<1xf32, #tpu.memory_space<smem>>, %arg10: memref<8x128xf32, #tpu.memory_space<vmem>>) attributes {dimension_semantics = [#tpu.dimension_semantics<parallel>, #tpu.dimension_semantics<parallel>], iteration_bounds = array<i64: 1, 1>, scalar_prefetch = 0 : i64, scratch_operands = 0 : i64, tpu.core_type = #tpu.core_type<tc>, window_params = [{transform_indices = @transform_0, window_bounds = array<i64: 8, 128>}, {transform_indices = @transform_1, window_bounds = array<i64: 128, 128>}, {pipeline_mode = #tpu.pipeline_mode<synchronous>, transform_indices = @transform_2, window_bounds = array<i64: 128, 128>}, {pipeline_mode = #tpu.pipeline_mode<synchronous>, transform_indices = @transform_3, window_bounds = array<i64: 1, 128>}, {pipeline_mode = #tpu.pipeline_mode<synchronous>, transform_indices = @transform_4, window_bounds = array<i64: 128, 128>}, {pipeline_mode = #tpu.pipeline_mode<synchronous>, transform_indices = @transform_5, window_bounds = array<i64: 1, 128>}, {pipeline_mode = #tpu.pipeline_mode<synchronous>, transform_indices = @transform_6, window_bounds = array<i64: 1, 128>}, {transform_indices = @transform_7, window_bounds = array<i64: 1>}, {transform_indices = @transform_8, window_bounds = array<i64: 8, 128>}]} {
    %c0 = arith.constant 0 : index
    %c0_0 = arith.constant 0 : index
    %0 = vector.load %arg2[%c0, %c0_0] : memref<8x128xbf16, #tpu.memory_space<vmem>>, vector<8x128xbf16>
    %1 = vector.shape_cast %0 : vector<8x128xbf16> to vector<8x1x128xbf16>
    %c0_1 = arith.constant 0 : index
    %c0_2 = arith.constant 0 : index
    %2 = vector.load %arg3[%c0_1, %c0_2] : memref<128x128xbf16, #tpu.memory_space<vmem>>, vector<128x128xbf16>
    %3 = vector.shape_cast %2 : vector<128x128xbf16> to vector<1x128x128xbf16>
    %4 = vector.broadcast %1 : vector<8x1x128xbf16> to vector<8x128x128xbf16>
    %5 = vector.broadcast %3 : vector<1x128x128xbf16> to vector<8x128x128xbf16>
    %6 = arith.addf %4, %5 : vector<8x128x128xbf16>
    %cst = arith.constant 0.000000e+00 : bf16
    %7 = vector.broadcast %cst : bf16 to vector<8x128x128xbf16>
    %8 = arith.maximumf %6, %7 : vector<8x128x128xbf16>
    %9 = vector.shape_cast %8 : vector<8x128x128xbf16> to vector<1024x128xbf16>
    %c0_3 = arith.constant 0 : index
    %c0_4 = arith.constant 0 : index
    %10 = vector.load %arg4[%c0_3, %c0_4] : memref<128x128xbf16, #tpu.memory_space<vmem>>, vector<128x128xbf16>
    %c0_5 = arith.constant 0 : index
    %c0_6 = arith.constant 0 : index
    %11 = vector.load %arg5[%c0_5, %c0_6] : memref<1x128xf32, #tpu.memory_space<vmem>>, vector<1x128xf32>
    %cst_7 = arith.constant dense<0.000000e+00> : vector<1024x128xf32>
    %12 = tpu.matmul %9, %10, %cst_7 {dimension_numbers = #tpu.dot_dimension_numbers<[1], [0], [0], [1], [0, 0, 1, 1], [], []>} : vector<1024x128xbf16>, vector<128x128xbf16>, vector<1024x128xf32> -> vector<1024x128xf32>
    %13 = vector.broadcast %11 : vector<1x128xf32> to vector<1024x128xf32>
    %14 = arith.addf %12, %13 : vector<1024x128xf32>
    %cst_8 = arith.constant 0.000000e+00 : f32
    %15 = vector.broadcast %cst_8 : f32 to vector<1024x128xf32>
    %16 = arith.maximumf %14, %15 : vector<1024x128xf32>
    %17 = arith.truncf %16 : vector<1024x128xf32> to vector<1024x128xbf16>
    %c0_9 = arith.constant 0 : index
    %c0_10 = arith.constant 0 : index
    %18 = vector.load %arg6[%c0_9, %c0_10] : memref<128x128xbf16, #tpu.memory_space<vmem>>, vector<128x128xbf16>
    %c0_11 = arith.constant 0 : index
    %c0_12 = arith.constant 0 : index
    %19 = vector.load %arg7[%c0_11, %c0_12] : memref<1x128xf32, #tpu.memory_space<vmem>>, vector<1x128xf32>
    %cst_13 = arith.constant dense<0.000000e+00> : vector<1024x128xf32>
    %20 = tpu.matmul %17, %18, %cst_13 {dimension_numbers = #tpu.dot_dimension_numbers<[1], [0], [0], [1], [0, 0, 1, 1], [], []>} : vector<1024x128xbf16>, vector<128x128xbf16>, vector<1024x128xf32> -> vector<1024x128xf32>
    %21 = vector.broadcast %19 : vector<1x128xf32> to vector<1024x128xf32>
    %22 = arith.addf %20, %21 : vector<1024x128xf32>
    %cst_14 = arith.constant 0.000000e+00 : f32
    %23 = vector.broadcast %cst_14 : f32 to vector<1024x128xf32>
    %24 = arith.maximumf %22, %23 : vector<1024x128xf32>
    %25 = arith.truncf %24 : vector<1024x128xf32> to vector<1024x128xbf16>
    %c0_15 = arith.constant 0 : index
    %c0_16 = arith.constant 0 : index
    %26 = vector.load %arg8[%c0_15, %c0_16] : memref<1x128xf32, #tpu.memory_space<vmem>>, vector<1x128xf32>
    %c0_17 = arith.constant 0 : index
    %27 = memref.load %arg9[%c0_17] : memref<1xf32, #tpu.memory_space<smem>>
    %28 = vector.shape_cast %25 : vector<1024x128xbf16> to vector<8x128x128xbf16>
    %29 = vector.shape_cast %26 : vector<1x128xf32> to vector<1x1x128xf32>
    %30 = arith.extf %28 : vector<8x128x128xbf16> to vector<8x128x128xf32>
    %31 = vector.broadcast %29 : vector<1x1x128xf32> to vector<8x128x128xf32>
    %32 = arith.mulf %30, %31 : vector<8x128x128xf32>
    %cst_18 = arith.constant dense<0.000000e+00> : vector<8x128xf32>
    %33 = vector.multi_reduction <add>, %32, %cst_18 [2] : vector<8x128x128xf32> to vector<8x128xf32>
    %34 = vector.broadcast %27 : f32 to vector<8x128xf32>
    %35 = arith.addf %33, %34 : vector<8x128xf32>
    %c0_19 = arith.constant 0 : index
    %c0_20 = arith.constant 0 : index
    %36 = vector.load %arg10[%c0_19, %c0_20] : memref<8x128xf32, #tpu.memory_space<vmem>>, vector<8x128xf32>
    tpu.vector_store %arg10[%c0_19, %c0_20], %35 {strides = array<i32>} : memref<8x128xf32, #tpu.memory_space<vmem>>, vector<8x128xf32>,
    return
  }
  func.func @transform_0(%arg0: i32, %arg1: i32) -> (i32, i32) {
    %c0_i32 = arith.constant 0 : i32
    %c0_i32_0 = arith.constant 0 : i32
    return %arg0, %c0_i32 : i32, i32
  }
  func.func @transform_1(%arg0: i32, %arg1: i32) -> (i32, i32) {
    %c0_i32 = arith.constant 0 : i32
    %c0_i32_0 = arith.constant 0 : i32
    return %arg1, %c0_i32 : i32, i32
  }
  func.func @transform_2(%arg0: i32, %arg1: i32) -> (i32, i32) {
    %c0_i32 = arith.constant 0 : i32
    %c0_i32_0 = arith.constant 0 : i32
    %c0_i32_1 = arith.constant 0 : i32
    return %c0_i32, %c0_i32_0 : i32, i32
  }
  func.func @transform_3(%arg0: i32, %arg1: i32) -> (i32, i32) {
    %c0_i32 = arith.constant 0 : i32
    %c0_i32_0 = arith.constant 0 : i32
    %c0_i32_1 = arith.constant 0 : i32
    return %c0_i32, %c0_i32_0 : i32, i32
  }
  func.func @transform_4(%arg0: i32, %arg1: i32) -> (i32, i32) {
    %c0_i32 = arith.constant 0 : i32
    %c0_i32_0 = arith.constant 0 : i32
    %c0_i32_1 = arith.constant 0 : i32
    return %c0_i32, %c0_i32_0 : i32, i32
  }
  func.func @transform_5(%arg0: i32, %arg1: i32) -> (i32, i32) {
    %c0_i32 = arith.constant 0 : i32
    %c0_i32_0 = arith.constant 0 : i32
    %c0_i32_1 = arith.constant 0 : i32
    return %c0_i32, %c0_i32_0 : i32, i32
  }
  func.func @transform_6(%arg0: i32, %arg1: i32) -> (i32, i32) {
    %c0_i32 = arith.constant 0 : i32
    %c0_i32_0 = arith.constant 0 : i32
    %c0_i32_1 = arith.constant 0 : i32
    return %c0_i32, %c0_i32_0 : i32, i32
  }
  func.func @transform_7(%arg0: i32, %arg1: i32) -> i32 {
    %c0_i32 = arith.constant 0 : i32
    %c0_i32_0 = arith.constant 0 : i32
    return %c0_i32 : i32
  }
  func.func @transform_8(%arg0: i32, %arg1: i32) -> (i32, i32) {
    %c0_i32 = arith.constant 0 : i32
    return %arg0, %arg1 : i32, i32
  }
}

</mosaic_0001>

<bundles_post_ra>
// kernel: tpu_custom_call.1
= control target key start
LH: loop header
LB: loop body
LE: loop exit
PB: predicated region body
PF: predicated region fallthrough
CT: control target
= control target key end

     0   :  { %14 = vsyncpa [#allocation4], 0  ;;  %s5182_s0 = inlined_call_operand.hbm [shape: bf16[8,128], index: 0, kind: input, shape index: {}]   ;;  %s5183_s1 = inlined_call_operand.hbm [shape: bf16[128,128], index: 1, kind: input, shape index: {}]   ;;  %s5184_s2 = inlined_call_operand.hbm [shape: bf16[128,128], index: 2, kind: input, shape index: {}]   ;;  %s5185_s3 = inlined_call_operand.vmem [shape: f32[1,128], index: 3, kind: input, shape index: {}]   ;;  %s5186_s4 = inlined_call_operand.hbm [shape: bf16[128,128], index: 4, kind: input, shape index: {}]   ;;  %s5187_s5 = inlined_call_operand.vmem [shape: f32[1,128], index: 5, kind: input, shape index: {}]   ;;  %s5188_s6 = inlined_call_operand.vmem [shape: f32[1,128], index: 6, kind: input, shape index: {}]   ;;  %s5189_s7 = inlined_call_operand.<no memory space> [shape: f32[1], index: 7, kind: input, shape index: {}]   ;;  %s5190_s8 = inlined_call_operand.hbm [shape: f32[8,128], index: 8, kind: output, shape index: {}]  }
   0x1   :  { %15 = vsyncpa [#allocation7], 0 }
   0x2   :  { %16 = vsyncpa [#allocation10], 0  ;;  %s33_s29 = sshll.u32 %s5183_s1, 4  ;;  %s34_s29 = int_to_ptr.hbm [resolvable:$true] %s33_s29 }
   0x3   :  { %17 = vsyncpa [#allocation5], 0  ;;  %s3846_s30 = smov [#allocation6]   ;;  %s23_s12 = sshll.u32 %s5182_s0, 4  ;;  %s24_s12 = int_to_ptr.hbm [resolvable:$true] %s23_s12 }
   0x4   :  { %s35_s9 = sshll.u32 %s3846_s30, 4  ;;  %s3847_s13 = smov 64   ;;  %s36_s9 = int_to_ptr.vmem [resolvable:$true] %s35_s9 }
   0x5   :  { %s3848_s14 = smov 4   ;;  %s3849_s15 = smov [#allocation3]  }
   0x6   :  { %41 = dma.hbm_to_vmem [thread:$0]  %s34_s29, 1024, %s36_s9, [#allocation7], %s3847_s13, %s3847_s13, %s3848_s14  }
   0x7   :  { %s25_s16 = sshll.u32 %s3849_s15, 4  ;;  %s46_s19 = sshll.u32 %s5184_s2, 4  ;;  %s26_s16 = int_to_ptr.vmem [resolvable:$true] %s25_s16  ;;  %s47_s19 = int_to_ptr.hbm [resolvable:$true] %s46_s19 }
   0x8   :  { %28 = dma.hbm_to_vmem [thread:$0]  %s24_s12, 64, %s26_s16, [#allocation4]  }
   0x9   :  { %s61_s21 = sshll.u32 %s5186_s4, 4  ;;  %s3850_s22 = smov [#allocation8]   ;;  %s62_s21 = int_to_ptr.hbm [resolvable:$true] %s61_s21 }
   0xa   :  { %s48_s23 = sshll.u32 %s3850_s22, 4  ;;  %s3851_s0 = smov [#allocation9]   ;;  %s49_s23 = int_to_ptr.vmem [resolvable:$true] %s48_s23 }
   0xb   :  { %54 = dma.hbm_to_vmem [thread:$0]  %s47_s19, 1024, %s49_s23, [#allocation7], %s3847_s13, %s3847_s13, %s3848_s14  }
   0xc   :  { %s63_s24 = sshll.u32 %s3851_s0, 4  ;;  %s64_s24 = int_to_ptr.vmem [resolvable:$true] %s63_s24 }
   0xd   :  { %69 = dma.hbm_to_vmem [thread:$0]  %s62_s21, 1024, %s64_s24, [#allocation10], %s3847_s13, %s3847_s13, %s3848_s14  }
   0xe   :  { %3838 = dma.done.wait [#allocation4], 64  }
   0xf   :  { %3839 = vsyncadd [#allocation4], 4294967232 }
  0x10   :  { %3840 = dma.done.wait [#allocation7], 2048  }
  0x11   :  { %3841 = vsyncadd [#allocation7], 4294965248 }
  0x12   :  { %3842 = dma.done.wait [#allocation10], 1024  }
  0x13   :  { %3843 = vsyncadd [#allocation10], 4294966272  ;;  %v3635_v0 = vld [vmem:[#allocation8 + $0x38] sm:$0xff]  ;;  %v3634_v1 = vld [vmem:[#allocation8 + $0x30] sm:$0xff]  ;;  %vm95_vm0 = vcmask 1040384   ;;  %vm5192_vm1 = vcmask 1042434  }
  0x14   :  { %1300 = vmatpush.bf16.msra.mxu0 %v3635_v0  ;;  %3683 = vmatpush.bf16.msra.mxu2 %v3635_v0  ;;  %v3910_v2 = vld [vmem:[#allocation3] sm:$0xf]  ;;  %v3633_v6 = vld [vmem:[#allocation8 + $0x28] sm:$0xff]  ;;  %v3645_v11 = vld [vmem:[#allocation6] sm:$0xff]   ;;  %vm100_vm2 = vcmask 1041409   ;;  %vm5191_vm3 = vcmask 1043459  }
  0x15   :  { %v3913_v3 = vrot.slane %v3910_v2, 3  ;;  %v3632_v12 = vld [vmem:[#allocation8 + $0x20] sm:$0xff]  ;;  %v3928_v15 = vunpack.c.l.bf16 %v3645_v11  ;;  %v3930_v16 = vunpack.c.h.bf16 %v3645_v11  ;;  %v3631_v19 = vld [vmem:[#allocation8 + $0x18] sm:$0xff]  ;;  %v3630_v25 = vld [vmem:[#allocation8 + $0x10] sm:$0xff]  ;;  %vm3253_vm4 = vcmask 130112   ;;  %s3548_s2 = sshll.u32 %s5190_s8, 4  ;;  %s3549_s2 = int_to_ptr.hbm [resolvable:$true] %s3548_s2 }
  0x16   :  { %v3676_v34 = vld [vmem:[#allocation6 + $0x8] sm:$0xff]   ;;  %v3628_v44 = vld [vmem:[#allocation8] sm:$0xff]  ;;  %v3677_v59 = vld [vmem:[#allocation6 + $0x10] sm:$0xff]   ;;  %vm3257_vm5 = vcmask 195712   ;;  %vm3261_vm6 = vcmask 261312   ;;  %vm3265_vm7 = vcmask 326912  }
  0x17   :  { %v3917_v4 = vsel %vm95_vm0, %v3910_v2, %v3913_v3  ;;  %v105_v5 = vsel %vm5192_vm1, %v3910_v2, %v3913_v3  ;;  %v3629_v35 = vld [vmem:[#allocation8 + $0x8] sm:$0xff]  ;;  %v3944_v38 = vunpack.c.l.bf16 %v3676_v34  ;;  %v3946_v39 = vunpack.c.h.bf16 %v3676_v34 }
  0x18   :  { %1301 = vmatpush.bf16.msra.mxu0 %v3634_v1  ;;  %3684 = vmatpush.bf16.msra.mxu2 %v3634_v1  ;;  %v3560_v7 = vpack.i.b16 %v3917_v4, %v3917_v4  ;;  %v3924_v8 = vrot.slane %v105_v5, 2  ;;  %v3956_v60 = vunpack.c.l.bf16 %v3677_v59  ;;  %v3958_v61 = vunpack.c.h.bf16 %v3677_v59 }
  0x19   :  { %vm3269_vm8 = vcmask 392512   ;;  %vm3273_vm9 = vcmask 458112   ;;  %vm3277_vm10 = vcmask 523712   ;;  %vm3281_vm11 = vcmask 589312  }
  0x1a   :  { %v144_v9 = vperm.slane %v3560_v7, 0  ;;  %v3562_v10 = vpack.i.b16 %v3924_v8, %v3924_v8  ;;  %vm3285_vm12 = vcmask 654912   ;;  %vm3289_vm13 = vcmask 720512  }
  0x1b   :  { %vm3293_vm14 = vcmask 786112   ;;  %vm3297_vm15 = vcmask 851712   ;;  %vm3301_vm0 = vcmask 917312   ;;  %vm3309_vm1 = vcmask 1048512  }
  0x1c   :  { %1302 = vmatpush.bf16.msra.mxu0 %v3633_v6  ;;  %3685 = vmatpush.bf16.msra.mxu2 %v3633_v6  ;;  %v153_v13 = vpack.i.b16 %v144_v9, %v144_v9  ;;  %v148_v14 = vperm.slane %v3562_v10, 0 }
  0x1e   :  { %v155_v17 = vperm.slane %v153_v13, 0  ;;  %v169_v18 = vpack.i.b16 %v148_v14, %v148_v14 }
  0x20   :  { %1303 = vmatpush.bf16.msra.mxu0 %v3632_v12  ;;  %3686 = vmatpush.bf16.msra.mxu2 %v3632_v12  ;;  %v3932_v20 = vunpack.c.l.bf16 %v155_v17  ;;  %v171_v21 = vperm.slane %v169_v18, 0 }
  0x22   :  { %v208_v22 = vadd.f32 %v3928_v15, %v3932_v20  ;;  %v209_v23 = vadd.f32 %v3930_v16, %v3932_v20  ;;  %v3938_v24 = vunpack.c.l.bf16 %v171_v21  ;;  %v210_v45 = vadd.f32 %v3944_v38, %v3932_v20 }
  0x23   :  { %v211_v46 = vadd.f32 %v3946_v39, %v3932_v20  ;;  %v212_v5 = vadd.f32 %v3956_v60, %v3932_v20  ;;  %v213_v6 = vadd.f32 %v3958_v61, %v3932_v20 }
  0x24   :  { %1304 = vmatpush.bf16.msra.mxu0 %v3631_v19  ;;  %3687 = vmatpush.bf16.msra.mxu2 %v3631_v19  ;;  %v592_v26 = vmax.f32 %v208_v22, 0.0  ;;  %v593_v27 = vmax.f32 %v209_v23, 0.0  ;;  %v272_v28 = vadd.f32 %v3928_v15, %v3938_v24  ;;  %v273_v29 = vadd.f32 %v3930_v16, %v3938_v24  ;;  %v3678_v23 = vld [vmem:[#allocation6 + $0x18] sm:$0xff]  }
  0x25   :  { %v274_v49 = vadd.f32 %v3944_v38, %v3938_v24  ;;  %v275_v50 = vadd.f32 %v3946_v39, %v3938_v24  ;;  %v594_v51 = vmax.f32 %v210_v45, 0.0  ;;  %v595_v52 = vmax.f32 %v211_v46, 0.0 }
  0x26   :  { %v656_v30 = vmax.f32 %v272_v28, 0.0  ;;  %v657_v31 = vmax.f32 %v273_v29, 0.0  ;;  %v720_v32 = vpack.c.bf16 %v592_v26, %v592_v26  ;;  %v721_v33 = vpack.c.bf16 %v593_v27, %v593_v27 }
  0x27   :  { %v658_v53 = vmax.f32 %v274_v49, 0.0  ;;  %v659_v54 = vmax.f32 %v275_v50, 0.0  ;;  %v722_v55 = vpack.c.bf16 %v594_v51, %v594_v51  ;;  %v723_v56 = vpack.c.bf16 %v595_v52, %v595_v52 }
  0x28   :  { %1305 = vmatpush.bf16.msra.mxu0 %v3630_v25  ;;  %3688 = vmatpush.bf16.msra.mxu2 %v3630_v25  ;;  %v784_v36 = vpack.c.bf16 %v656_v30, %v656_v30  ;;  %v785_v37 = vpack.c.bf16 %v657_v31, %v657_v31  ;;  %v996_v40 = vunpack.c.l.b16 %v720_v32  ;;  %v997_v41 = vunpack.c.l.b16 %v721_v33 }
  0x29   :  { %v786_v57 = vpack.c.bf16 %v658_v53, %v658_v53  ;;  %v787_v58 = vpack.c.bf16 %v659_v54, %v659_v54  ;;  %v998_v62 = vunpack.c.l.b16 %v722_v55  ;;  %v999_v63 = vunpack.c.l.b16 %v723_v56 }
  0x2a   :  { %v1060_v42 = vunpack.c.l.b16 %v784_v36  ;;  %v1061_v43 = vunpack.c.l.b16 %v785_v37  ;;  %v1124_v47 = vpack.c.b16 %v997_v41, %v996_v40  ;;  %v276_v7 = vadd.f32 %v3956_v60, %v3938_v24 }
  0x2b   :  { %v1062_v0 = vunpack.c.l.b16 %v786_v57  ;;  %v1063_v1 = vunpack.c.l.b16 %v787_v58  ;;  %v277_v9 = vadd.f32 %v3958_v61, %v3938_v24  ;;  %v1125_v10 = vpack.c.b16 %v999_v63, %v998_v62 }
  0x2c   :  { %1306 = vmatpush.bf16.msra.mxu0 %v3629_v35  ;;  %3689 = vmatpush.bf16.msra.mxu2 %v3629_v35  ;;  %v1156_v48 = vpack.c.b16 %v1061_v43, %v1060_v42  ;;  %v596_v12 = vmax.f32 %v212_v5, 0.0  ;;  %v597_v13 = vmax.f32 %v213_v6, 0.0  ;;  %v660_v14 = vmax.f32 %v276_v7, 0.0 }
  0x2d   :  { %v1157_v11 = vpack.c.b16 %v1063_v1, %v1062_v0  ;;  %v661_v17 = vmax.f32 %v277_v9, 0.0  ;;  %v3968_v29 = vunpack.c.l.bf16 %v3678_v23  ;;  %v3970_v30 = vunpack.c.h.bf16 %v3678_v23 }
  0x2e   :  { %v724_v18 = vpack.c.bf16 %v596_v12, %v596_v12  ;;  %v725_v19 = vpack.c.bf16 %v597_v13, %v597_v13  ;;  %v788_v21 = vpack.c.bf16 %v660_v14, %v660_v14 }
  0x2f   :  { %v789_v22 = vpack.c.bf16 %v661_v17, %v661_v17  ;;  %v214_v33 = vadd.f32 %v3968_v29, %v3932_v20  ;;  %v215_v34 = vadd.f32 %v3970_v30, %v3932_v20  ;;  %v278_v35 = vadd.f32 %v3968_v29, %v3938_v24 }
  0x30   :  { %1307 = vmatpush.bf16.msra.mxu0 %v3628_v44  ;;  %3690 = vmatpush.bf16.msra.mxu2 %v3628_v44  ;;  %v1000_v25 = vunpack.c.l.b16 %v724_v18  ;;  %v1001_v26 = vunpack.c.l.b16 %v725_v19  ;;  %v1064_v27 = vunpack.c.l.b16 %v788_v21  ;;  %v279_v36 = vadd.f32 %v3970_v30, %v3938_v24 }
  0x31   :  { %v1065_v28 = vunpack.c.l.b16 %v789_v22  ;;  %v598_v37 = vmax.f32 %v214_v33, 0.0  ;;  %v599_v40 = vmax.f32 %v215_v34, 0.0  ;;  %v662_v41 = vmax.f32 %v278_v35, 0.0  ;;  %v3643_v33 = vld [vmem:[#allocation9 + $0x38] sm:$0xff] }
  0x32   :  { %v1126_v31 = vpack.c.b16 %v1001_v26, %v1000_v25  ;;  %v663_v42 = vmax.f32 %v279_v36, 0.0  ;;  %1889 = vmatpush.bf16.msra.mxu1 %v3643_v33  ;;  %3691 = vmatpush.bf16.msra.mxu3 %v3643_v33 }
  0x33   :  { %1308 = vmatmul.bf16.vlgmr.msra.gmra.mxu0 %v1124_v47  ;;  %1468 = vmatmul.bf16.vlgmr.msra.gmra.mxu2 %v1156_v48  ;;  %v1158_v32 = vpack.c.b16 %v1065_v28, %v1064_v27  ;;  %v726_v43 = vpack.c.bf16 %v598_v37, %v598_v37  ;;  %v727_v44 = vpack.c.bf16 %v599_v40, %v599_v40  ;;  %v3679_v47 = vld [vmem:[#allocation6 + $0x20] sm:$0xff]   ;;  %v3681_v40 = vld [vmem:[#allocation6 + $0x30] sm:$0xff]  }
  0x34   :  { %v790_v45 = vpack.c.bf16 %v662_v41, %v662_v41  ;;  %v791_v46 = vpack.c.bf16 %v663_v42, %v663_v42  ;;  %v3980_v48 = vunpack.c.l.bf16 %v3679_v47  ;;  %v3982_v49 = vunpack.c.h.bf16 %v3679_v47 }
  0x35   :  { %v1002_v50 = vunpack.c.l.b16 %v726_v43  ;;  %v1003_v51 = vunpack.c.l.b16 %v727_v44  ;;  %v4004_v41 = vunpack.c.l.bf16 %v3681_v40  ;;  %v4006_v42 = vunpack.c.h.bf16 %v3681_v40  ;;  %v3638_v40 = vld [vmem:[#allocation9 + $0x10] sm:$0xff] }
  0x36   :  { %v1066_v52 = vunpack.c.l.b16 %v790_v45  ;;  %v1067_v53 = vunpack.c.l.b16 %v791_v46  ;;  %v216_v54 = vadd.f32 %v3980_v48, %v3932_v20  ;;  %v217_v55 = vadd.f32 %v3982_v49, %v3932_v20 }
  0x37   :  { %v280_v56 = vadd.f32 %v3980_v48, %v3938_v24  ;;  %v281_v57 = vadd.f32 %v3982_v49, %v3938_v24  ;;  %v1127_v58 = vpack.c.b16 %v1003_v51, %v1002_v50  ;;  %v220_v47 = vadd.f32 %v4004_v41, %v3932_v20 }
  0x38   :  { %v1159_v59 = vpack.c.b16 %v1067_v53, %v1066_v52  ;;  %v600_v62 = vmax.f32 %v216_v54, 0.0  ;;  %v601_v63 = vmax.f32 %v217_v55, 0.0  ;;  %v221_v50 = vadd.f32 %v4006_v42, %v3932_v20 }
  0x39   :  { %v664_v0 = vmax.f32 %v280_v56, 0.0  ;;  %v665_v1 = vmax.f32 %v281_v57, 0.0  ;;  %v284_v53 = vadd.f32 %v4004_v41, %v3938_v24  ;;  %v285_v54 = vadd.f32 %v4006_v42, %v3938_v24  ;;  %v3642_v57 = vld [vmem:[#allocation9 + $0x30] sm:$0xff] }
  0x3a   :  { %v728_v5 = vpack.c.bf16 %v600_v62, %v600_v62  ;;  %v729_v6 = vpack.c.bf16 %v601_v63, %v601_v63  ;;  %v604_v55 = vmax.f32 %v220_v47, 0.0  ;;  %v605_v56 = vmax.f32 %v221_v50, 0.0  ;;  %1890 = vmatpush.bf16.msra.mxu1 %v3642_v57  ;;  %v3641_v62 = vld [vmem:[#allocation9 + $0x28] sm:$0xff]  ;;  %3692 = vmatpush.bf16.msra.mxu3 %v3642_v57 }
  0x3b   :  { %v792_v7 = vpack.c.bf16 %v664_v0, %v664_v0  ;;  %v793_v9 = vpack.c.bf16 %v665_v1, %v665_v1  ;;  %v3637_v47 = vld [vmem:[#allocation9 + $0x8] sm:$0xff] }
  0x3c   :  { %v1005_v12 = vunpack.c.l.b16 %v729_v6  ;;  %v732_v63 = vpack.c.bf16 %v604_v55, %v604_v55  ;;  %v733_v0 = vpack.c.bf16 %v605_v56, %v605_v56  ;;  %v3682_v6 = vld [vmem:[#allocation6 + $0x38] sm:$0xff]   ;;  %v3636_v56 = vld [vmem:[#allocation9] sm:$0xff] }
  0x3d   :  { %v1068_v13 = vunpack.c.l.b16 %v792_v7  ;;  %v1069_v14 = vunpack.c.l.b16 %v793_v9  ;;  %v113_v7 = vunpack.i.h.s16 %v3917_v4  ;;  %v117_v9 = vunpack.i.h.s16 %v3924_v8 }
  0x3e   :  { %1891 = vmatpush.bf16.msra.mxu1 %v3641_v62  ;;  %3693 = vmatpush.bf16.msra.mxu3 %v3641_v62 }
  0x3f   :  { %v1160_v21 = vpack.c.b16 %v1069_v14, %v1068_v13  ;;  %v4018_v13 = vunpack.c.l.bf16 %v3682_v6  ;;  %v4020_v14 = vunpack.c.h.bf16 %v3682_v6 }
  0x41   :  { %v222_v4 = vadd.f32 %v4018_v13, %v3932_v20  ;;  %v223_v8 = vadd.f32 %v4020_v14, %v3932_v20 }
  0x43   :  { %1313 = vmatmul.bf16.gmra.mxu0 %v1125_v10  ;;  %1473 = vmatmul.bf16.gmra.mxu2 %v1157_v11  ;;  %v3680_v10 = vld [vmem:[#allocation6 + $0x28] sm:$0xff]   ;;  %v1004_v11 = vunpack.c.l.b16 %v728_v5 }
  0x44   :  { %v3992_v17 = vunpack.c.l.bf16 %v3680_v10  ;;  %v3994_v18 = vunpack.c.h.bf16 %v3680_v10  ;;  %v3640_v10 = vld [vmem:[#allocation9 + $0x20] sm:$0xff] }
  0x45   :  { %v1128_v19 = vpack.c.b16 %v1005_v12, %v1004_v11  ;;  %v1008_v11 = vunpack.c.l.b16 %v732_v63  ;;  %v1009_v12 = vunpack.c.l.b16 %v733_v0  ;;  %1892 = vmatpush.bf16.msra.mxu1 %v3640_v10  ;;  %3694 = vmatpush.bf16.msra.mxu3 %v3640_v10 }
  0x46   :  { %v218_v22 = vadd.f32 %v3992_v17, %v3932_v20  ;;  %v219_v23 = vadd.f32 %v3994_v18, %v3932_v20  ;;  %v282_v25 = vadd.f32 %v3992_v17, %v3938_v24  ;;  %v283_v26 = vadd.f32 %v3994_v18, %v3938_v24 }
  0x48   :  { %v602_v27 = vmax.f32 %v218_v22, 0.0  ;;  %v603_v28 = vmax.f32 %v219_v23, 0.0  ;;  %v137_v22 = vpack.i.b16 %v113_v7, %v113_v7  ;;  %v141_v23 = vpack.i.b16 %v117_v9, %v117_v9 }
  0x4a   :  { %v730_v34 = vpack.c.bf16 %v602_v27, %v602_v27  ;;  %v731_v35 = vpack.c.bf16 %v603_v28, %v603_v28  ;;  %v3639_v27 = vld [vmem:[#allocation9 + $0x18] sm:$0xff]  ;;  %v1130_v28 = vpack.c.b16 %v1009_v12, %v1008_v11  ;;  %v149_v33 = vperm.slane %v141_v23, 0 }
  0x4b   :  { %1893 = vmatpush.bf16.msra.mxu1 %v3639_v27  ;;  %3695 = vmatpush.bf16.msra.mxu3 %v3639_v27 }
  0x4c   :  { %v1006_v43 = vunpack.c.l.b16 %v730_v34  ;;  %v1007_v44 = vunpack.c.l.b16 %v731_v35  ;;  %v606_v34 = vmax.f32 %v222_v4, 0.0  ;;  %v607_v35 = vmax.f32 %v223_v8, 0.0 }
  0x4e   :  { %v1129_v51 = vpack.c.b16 %v1007_v44, %v1006_v43  ;;  %v173_v43 = vpack.i.b16 %v149_v33, %v149_v33  ;;  %v734_v44 = vpack.c.bf16 %v606_v34, %v606_v34 }
  0x4f   :  { %1894 = vmatpush.bf16.msra.mxu1 %v3638_v40  ;;  %3696 = vmatpush.bf16.msra.mxu3 %v3638_v40 }
  0x53   :  { %1318 = vmatmul.bf16.gmra.mxu0 %v1126_v31  ;;  %1478 = vmatmul.bf16.gmra.mxu2 %v1158_v32  ;;  %v666_v31 = vmax.f32 %v282_v25, 0.0  ;;  %v667_v32 = vmax.f32 %v283_v26, 0.0  ;;  %v286_v25 = vadd.f32 %v4018_v13, %v3938_v24  ;;  %v287_v26 = vadd.f32 %v4020_v14, %v3938_v24 }
  0x54   :  { %v735_v24 = vpack.c.bf16 %v607_v35, %v607_v35  ;;  %1895 = vmatpush.bf16.msra.mxu1 %v3637_v47  ;;  %3697 = vmatpush.bf16.msra.mxu3 %v3637_v47 }
  0x55   :  { %v794_v36 = vpack.c.bf16 %v666_v31, %v666_v31  ;;  %v795_v37 = vpack.c.bf16 %v667_v32, %v667_v32  ;;  %v145_v32 = vperm.slane %v137_v22, 0 }
  0x57   :  { %v1070_v45 = vunpack.c.l.b16 %v794_v36  ;;  %v1071_v46 = vunpack.c.l.b16 %v795_v37  ;;  %v670_v36 = vmax.f32 %v286_v25, 0.0  ;;  %v671_v37 = vmax.f32 %v287_v26, 0.0 }
  0x58   :  { %v157_v20 = vpack.i.b16 %v145_v32, %v145_v32  ;;  %1896 = vmatpush.bf16.msra.mxu1 %v3636_v56  ;;  %3698 = vmatpush.bf16.msra.mxu3 %v3636_v56 }
  0x59   :  { %v1161_v52 = vpack.c.b16 %v1071_v46, %v1070_v45  ;;  %v798_v45 = vpack.c.bf16 %v670_v36, %v670_v36  ;;  %v799_v46 = vpack.c.bf16 %v671_v37, %v671_v37  ;;  %v4053_v36 = vld [vmem:[%s5185_s3] ss:$0 sm:$0xff] }
  0x5a   :  { %v159_v50 = vperm.slane %v157_v20, 0 }
  0x5b   :  { %v1075_v55 = vunpack.c.l.b16 %v799_v46 }
  0x5c   :  { %v4030_v57 = vunpack.c.l.bf16 %v159_v50 }
  0x5e   :  { %v224_v63 = vadd.f32 %v3928_v15, %v4030_v57  ;;  %v225_v0 = vadd.f32 %v3930_v16, %v4030_v57  ;;  %v226_v25 = vadd.f32 %v3944_v38, %v4030_v57  ;;  %v227_v26 = vadd.f32 %v3946_v39, %v4030_v57 }
  0x60   :  { %v608_v6 = vmax.f32 %v224_v63, 0.0  ;;  %v609_v7 = vmax.f32 %v225_v0, 0.0  ;;  %v610_v34 = vmax.f32 %v226_v25, 0.0  ;;  %v611_v35 = vmax.f32 %v227_v26, 0.0 }
  0x62   :  { %v736_v11 = vpack.c.bf16 %v608_v6, %v608_v6  ;;  %v737_v12 = vpack.c.bf16 %v609_v7, %v609_v7 }
  0x63   :  { %1323 = vmatmul.bf16.gmra.mxu0 %v1127_v58  ;;  %1483 = vmatmul.bf16.gmra.mxu2 %v1159_v59  ;;  %v668_v58 = vmax.f32 %v284_v53, 0.0  ;;  %v669_v59 = vmax.f32 %v285_v54, 0.0  ;;  %v1011_v53 = vunpack.c.l.b16 %v735_v24  ;;  %v1074_v54 = vunpack.c.l.b16 %v798_v45 }
  0x64   :  { %v1012_v22 = vunpack.c.l.b16 %v736_v11  ;;  %v1013_v23 = vunpack.c.l.b16 %v737_v12 }
  0x65   :  { %v796_v1 = vpack.c.bf16 %v668_v58, %v668_v58  ;;  %v797_v5 = vpack.c.bf16 %v669_v59, %v669_v59  ;;  %v1163_v62 = vpack.c.b16 %v1075_v55, %v1074_v54 }
  0x66   :  { %v1132_v27 = vpack.c.b16 %v1013_v23, %v1012_v22 }
  0x73   :  { %1328 = vmatmul.bf16.gmra.mxu0 %v1128_v19  ;;  %1488 = vmatmul.bf16.gmra.mxu2 %v1160_v21  ;;  %v1072_v19 = vunpack.c.l.b16 %v796_v1  ;;  %v1073_v21 = vunpack.c.l.b16 %v797_v5 }
  0x75   :  { %v1162_v31 = vpack.c.b16 %v1073_v21, %v1072_v19 }
  0x83   :  { %1333 = vmatmul.bf16.gmra.mxu0 %v1129_v51  ;;  %1493 = vmatmul.bf16.gmra.mxu2 %v1161_v52  ;;  %v175_v51 = vperm.slane %v173_v43, 0  ;;  %v1010_v52 = vunpack.c.l.b16 %v734_v44  ;;  %v738_v43 = vpack.c.bf16 %v610_v34, %v610_v34  ;;  %v739_v44 = vpack.c.bf16 %v611_v35, %v611_v35 }
  0x85   :  { %v4032_v58 = vunpack.c.l.bf16 %v175_v51  ;;  %v1131_v59 = vpack.c.b16 %v1011_v53, %v1010_v52  ;;  %v1014_v51 = vunpack.c.l.b16 %v738_v43  ;;  %v1015_v52 = vunpack.c.l.b16 %v739_v44 }
  0x87   :  { %v288_v1 = vadd.f32 %v3928_v15, %v4032_v58  ;;  %v289_v5 = vadd.f32 %v3930_v16, %v4032_v58  ;;  %v291_v32 = vadd.f32 %v3946_v39, %v4032_v58  ;;  %v1133_v0 = vpack.c.b16 %v1015_v52, %v1014_v51 }
  0x88   :  { %v231_v51 = vadd.f32 %v3970_v30, %v4030_v57 }
  0x89   :  { %v672_v9 = vmax.f32 %v288_v1, 0.0  ;;  %v673_v10 = vmax.f32 %v289_v5, 0.0  ;;  %v675_v40 = vmax.f32 %v291_v32, 0.0  ;;  %v228_v1 = vadd.f32 %v3956_v60, %v4030_v57 }
  0x8a   :  { %v229_v5 = vadd.f32 %v3958_v61, %v4030_v57 }
  0x8b   :  { %v800_v19 = vpack.c.bf16 %v672_v9, %v672_v9  ;;  %v801_v21 = vpack.c.bf16 %v673_v10, %v673_v10  ;;  %v803_v46 = vpack.c.bf16 %v675_v40, %v675_v40  ;;  %v292_v9 = vadd.f32 %v3956_v60, %v4032_v58 }
  0x8c   :  { %v293_v10 = vadd.f32 %v3958_v61, %v4032_v58  ;;  %v613_v22 = vmax.f32 %v229_v5, 0.0 }
  0x8d   :  { %v1076_v4 = vunpack.c.l.b16 %v800_v19  ;;  %v1077_v8 = vunpack.c.l.b16 %v801_v21  ;;  %v1079_v56 = vunpack.c.l.b16 %v803_v46  ;;  %v612_v21 = vmax.f32 %v228_v1, 0.0 }
  0x8f   :  { %v740_v26 = vpack.c.bf16 %v612_v21, %v612_v21 }
  0x91   :  { %v1016_v35 = vunpack.c.l.b16 %v740_v26 }
  0x93   :  { %1338 = vmatmul.bf16.gmra.mxu0 %v1130_v28  ;;  %1498 = vmatmul.bf16.gmra.mxu2 %v1162_v31  ;;  %v1164_v28 = vpack.c.b16 %v1077_v8, %v1076_v4  ;;  %v290_v31 = vadd.f32 %v3944_v38, %v4032_v58  ;;  %v676_v4 = vmax.f32 %v292_v9, 0.0  ;;  %v677_v8 = vmax.f32 %v293_v10, 0.0 }
  0x95   :  { %v674_v37 = vmax.f32 %v290_v31, 0.0  ;;  %v804_v31 = vpack.c.bf16 %v676_v4, %v676_v4  ;;  %v805_v32 = vpack.c.bf16 %v677_v8, %v677_v8 }
  0x97   :  { %v802_v45 = vpack.c.bf16 %v674_v37, %v674_v37  ;;  %v1080_v43 = vunpack.c.l.b16 %v804_v31  ;;  %v1081_v44 = vunpack.c.l.b16 %v805_v32 }
  0x99   :  { %v1078_v55 = vunpack.c.l.b16 %v802_v45 }
  0x9b   :  { %v1165_v7 = vpack.c.b16 %v1079_v56, %v1078_v55  ;;  %v295_v55 = vadd.f32 %v3970_v30, %v4032_v58 }
  0xa3   :  { %1343 = vmatmul.bf16.gmra.mxu0 %v1131_v59  ;;  %1503 = vmatmul.bf16.gmra.mxu2 %v1163_v62 }
  0xb0   :  { %v1309_v33 = vpop.f32.mrf.mxu0 }
  0xb1   :  { %v1310_v24 = vadd.f32 %v4053_v36, %v1309_v33 }
  0xb3   :  { %1348 = vmatmul.bf16.gmra.mxu0 %v1132_v27  ;;  %1508 = vmatmul.bf16.gmra.mxu2 %v1164_v28  ;;  %v1629_v53 = vmax.f32 %v1310_v24, 0.0  ;;  %v741_v27 = vpack.c.bf16 %v613_v22, %v613_v22 }
  0xb5   :  { %v1017_v37 = vunpack.c.l.b16 %v741_v27 }
  0xb6   :  { %v1469_v20 = vpop.f32.mrf.mxu2 }
  0xb7   :  { %v1470_v59 = vadd.f32 %v4053_v36, %v1469_v20 }
  0xb8   :  { %v1311_v47 = vpop.f32.mrf.mxu0 }
  0xb9   :  { %v1312_v50 = vadd.f32 %v4053_v36, %v1311_v47  ;;  %v1693_v12 = vmax.f32 %v1470_v59, 0.0  ;;  %v1134_v47 = vpack.c.b16 %v1017_v37, %v1016_v35  ;;  %v233_v35 = vadd.f32 %v3982_v49, %v4030_v57 }
  0xbb   :  { %v1630_v54 = vmax.f32 %v1312_v50, 0.0  ;;  %v230_v50 = vadd.f32 %v3968_v29, %v4030_v57 }
  0xbd   :  { %v1757_v62 = vpack.c.bf16 %v1630_v54, %v1629_v53  ;;  %v1166_v53 = vpack.c.b16 %v1081_v44, %v1080_v43  ;;  %v294_v54 = vadd.f32 %v3968_v29, %v4032_v58  ;;  %v297_v43 = vadd.f32 %v3982_v49, %v4032_v58 }
  0xbe   :  { %v1471_v63 = vpop.f32.mrf.mxu2 }
  0xbf   :  { %v1472_v6 = vadd.f32 %v4053_v36, %v1471_v63  ;;  %1897 = vmatmul.bf16.vlgmr.msra.gmra.mxu1 %v1757_v62  ;;  %v614_v63 = vmax.f32 %v230_v50, 0.0  ;;  %v678_v5 = vmax.f32 %v294_v54, 0.0 }
  0xc0   :  { %v1314_v11 = vpop.f32.mrf.mxu0 }
  0xc1   :  { %v1694_v19 = vmax.f32 %v1472_v6, 0.0  ;;  %v1315_v28 = vadd.f32 %v4053_v36, %v1314_v11  ;;  %v679_v6 = vmax.f32 %v295_v55, 0.0  ;;  %v742_v9 = vpack.c.bf16 %v614_v63, %v614_v63 }
  0xc3   :  { %1353 = vmatmul.bf16.gmra.mxu0 %v1133_v0  ;;  %1513 = vmatmul.bf16.gmra.mxu2 %v1165_v7  ;;  %v1789_v23 = vpack.c.bf16 %v1694_v19, %v1693_v12  ;;  %v1631_v40 = vmax.f32 %v1315_v28, 0.0  ;;  %v615_v0 = vmax.f32 %v231_v51, 0.0  ;;  %v806_v12 = vpack.c.bf16 %v678_v5, %v678_v5 }
  0xc4   :  { %v807_v19 = vpack.c.bf16 %v679_v6, %v679_v6 }
  0xc5   :  { %2057 = vmatmul.bf16.vlgmr.msra.gmra.mxu3 %v1789_v23  ;;  %v743_v10 = vpack.c.bf16 %v615_v0, %v615_v0  ;;  %v1018_v23 = vunpack.c.l.b16 %v742_v9  ;;  %v1082_v26 = vunpack.c.l.b16 %v806_v12 }
  0xc6   :  { %v1474_v25 = vpop.f32.mrf.mxu2  ;;  %v1083_v27 = vunpack.c.l.b16 %v807_v19 }
  0xc7   :  { %v1475_v24 = vadd.f32 %v4053_v36, %v1474_v25  ;;  %v1019_v4 = vunpack.c.l.b16 %v743_v10 }
  0xc8   :  { %v1316_v33 = vpop.f32.mrf.mxu0 }
  0xc9   :  { %v1317_v34 = vadd.f32 %v4053_v36, %v1316_v33  ;;  %v1695_v59 = vmax.f32 %v1475_v24, 0.0  ;;  %v1135_v33 = vpack.c.b16 %v1019_v4, %v1018_v23  ;;  %v235_v23 = vadd.f32 %v3994_v18, %v4030_v57 }
  0xcb   :  { %v1632_v20 = vmax.f32 %v1317_v34, 0.0  ;;  %v232_v34 = vadd.f32 %v3980_v48, %v4030_v57 }
  0xcd   :  { %v1758_v45 = vpack.c.bf16 %v1632_v20, %v1631_v40  ;;  %v1167_v40 = vpack.c.b16 %v1083_v27, %v1082_v26  ;;  %v296_v20 = vadd.f32 %v3980_v48, %v4032_v58  ;;  %v299_v26 = vadd.f32 %v3994_v18, %v4032_v58 }
  0xce   :  { %v1476_v46 = vpop.f32.mrf.mxu2 }
  0xcf   :  { %v1477_v52 = vadd.f32 %v4053_v36, %v1476_v46  ;;  %1902 = vmatmul.bf16.gmra.mxu1 %v1758_v45  ;;  %v616_v46 = vmax.f32 %v232_v34, 0.0  ;;  %v680_v51 = vmax.f32 %v296_v20, 0.0 }
  0xd0   :  { %v1319_v56 = vpop.f32.mrf.mxu0 }
  0xd1   :  { %v1696_v62 = vmax.f32 %v1477_v52, 0.0  ;;  %v1320_v11 = vadd.f32 %v4053_v36, %v1319_v56  ;;  %v681_v52 = vmax.f32 %v297_v43, 0.0  ;;  %v744_v54 = vpack.c.bf16 %v616_v46, %v616_v46 }
  0xd3   :  { %1358 = vmatmul.bf16.gmra.mxu0 %v1134_v47  ;;  %1518 = vmatmul.bf16.gmra.mxu2 %v1166_v53  ;;  %v1790_v1 = vpack.c.bf16 %v1696_v62, %v1695_v59  ;;  %v1633_v8 = vmax.f32 %v1320_v11, 0.0  ;;  %v617_v47 = vmax.f32 %v233_v35, 0.0  ;;  %v808_v59 = vpack.c.bf16 %v680_v51, %v680_v51 }
  0xd4   :  { %v809_v62 = vpack.c.bf16 %v681_v52, %v681_v52 }
  0xd5   :  { %2062 = vmatmul.bf16.gmra.mxu3 %v1790_v1  ;;  %v745_v55 = vpack.c.bf16 %v617_v47, %v617_v47  ;;  %v1020_v1 = vunpack.c.l.b16 %v744_v54  ;;  %v1084_v9 = vunpack.c.l.b16 %v808_v59 }
  0xd6   :  { %v1479_v7 = vpop.f32.mrf.mxu2  ;;  %v1085_v10 = vunpack.c.l.b16 %v809_v62 }
  0xd7   :  { %v1480_v28 = vadd.f32 %v4053_v36, %v1479_v7  ;;  %v1021_v5 = vunpack.c.l.b16 %v745_v55 }
  0xd8   :  { %v1321_v21 = vpop.f32.mrf.mxu0 }
  0xd9   :  { %v1322_v22 = vadd.f32 %v4053_v36, %v1321_v21  ;;  %v1697_v24 = vmax.f32 %v1480_v28, 0.0  ;;  %v1136_v21 = vpack.c.b16 %v1021_v5, %v1020_v1  ;;  %v300_v1 = vadd.f32 %v4004_v41, %v4032_v58 }
  0xdb   :  { %v1634_v25 = vmax.f32 %v1322_v22, 0.0  ;;  %v234_v22 = vadd.f32 %v3992_v17, %v4030_v57 }
  0xdd   :  { %v1759_v31 = vpack.c.bf16 %v1634_v25, %v1633_v8  ;;  %v1168_v8 = vpack.c.b16 %v1085_v10, %v1084_v9  ;;  %v298_v25 = vadd.f32 %v3992_v17, %v4032_v58  ;;  %v301_v9 = vadd.f32 %v4006_v42, %v4032_v58 }
  0xde   :  { %v1481_v32 = vpop.f32.mrf.mxu2 }
  0xdf   :  { %v1482_v37 = vadd.f32 %v4053_v36, %v1481_v32  ;;  %1907 = vmatmul.bf16.gmra.mxu1 %v1759_v31  ;;  %v618_v32 = vmax.f32 %v234_v22, 0.0  ;;  %v682_v35 = vmax.f32 %v298_v25, 0.0  ;;  %v684_v22 = vmax.f32 %v300_v1, 0.0 }
  0xe0   :  { %v1324_v44 = vpop.f32.mrf.mxu0  ;;  %v109_v25 = vsel %vm5191_vm3, %v3910_v2, %v3913_v3  ;;  %vm3305_vm3 = vcmask 982912  }
  0xe1   :  { %v1698_v45 = vmax.f32 %v1482_v37, 0.0  ;;  %v1325_v56 = vadd.f32 %v4053_v36, %v1324_v44  ;;  %v683_v37 = vmax.f32 %v299_v26, 0.0  ;;  %v746_v20 = vpack.c.bf16 %v618_v32, %v618_v32 }
  0xe3   :  { %1363 = vmatmul.bf16.gmra.mxu0 %v1135_v33  ;;  %1523 = vmatmul.bf16.gmra.mxu2 %v1167_v40  ;;  %v1791_v50 = vpack.c.bf16 %v1698_v45, %v1697_v24  ;;  %v1635_v6 = vmax.f32 %v1325_v56, 0.0  ;;  %v619_v33 = vmax.f32 %v235_v23, 0.0  ;;  %v810_v24 = vpack.c.bf16 %v682_v35, %v682_v35 }
  0xe4   :  { %v811_v45 = vpack.c.bf16 %v683_v37, %v683_v37  ;;  %v236_v56 = vadd.f32 %v4004_v41, %v4030_v57  ;;  %v4124_v35 = vrot.slane %v109_v25, 3 }
  0xe5   :  { %2067 = vmatmul.bf16.gmra.mxu3 %v1791_v50  ;;  %v747_v43 = vpack.c.bf16 %v619_v33, %v619_v33  ;;  %v1022_v50 = vunpack.c.l.b16 %v746_v20  ;;  %v1086_v54 = vunpack.c.l.b16 %v810_v24 }
  0xe6   :  { %v1484_v53 = vpop.f32.mrf.mxu2  ;;  %v1087_v55 = vunpack.c.l.b16 %v811_v45 }
  0xe7   :  { %v1485_v11 = vadd.f32 %v4053_v36, %v1484_v53  ;;  %v1023_v51 = vunpack.c.l.b16 %v747_v43 }
  0xe8   :  { %v1326_v63 = vpop.f32.mrf.mxu0 }
  0xe9   :  { %v1327_v0 = vadd.f32 %v4053_v36, %v1326_v63  ;;  %v1699_v28 = vmax.f32 %v1485_v11, 0.0  ;;  %v237_v63 = vadd.f32 %v4006_v42, %v4030_v57  ;;  %v620_v11 = vmax.f32 %v236_v56, 0.0 }
  0xeb   :  { %v1636_v7 = vmax.f32 %v1327_v0, 0.0  ;;  %v748_v26 = vpack.c.bf16 %v620_v11, %v620_v11 }
  0xed   :  { %v1760_v12 = vpack.c.bf16 %v1636_v7, %v1635_v6  ;;  %v1137_v6 = vpack.c.b16 %v1023_v51, %v1022_v50  ;;  %v1169_v7 = vpack.c.b16 %v1087_v55, %v1086_v54  ;;  %v1024_v20 = vunpack.c.l.b16 %v748_v26 }
  0xee   :  { %v1486_v19 = vpop.f32.mrf.mxu2  ;;  %v239_v54 = vadd.f32 %v4020_v14, %v4030_v57  ;;  %v302_v55 = vadd.f32 %v4018_v13, %v4032_v58 }
  0xef   :  { %v1487_v4 = vadd.f32 %v4053_v36, %v1486_v19  ;;  %1912 = vmatmul.bf16.gmra.mxu1 %v1760_v12 }
  0xf0   :  { %v1329_v27 = vpop.f32.mrf.mxu0 }
  0xf1   :  { %v1700_v31 = vmax.f32 %v1487_v4, 0.0  ;;  %v1330_v44 = vadd.f32 %v4053_v36, %v1329_v27  ;;  %v685_v4 = vmax.f32 %v301_v9, 0.0  ;;  %v623_v9 = vmax.f32 %v239_v54, 0.0 }
  0xf3   :  { %1368 = vmatmul.bf16.gmra.mxu0 %v1136_v21  ;;  %1528 = vmatmul.bf16.gmra.mxu2 %v1168_v8  ;;  %v1792_v34 = vpack.c.bf16 %v1700_v31, %v1699_v28  ;;  %v1637_v52 = vmax.f32 %v1330_v44, 0.0  ;;  %v621_v21 = vmax.f32 %v237_v63, 0.0  ;;  %v101_v8 = vsel %vm100_vm2, %v3910_v2, %v3913_v3 }
  0xf4   :  { %v812_v31 = vpack.c.bf16 %v684_v22, %v684_v22  ;;  %v4121_v32 = vrot.slane %v101_v8, 1  ;;  %v303_v63 = vadd.f32 %v4020_v14, %v4032_v58 }
  0xf5   :  { %2072 = vmatmul.bf16.gmra.mxu3 %v1792_v34  ;;  %v749_v27 = vpack.c.bf16 %v621_v21, %v621_v21  ;;  %v813_v34 = vpack.c.bf16 %v685_v4, %v685_v4 }
  0xf6   :  { %v1489_v40 = vpop.f32.mrf.mxu2  ;;  %v1088_v44 = vunpack.c.l.b16 %v812_v31  ;;  %v3561_v2 = vpack.i.b16 %v4121_v32, %v4121_v32 }
  0xf7   :  { %v1490_v59 = vadd.f32 %v4053_v36, %v1489_v40  ;;  %v1025_v43 = vunpack.c.l.b16 %v749_v27  ;;  %v1089_v45 = vunpack.c.l.b16 %v813_v34 }
  0xf8   :  { %v1331_v46 = vpop.f32.mrf.mxu0  ;;  %v146_v56 = vperm.slane %v3561_v2, 0 }
  0xf9   :  { %v1332_v47 = vadd.f32 %v4053_v36, %v1331_v46  ;;  %v1701_v12 = vmax.f32 %v1490_v59, 0.0  ;;  %v3563_v46 = vpack.i.b16 %v4124_v35, %v4124_v35  ;;  %v1138_v51 = vpack.c.b16 %v1025_v43, %v1024_v20 }
  0xfa   :  { %v161_v11 = vpack.i.b16 %v146_v56, %v146_v56 }
  0xfb   :  { %v1638_v53 = vmax.f32 %v1332_v47, 0.0 }
  0xfc   :  { %v163_v8 = vperm.slane %v161_v11, 0 }
  0xfd   :  { %v1761_v62 = vpack.c.bf16 %v1638_v53, %v1637_v52  ;;  %v238_v53 = vadd.f32 %v4018_v13, %v4030_v57 }
  0xfe   :  { %v1491_v0 = vpop.f32.mrf.mxu2 }
  0xff   :  { %v1492_v5 = vadd.f32 %v4053_v36, %v1491_v0  ;;  %1917 = vmatmul.bf16.gmra.mxu1 %v1761_v62  ;;  %v1170_v62 = vpack.c.b16 %v1089_v45, %v1088_v44  ;;  %v150_v0 = vperm.slane %v3563_v46, 0 }
 0x100   :  { %v1334_v10 = vpop.f32.mrf.mxu0 }
 0x101   :  { %v1702_v19 = vmax.f32 %v1492_v5, 0.0  ;;  %v1335_v33 = vadd.f32 %v4053_v36, %v1334_v10  ;;  %v686_v10 = vmax.f32 %v302_v55, 0.0 }
 0x103   :  { %1373 = vmatmul.bf16.gmra.mxu0 %v1137_v6  ;;  %1533 = vmatmul.bf16.gmra.mxu2 %v1169_v7  ;;  %v1793_v23 = vpack.c.bf16 %v1702_v19, %v1701_v12  ;;  %v1639_v3 = vmax.f32 %v1335_v33, 0.0  ;;  %v622_v7 = vmax.f32 %v238_v53, 0.0  ;;  %v687_v12 = vmax.f32 %v303_v63, 0.0 }
 0x104   :  { %v177_v19 = vpack.i.b16 %v150_v0, %v150_v0  ;;  %v814_v4 = vpack.c.bf16 %v686_v10, %v686_v10 }
 0x105   :  { %2077 = vmatmul.bf16.gmra.mxu3 %v1793_v23  ;;  %v750_v22 = vpack.c.bf16 %v622_v7, %v622_v7  ;;  %v751_v23 = vpack.c.bf16 %v623_v9, %v623_v9  ;;  %v815_v25 = vpack.c.bf16 %v687_v12, %v687_v12 }
 0x106   :  { %v1494_v28 = vpop.f32.mrf.mxu2  ;;  %v179_v26 = vperm.slane %v177_v19, 0  ;;  %v1090_v34 = vunpack.c.l.b16 %v814_v4 }
 0x107   :  { %v1495_v47 = vadd.f32 %v4053_v36, %v1494_v28  ;;  %v1026_v31 = vunpack.c.l.b16 %v750_v22  ;;  %v1027_v33 = vunpack.c.l.b16 %v751_v23  ;;  %v1091_v43 = vunpack.c.l.b16 %v815_v25 }
 0x108   :  { %v1336_v37 = vpop.f32.mrf.mxu0  ;;  %v4145_v44 = vunpack.c.l.bf16 %v179_v26 }
 0x109   :  { %v1337_v40 = vadd.f32 %v4053_v36, %v1336_v37  ;;  %v1703_v5 = vmax.f32 %v1495_v47, 0.0  ;;  %v4143_v37 = vunpack.c.l.bf16 %v163_v8  ;;  %v1139_v45 = vpack.c.b16 %v1027_v33, %v1026_v31 }
 0x10a   :  { %v305_v53 = vadd.f32 %v3930_v16, %v4145_v44 }
 0x10b   :  { %v1640_v24 = vmax.f32 %v1337_v40, 0.0  ;;  %v240_v46 = vadd.f32 %v3928_v15, %v4143_v37  ;;  %v241_v47 = vadd.f32 %v3930_v16, %v4143_v37  ;;  %v243_v31 = vadd.f32 %v3946_v39, %v4143_v37 }
 0x10d   :  { %v1762_v50 = vpack.c.bf16 %v1640_v24, %v1639_v3 }
 0x10e   :  { %v1496_v52 = vpop.f32.mrf.mxu2 }
 0x10f   :  { %v1497_v59 = vadd.f32 %v4053_v36, %v1496_v52  ;;  %1922 = vmatmul.bf16.gmra.mxu1 %v1762_v50  ;;  %v304_v52 = vadd.f32 %v3928_v15, %v4145_v44 }
 0x110   :  { %v1339_v1 = vpop.f32.mrf.mxu0 }
 0x111   :  { %v1704_v6 = vmax.f32 %v1497_v59, 0.0  ;;  %v1340_v58 = vadd.f32 %v4053_v36, %v1339_v1  ;;  %v624_v59 = vmax.f32 %v240_v46, 0.0  ;;  %v688_v0 = vmax.f32 %v304_v52, 0.0 }
 0x112   :  { %v689_v1 = vmax.f32 %v305_v53, 0.0 }
 0x113   :  { %1378 = vmatmul.bf16.gmra.mxu0 %v1138_v51  ;;  %1538 = vmatmul.bf16.gmra.mxu2 %v1170_v62  ;;  %v1794_v57 = vpack.c.bf16 %v1704_v6, %v1703_v5  ;;  %v1641_v40 = vmax.f32 %v1340_v58, 0.0  ;;  %v1171_v51 = vpack.c.b16 %v1091_v43, %v1090_v34  ;;  %v625_v62 = vmax.f32 %v241_v47, 0.0 }
 0x114   :  { %v752_v6 = vpack.c.bf16 %v624_v59, %v624_v59  ;;  %v816_v10 = vpack.c.bf16 %v688_v0, %v688_v0  ;;  %v817_v11 = vpack.c.bf16 %v689_v1, %v689_v1 }
 0x115   :  { %2082 = vmatmul.bf16.gmra.mxu3 %v1794_v57  ;;  %v753_v7 = vpack.c.bf16 %v625_v62, %v625_v62  ;;  %v4173_v62 = vld [vmem:[%s5187_s5] ss:$0 sm:$0xff] }
 0x116   :  { %v1499_v21 = vpop.f32.mrf.mxu2  ;;  %v1028_v19 = vunpack.c.l.b16 %v752_v6  ;;  %v1092_v4 = vunpack.c.l.b16 %v816_v10  ;;  %v1093_v8 = vunpack.c.l.b16 %v817_v11 }
 0x117   :  { %v1500_v2 = vadd.f32 %v4053_v36, %v1499_v21  ;;  %v1029_v21 = vunpack.c.l.b16 %v753_v7 }
 0x118   :  { %v1341_v27 = vpop.f32.mrf.mxu0  ;;  %v1172_v34 = vpack.c.b16 %v1093_v8, %v1092_v4  ;;  %v309_v4 = vadd.f32 %v3958_v61, %v4145_v44 }
 0x119   :  { %v1342_v28 = vadd.f32 %v4053_v36, %v1341_v27  ;;  %v1705_v55 = vmax.f32 %v1500_v2, 0.0  ;;  %v1140_v27 = vpack.c.b16 %v1029_v21, %v1028_v19  ;;  %v244_v21 = vadd.f32 %v3956_v60, %v4143_v37 }
 0x11b   :  { %v1642_v20 = vmax.f32 %v1342_v28, 0.0  ;;  %v242_v28 = vadd.f32 %v3944_v38, %v4143_v37 }
 0x11d   :  { %v1763_v3 = vpack.c.bf16 %v1642_v20, %v1641_v40  ;;  %v306_v40 = vadd.f32 %v3944_v38, %v4145_v44  ;;  %v307_v20 = vadd.f32 %v3946_v39, %v4145_v44 }
 0x11e   :  { %v1501_v24 = vpop.f32.mrf.mxu2 }
 0x11f   :  { %v1502_v50 = vadd.f32 %v4053_v36, %v1501_v24  ;;  %1927 = vmatmul.bf16.gmra.mxu1 %v1763_v3  ;;  %v626_v24 = vmax.f32 %v242_v28, 0.0  ;;  %v690_v47 = vmax.f32 %v306_v40, 0.0  ;;  %v4190_v28 = vld [vmem:[%s5188_s6] ss:$0 sm:$0xff]  ;;  %v628_v40 = vmax.f32 %v244_v21, 0.0 }
 0x120   :  { %v1344_v54 = vpop.f32.mrf.mxu0 }
 0x121   :  { %v1706_v56 = vmax.f32 %v1502_v50, 0.0  ;;  %v1345_v9 = vadd.f32 %v4053_v36, %v1344_v54  ;;  %v691_v50 = vmax.f32 %v307_v20, 0.0  ;;  %v754_v52 = vpack.c.bf16 %v626_v24, %v626_v24 }
 0x123   :  { %1383 = vmatmul.bf16.gmra.mxu0 %v1139_v45  ;;  %1543 = vmatmul.bf16.gmra.mxu2 %v1171_v51  ;;  %v1795_v63 = vpack.c.bf16 %v1706_v56, %v1705_v55  ;;  %v1643_v22 = vmax.f32 %v1345_v9, 0.0  ;;  %v627_v45 = vmax.f32 %v243_v31, 0.0  ;;  %v818_v55 = vpack.c.bf16 %v690_v47, %v690_v47 }
 0x124   :  { %v819_v56 = vpack.c.bf16 %v691_v50, %v691_v50  ;;  %v1030_v0 = vunpack.c.l.b16 %v754_v52 }
 0x125   :  { %2087 = vmatmul.bf16.gmra.mxu3 %v1795_v63  ;;  %v755_v53 = vpack.c.bf16 %v627_v45, %v627_v45  ;;  %v1094_v7 = vunpack.c.l.b16 %v818_v55 }
 0x126   :  { %v1504_v5 = vpop.f32.mrf.mxu2  ;;  %v1095_v9 = vunpack.c.l.b16 %v819_v56 }
 0x127   :  { %v1505_v58 = vadd.f32 %v4053_v36, %v1504_v5  ;;  %v1031_v1 = vunpack.c.l.b16 %v755_v53 }
 0x128   :  { %v1346_v57 = vpop.f32.mrf.mxu0 }
 0x129   :  { %v1347_v12 = vadd.f32 %v4053_v36, %v1346_v57  ;;  %v1707_v2 = vmax.f32 %v1505_v58, 0.0 }
 0x12b   :  { %v1644_v23 = vmax.f32 %v1347_v12, 0.0 }
 0x12d   :  { %v1764_v25 = vpack.c.bf16 %v1644_v23, %v1643_v22  ;;  %v245_v22 = vadd.f32 %v3958_v61, %v4143_v37  ;;  %v308_v23 = vadd.f32 %v3956_v60, %v4145_v44 }
 0x12e   :  { %v1506_v26 = vpop.f32.mrf.mxu2 }
 0x12f   :  { %v1507_v33 = vadd.f32 %v4053_v36, %v1506_v26  ;;  %1932 = vmatmul.bf16.gmra.mxu1 %v1764_v25  ;;  %v1141_v25 = vpack.c.b16 %v1031_v1, %v1030_v0  ;;  %v1173_v26 = vpack.c.b16 %v1095_v9, %v1094_v7  ;;  %v629_v20 = vmax.f32 %v245_v22, 0.0 }
 0x130   :  { %v1349_v43 = vpop.f32.mrf.mxu0 }
 0x131   :  { %v1708_v3 = vmax.f32 %v1507_v33, 0.0  ;;  %v1350_v54 = vadd.f32 %v4053_v36, %v1349_v43  ;;  %v692_v43 = vmax.f32 %v308_v23, 0.0  ;;  %v757_v52 = vpack.c.bf16 %v629_v20, %v629_v20 }
 0x132   :  { %v310_v23 = vadd.f32 %v3968_v29, %v4145_v44 }
 0x133   :  { %1388 = vmatmul.bf16.gmra.mxu0 %v1140_v27  ;;  %1548 = vmatmul.bf16.gmra.mxu2 %v1172_v34  ;;  %v1796_v46 = vpack.c.bf16 %v1708_v3, %v1707_v2  ;;  %v1645_v5 = vmax.f32 %v1350_v54, 0.0  ;;  %v693_v2 = vmax.f32 %v309_v4, 0.0  ;;  %v820_v53 = vpack.c.bf16 %v692_v43, %v692_v43 }
 0x134   :  { %v1033_v7 = vunpack.c.l.b16 %v757_v52  ;;  %v311_v4 = vadd.f32 %v3970_v30, %v4145_v44 }
 0x135   :  { %2092 = vmatmul.bf16.gmra.mxu3 %v1796_v46  ;;  %v821_v54 = vpack.c.bf16 %v693_v2, %v693_v2  ;;  %v1096_v9 = vunpack.c.l.b16 %v820_v53  ;;  %v247_v2 = vadd.f32 %v3970_v30, %v4143_v37 }
 0x136   :  { %v1509_v51 = vpop.f32.mrf.mxu2 }
 0x137   :  { %v1510_v11 = vadd.f32 %v4053_v36, %v1509_v51  ;;  %v756_v51 = vpack.c.bf16 %v628_v40, %v628_v40 }
 0x138   :  { %v1351_v59 = vpop.f32.mrf.mxu0 }
 0x139   :  { %v1352_v63 = vadd.f32 %v4053_v36, %v1351_v59  ;;  %v1709_v31 = vmax.f32 %v1510_v11, 0.0 }
 0x13b   :  { %v1646_v6 = vmax.f32 %v1352_v63, 0.0 }
 0x13c   :  { %v1898_v10 = vpop.f32.mrf.mxu1 }
 0x13d   :  { %v1899_v57 = vadd.f32 %v4173_v62, %v1898_v10  ;;  %v1765_v12 = vpack.c.bf16 %v1646_v6, %v1645_v5  ;;  %v1032_v6 = vunpack.c.l.b16 %v756_v51  ;;  %v1097_v10 = vunpack.c.l.b16 %v821_v54 }
 0x13e   :  { %v1511_v19 = vpop.f32.mrf.mxu2  ;;  %v695_v51 = vmax.f32 %v311_v4, 0.0 }
 0x13f   :  { %v2218_v8 = vmax.f32 %v1899_v57, 0.0  ;;  %v1512_v58 = vadd.f32 %v4053_v36, %v1511_v19  ;;  %1937 = vmatmul.bf16.gmra.mxu1 %v1765_v12 }
 0x140   :  { %v1354_v27 = vpop.f32.mrf.mxu0 }
 0x141   :  { %v2346_v33 = vpack.c.bf16 %v2218_v8, %v2218_v8  ;;  %v1710_v34 = vmax.f32 %v1512_v58, 0.0  ;;  %v1355_v55 = vadd.f32 %v4053_v36, %v1354_v27 }
 0x143   :  { %1393 = vmatmul.bf16.gmra.mxu0 %v1141_v25  ;;  %1553 = vmatmul.bf16.gmra.mxu2 %v1173_v26  ;;  %v1797_v3 = vpack.c.bf16 %v1710_v34, %v1709_v31  ;;  %v2476_v24 = vunpack.c.l.bf16 %v2346_v33  ;;  %v1647_v11 = vmax.f32 %v1355_v55, 0.0  ;;  %v1142_v31 = vpack.c.b16 %v1033_v7, %v1032_v6 }
 0x144   :  { %v1900_v45 = vpop.f32.mrf.mxu1  ;;  %v1174_v33 = vpack.c.b16 %v1097_v10, %v1096_v9  ;;  %v246_v34 = vadd.f32 %v3968_v29, %v4143_v37  ;;  %v823_v6 = vpack.c.bf16 %v695_v51, %v695_v51 }
 0x145   :  { %v1901_v46 = vadd.f32 %v4173_v62, %v1900_v45  ;;  %2097 = vmatmul.bf16.gmra.mxu3 %v1797_v3  ;;  %v2607_v47 = vmul.f32 %v4190_v28, %v2476_v24  ;;  %v694_v45 = vmax.f32 %v310_v23, 0.0 }
 0x146   :  { %v1514_v50 = vpop.f32.mrf.mxu2  ;;  %v630_v54 = vmax.f32 %v246_v34, 0.0 }
 0x147   :  { %v2219_v56 = vmax.f32 %v1901_v46, 0.0  ;;  %2735 = vadd.xlane.f32.xlu0 %v2607_v47  ;;  %v1515_v21 = vadd.f32 %v4053_v36, %v1514_v50 }
 0x148   :  { %v1356_v59 = vpop.f32.mrf.mxu0  ;;  %v2058_v63 = vpop.f32.mrf.mxu3  ;;  %v758_v10 = vpack.c.bf16 %v630_v54, %v630_v54  ;;  %v313_v54 = vadd.f32 %v3982_v49, %v4145_v44 }
 0x149   :  { %v2347_v0 = vpack.c.bf16 %v2219_v56, %v2219_v56  ;;  %v1357_v1 = vadd.f32 %v4053_v36, %v1356_v59  ;;  %v2059_v5 = vadd.f32 %v4173_v62, %v2058_v63  ;;  %v1711_v46 = vmax.f32 %v1515_v21, 0.0 }
 0x14a   :  { %v631_v59 = vmax.f32 %v247_v2, 0.0  ;;  %v248_v2 = vadd.f32 %v3980_v48, %v4143_v37 }
 0x14b   :  { %v2477_v57 = vunpack.c.l.bf16 %v2347_v0  ;;  %v1648_v12 = vmax.f32 %v1357_v1, 0.0  ;;  %v2282_v19 = vmax.f32 %v2059_v5, 0.0  ;;  %v822_v5 = vpack.c.bf16 %v694_v45, %v694_v45 }
 0x14c   :  { %v1903_v22 = vpop.f32.mrf.mxu1 }
 0x14d   :  { %v2410_v8 = vpack.c.bf16 %v2282_v19, %v2282_v19  ;;  %v1904_v58 = vadd.f32 %v4173_v62, %v1903_v22  ;;  %v2608_v25 = vmul.f32 %v4190_v28, %v2477_v57  ;;  %v1766_v26 = vpack.c.bf16 %v1648_v12, %v1647_v11 }
 0x14e   :  { %v1516_v27 = vpop.f32.mrf.mxu2  ;;  %v759_v19 = vpack.c.bf16 %v631_v59, %v631_v59 }
 0x14f   :  { %v2220_v40 = vmax.f32 %v1904_v58, 0.0  ;;  %v1517_v20 = vadd.f32 %v4053_v36, %v1516_v27  ;;  %2737 = vadd.xlane.f32.xlu0 %v2608_v25  ;;  %1942 = vmatmul.bf16.gmra.mxu1 %v1766_v26  ;;  %v2540_v43 = vunpack.c.l.bf16 %v2410_v8  ;;  %v1098_v8 = vunpack.c.l.b16 %v822_v5 }
 0x150   :  { %v1359_v3 = vpop.f32.mrf.mxu0  ;;  %v2060_v24 = vpop.f32.mrf.mxu3  ;;  %v1099_v58 = vunpack.c.l.b16 %v823_v6  ;;  %v632_v5 = vmax.f32 %v248_v2, 0.0 }
 0x151   :  { %v1712_v47 = vmax.f32 %v1517_v20, 0.0  ;;  %v2061_v50 = vadd.f32 %v4173_v62, %v2060_v24  ;;  %v2348_v52 = vpack.c.bf16 %v2220_v40, %v2220_v40  ;;  %v2671_v53 = vmul.f32 %v4190_v28, %v2540_v43 }
 0x152   :  { %v1360_v11 = vadd.f32 %v4053_v36, %v1359_v3  ;;  %v1035_v20 = vunpack.c.l.b16 %v759_v19  ;;  %v249_v3 = vadd.f32 %v3982_v49, %v4143_v37 }
 0x153   :  { %v2283_v55 = vmax.f32 %v2061_v50, 0.0  ;;  %1398 = vmatmul.bf16.gmra.mxu0 %v1142_v31  ;;  %1558 = vmatmul.bf16.gmra.mxu2 %v1174_v33  ;;  %v1798_v56 = vpack.c.bf16 %v1712_v47, %v1711_v46  ;;  %v2478_v7 = vunpack.c.l.bf16 %v2348_v52  ;;  %v1034_v31 = vunpack.c.l.b16 %v758_v10 }
 0x154   :  { %2863 = vadd.xlane.f32.xlu1 %v2671_v53  ;;  %v1905_v63 = vpop.f32.mrf.mxu1  ;;  %v1649_v33 = vmax.f32 %v1360_v11, 0.0  ;;  %v1175_v52 = vpack.c.b16 %v1099_v58, %v1098_v8  ;;  %v312_v53 = vadd.f32 %v3980_v48, %v4145_v44  ;;  %v633_v6 = vmax.f32 %v249_v3, 0.0 }
 0x155   :  { %v1906_v0 = vadd.f32 %v4173_v62, %v1905_v63  ;;  %2102 = vmatmul.bf16.gmra.mxu3 %v1798_v56  ;;  %v2411_v1 = vpack.c.bf16 %v2283_v55, %v2283_v55  ;;  %v2609_v27 = vmul.f32 %v4190_v28, %v2478_v7  ;;  %v1143_v63 = vpack.c.b16 %v1035_v20, %v1034_v31 }
 0x156   :  { %v1519_v9 = vpop.f32.mrf.mxu2  ;;  %v696_v19 = vmax.f32 %v312_v53, 0.0 }
 0x157   :  { %v2221_v57 = vmax.f32 %v1906_v0, 0.0  ;;  %v2541_v12 = vunpack.c.l.bf16 %v2411_v1  ;;  %v1520_v24 = vadd.f32 %v4053_v36, %v1519_v9 }
 0x158   :  { %v1361_v21 = vpop.f32.mrf.mxu0  ;;  %v2063_v22 = vpop.f32.mrf.mxu3 }
 0x159   :  { %v1362_v23 = vadd.f32 %v4053_v36, %v1361_v21  ;;  %v2064_v4 = vadd.f32 %v4173_v62, %v2063_v22  ;;  %v2349_v25 = vpack.c.bf16 %v2221_v57, %v2221_v57  ;;  %v2672_v26 = vmul.f32 %v4190_v28, %v2541_v12 }
 0x15a   :  { %v1713_v7 = vmax.f32 %v1520_v24, 0.0  ;;  %v697_v21 = vmax.f32 %v313_v54, 0.0 }
 0x15b   :  { %v1650_v34 = vmax.f32 %v1362_v23, 0.0  ;;  %v2284_v40 = vmax.f32 %v2064_v4, 0.0  ;;  %2865 = vadd.xlane.f32.xlu2 %v2672_v26  ;;  %v2479_v50 = vunpack.c.l.bf16 %v2349_v25 }
 0x15c   :  { %2739 = vadd.xlane.f32.xlu1 %v2609_v27  ;;  %v1908_v43 = vpop.f32.mrf.mxu1  ;;  %v760_v27 = vpack.c.bf16 %v632_v5, %v632_v5 }
 0x15d   :  { %v2412_v45 = vpack.c.bf16 %v2284_v40, %v2284_v40  ;;  %v1909_v46 = vadd.f32 %v4173_v62, %v1908_v43  ;;  %v1767_v47 = vpack.c.bf16 %v1650_v34, %v1649_v33  ;;  %v2610_v57 = vmul.f32 %v4190_v28, %v2479_v50 }
 0x15e   :  { %v1521_v51 = vpop.f32.mrf.mxu2  ;;  %v761_v33 = vpack.c.bf16 %v633_v6, %v633_v6  ;;  %v824_v34 = vpack.c.bf16 %v696_v19, %v696_v19  ;;  %v825_v40 = vpack.c.bf16 %v697_v21, %v697_v21  ;;  %v1036_v50 = vunpack.c.l.b16 %v760_v27  ;;  %v4251_v21 = vld [vmem:[%s5185_s3] ss:$0 sm:$0xff] }
 0x15f   :  { %v2542_v55 = vunpack.c.l.bf16 %v2412_v45  ;;  %v2222_v56 = vmax.f32 %v1909_v46, 0.0  ;;  %v1522_v59 = vadd.f32 %v4053_v36, %v1521_v51  ;;  %1947 = vmatmul.bf16.gmra.mxu1 %v1767_v47 }
 0x160   :  { %v1364_v0 = vpop.f32.mrf.mxu0  ;;  %v2065_v1 = vpop.f32.mrf.mxu3  ;;  %v1100_v53 = vunpack.c.l.b16 %v824_v34  ;;  %v1101_v54 = vunpack.c.l.b16 %v825_v40 }
 0x161   :  { %v2350_v9 = vpack.c.bf16 %v2222_v56, %v2222_v56  ;;  %v1714_v10 = vmax.f32 %v1522_v59, 0.0  ;;  %v2066_v11 = vadd.f32 %v4173_v62, %v2065_v1  ;;  %v2673_v12 = vmul.f32 %v4190_v28, %v2542_v55 }
 0x162   :  { %v1365_v20 = vadd.f32 %v4053_v36, %v1364_v0 }
 0x163   :  { %v2480_v22 = vunpack.c.l.bf16 %v2350_v9  ;;  %v2285_v23 = vmax.f32 %v2066_v11, 0.0  ;;  %1563 = vmatmul.bf16.gmra.mxu2 %v1175_v52  ;;  %1403 = vmatmul.bf16.gmra.mxu0 %v1143_v63  ;;  %v1799_v4 = vpack.c.bf16 %v1714_v10, %v1713_v7  ;;  %v1037_v52 = vunpack.c.l.b16 %v761_v33 }
 0x164   :  { %2741 = vadd.xlane.f32.xlu1 %v2610_v57  ;;  %2867 = vadd.xlane.f32.xlu0 %v2673_v12  ;;  %v1910_v8 = vpop.f32.mrf.mxu1  ;;  %v1651_v55 = vmax.f32 %v1365_v20, 0.0  ;;  %v250_v11 = vadd.f32 %v3992_v17, %v4143_v37  ;;  %v251_v57 = vadd.f32 %v3994_v18, %v4143_v37  ;;  %v314_v12 = vadd.f32 %v3992_v17, %v4145_v44 }
 0x165   :  { %v2413_v58 = vpack.c.bf16 %v2285_v23, %v2285_v23  ;;  %v1911_v25 = vadd.f32 %v4173_v62, %v1910_v8  ;;  %2107 = vmatmul.bf16.gmra.mxu3 %v1799_v4  ;;  %v2611_v26 = vmul.f32 %v4190_v28, %v2480_v22  ;;  %v1144_v23 = vpack.c.b16 %v1037_v52, %v1036_v50 }
 0x166   :  { %v1524_v31 = vpop.f32.mrf.mxu2  ;;  %v1176_v4 = vpack.c.b16 %v1101_v54, %v1100_v53  ;;  %v634_v34 = vmax.f32 %v250_v11, 0.0  ;;  %v635_v40 = vmax.f32 %v251_v57, 0.0  ;;  %v698_v20 = vmax.f32 %v314_v12, 0.0 }
 0x167   :  { %v2543_v43 = vunpack.c.l.bf16 %v2413_v58  ;;  %v2223_v2 = vmax.f32 %v1911_v25, 0.0  ;;  %2743 = vadd.xlane.f32.xlu2 %v2611_v26  ;;  %v1525_v0 = vadd.f32 %v4053_v36, %v1524_v31 }
 0x168   :  { %v1366_v3 = vpop.f32.mrf.mxu0  ;;  %v2068_v24 = vpop.f32.mrf.mxu3  ;;  %v762_v53 = vpack.c.bf16 %v634_v34, %v634_v34  ;;  %v763_v54 = vpack.c.bf16 %v635_v40, %v635_v40 }
 0x169   :  { %v2351_v45 = vpack.c.bf16 %v2223_v2, %v2223_v2  ;;  %v1367_v46 = vadd.f32 %v4053_v36, %v1366_v3  ;;  %v2069_v47 = vadd.f32 %v4173_v62, %v2068_v24  ;;  %v2674_v51 = vmul.f32 %v4190_v28, %v2543_v43 }
 0x16a   :  { %v315_v36 = vadd.f32 %v3994_v18, %v4145_v44  ;;  %v1715_v8 = vmax.f32 %v1525_v0, 0.0  ;;  %v1039_v11 = vunpack.c.l.b16 %v763_v54 }
 0x16b   :  { %v2481_v56 = vunpack.c.l.bf16 %v2351_v45  ;;  %v1652_v59 = vmax.f32 %v1367_v46, 0.0  ;;  %v2286_v63 = vmax.f32 %v2069_v47, 0.0 }
 0x16c   :  { %2869 = vadd.xlane.f32.xlu1 %v2674_v51  ;;  %v1913_v1 = vpop.f32.mrf.mxu1  ;;  %v699_v43 = vmax.f32 %v315_v36, 0.0 }
 0x16d   :  { %v2414_v5 = vpack.c.bf16 %v2286_v63, %v2286_v63  ;;  %v1914_v6 = vadd.f32 %v4173_v62, %v1913_v1  ;;  %v2612_v7 = vmul.f32 %v4190_v28, %v2481_v56  ;;  %v1768_v9 = vpack.c.bf16 %v1652_v59, %v1651_v55 }
 0x16e   :  { %v1526_v10 = vpop.f32.mrf.mxu2  ;;  %v826_v55 = vpack.c.bf16 %v698_v20, %v698_v20  ;;  %v827_v56 = vpack.c.bf16 %v699_v43, %v699_v43  ;;  %v316_v20 = vadd.f32 %v4004_v41, %v4145_v44  ;;  %v317_v43 = vadd.f32 %v4006_v42, %v4145_v44 }
 0x16f   :  { %v2224_v19 = vmax.f32 %v1914_v6, 0.0  ;;  %v1527_v22 = vadd.f32 %v4251_v21, %v1526_v10  ;;  %2745 = vadd.xlane.f32.xlu2 %v2612_v7  ;;  %1952 = vmatmul.bf16.gmra.mxu1 %v1768_v9  ;;  %v2544_v26 = vunpack.c.l.bf16 %v2414_v5  ;;  %v1038_v10 = vunpack.c.l.b16 %v762_v53 }
 0x170   :  { %v1369_v58 = vpop.f32.mrf.mxu0  ;;  %v2070_v25 = vpop.f32.mrf.mxu3  ;;  %v1102_v57 = vunpack.c.l.b16 %v826_v55  ;;  %v1103_v12 = vunpack.c.l.b16 %v827_v56 }
 0x171   :  { %v2352_v27 = vpack.c.bf16 %v2224_v19, %v2224_v19  ;;  %v1716_v31 = vmax.f32 %v1527_v22, 0.0  ;;  %v2071_v33 = vadd.f32 %v4173_v62, %v2070_v25  ;;  %v2675_v50 = vmul.f32 %v4190_v28, %v2544_v26 }
 0x172   :  { %v1370_v59 = vadd.f32 %v4251_v21, %v1369_v58  ;;  %v252_v25 = vadd.f32 %v4004_v41, %v4143_v37  ;;  %v253_v26 = vadd.f32 %v4006_v42, %v4143_v37 }
 0x173   :  { %v2482_v2 = vunpack.c.l.bf16 %v2352_v27  ;;  %v2287_v3 = vmax.f32 %v2071_v33, 0.0  ;;  %1408 = vmatmul.bf16.gmra.mxu0 %v1144_v23  ;;  %1568 = vmatmul.bf16.gmra.mxu2 %v1176_v4  ;;  %v1800_v24 = vpack.c.bf16 %v1716_v31, %v1715_v8 }
 0x174   :  { %v1915_v45 = vpop.f32.mrf.mxu1  ;;  %v1653_v36 = vmax.f32 %v1370_v59, 0.0  ;;  %v700_v59 = vmax.f32 %v316_v20, 0.0 }
 0x175   :  { %v2415_v46 = vpack.c.bf16 %v2287_v3, %v2287_v3  ;;  %v1916_v47 = vadd.f32 %v4173_v62, %v1915_v45  ;;  %2112 = vmatmul.bf16.gmra.mxu3 %v1800_v24  ;;  %v2613_v51 = vmul.f32 %v4190_v28, %v2482_v2  ;;  %v1145_v24 = vpack.c.b16 %v1039_v11, %v1038_v10 }
 0x176   :  { %v1529_v52 = vpop.f32.mrf.mxu2  ;;  %v1177_v45 = vpack.c.b16 %v1103_v12, %v1102_v57 }
 0x177   :  { %v2225_v63 = vmax.f32 %v1916_v47, 0.0  ;;  %2871 = vadd.xlane.f32.xlu2 %v2675_v50  ;;  %2747 = vadd.xlane.f32.xlu0 %v2613_v51  ;;  %v2545_v0 = vunpack.c.l.bf16 %v2415_v46  ;;  %v1530_v4 = vadd.f32 %v4251_v21, %v1529_v52  ;;  %v636_v51 = vmax.f32 %v252_v25, 0.0 }
 0x178   :  { %v1371_v1 = vpop.f32.mrf.mxu0  ;;  %v2073_v5 = vpop.f32.mrf.mxu3  ;;  %v637_v52 = vmax.f32 %v253_v26, 0.0 }
 0x179   :  { %v2353_v6 = vpack.c.bf16 %v2225_v63, %v2225_v63  ;;  %v1372_v7 = vadd.f32 %v4251_v21, %v1371_v1  ;;  %v2074_v9 = vadd.f32 %v4173_v62, %v2073_v5  ;;  %v2676_v58 = vmul.f32 %v4190_v28, %v2545_v0 }
 0x17a   :  { %v1717_v46 = vmax.f32 %v1530_v4, 0.0  ;;  %v701_v63 = vmax.f32 %v317_v43, 0.0  ;;  %v119_v4 = vunpack.i.h.s16 %v4124_v35 }
 0x17b   :  { %v2483_v19 = vunpack.c.l.bf16 %v2353_v6  ;;  %v1654_v22 = vmax.f32 %v1372_v7, 0.0  ;;  %v2288_v23 = vmax.f32 %v2074_v9, 0.0  ;;  %v764_v7 = vpack.c.bf16 %v636_v51, %v636_v51 }
 0x17c   :  { %v1918_v8 = vpop.f32.mrf.mxu1  ;;  %v765_v9 = vpack.c.bf16 %v637_v52, %v637_v52  ;;  %v254_v52 = vadd.f32 %v4018_v13, %v4143_v37 }
 0x17d   :  { %v2416_v27 = vpack.c.bf16 %v2288_v23, %v2288_v23  ;;  %v1919_v31 = vadd.f32 %v4173_v62, %v1918_v8  ;;  %v2614_v33 = vmul.f32 %v4190_v28, %v2483_v19  ;;  %v1769_v34 = vpack.c.bf16 %v1654_v22, %v1653_v36 }
 0x17e   :  { %v1531_v40 = vpop.f32.mrf.mxu2  ;;  %v828_v19 = vpack.c.bf16 %v700_v59, %v700_v59  ;;  %v829_v22 = vpack.c.bf16 %v701_v63, %v701_v63  ;;  %v115_v23 = vunpack.i.h.s16 %v4121_v32  ;;  %v1041_v20 = vunpack.c.l.b16 %v765_v9 }
 0x17f   :  { %v2226_v2 = vmax.f32 %v1919_v31, 0.0  ;;  %v1532_v3 = vadd.f32 %v4251_v21, %v1531_v40  ;;  %2749 = vadd.xlane.f32.xlu1 %v2614_v33  ;;  %2873 = vadd.xlane.f32.xlu0 %v2676_v58  ;;  %v2546_v53 = vunpack.c.l.bf16 %v2416_v27  ;;  %v1040_v31 = vunpack.c.l.b16 %v764_v7 }
 0x180   :  { %1957 = vmatmul.bf16.gmra.mxu1 %v1769_v34  ;;  %v1374_v47 = vpop.f32.mrf.mxu0  ;;  %v2075_v50 = vpop.f32.mrf.mxu3  ;;  %v1104_v43 = vunpack.c.l.b16 %v828_v19  ;;  %v139_v32 = vpack.i.b16 %v115_v23, %v115_v23 }
 0x181   :  { %v2354_v54 = vpack.c.bf16 %v2226_v2, %v2226_v2  ;;  %v1718_v55 = vmax.f32 %v1532_v3, 0.0  ;;  %v2076_v56 = vadd.f32 %v4173_v62, %v2075_v50  ;;  %v2677_v12 = vmul.f32 %v4190_v28, %v2546_v53 }
 0x182   :  { %v1375_v8 = vadd.f32 %v4251_v21, %v1374_v47  ;;  %v1105_v2 = vunpack.c.l.b16 %v829_v22  ;;  %v143_v3 = vpack.i.b16 %v119_v4, %v119_v4  ;;  %v255_v53 = vadd.f32 %v4020_v14, %v4143_v37 }
 0x183   :  { %v2484_v0 = vunpack.c.l.bf16 %v2354_v54  ;;  %v2289_v1 = vmax.f32 %v2076_v56, 0.0  ;;  %1413 = vmatmul.bf16.gmra.mxu0 %v1145_v24  ;;  %1573 = vmatmul.bf16.gmra.mxu2 %v1177_v45  ;;  %v1801_v5 = vpack.c.bf16 %v1718_v55, %v1717_v46  ;;  %v1146_v37 = vpack.c.b16 %v1041_v20, %v1040_v31 }
 0x184   :  { %v1920_v6 = vpop.f32.mrf.mxu1  ;;  %v1655_v35 = vmax.f32 %v1375_v8, 0.0  ;;  %v639_v19 = vmax.f32 %v255_v53, 0.0 }
 0x185   :  { %v2417_v10 = vpack.c.bf16 %v2289_v1, %v2289_v1  ;;  %v1921_v11 = vadd.f32 %v4173_v62, %v1920_v6  ;;  %2117 = vmatmul.bf16.gmra.mxu3 %v1801_v5  ;;  %v2615_v57 = vmul.f32 %v4190_v28, %v2484_v0  ;;  %v318_v0 = vadd.f32 %v4018_v13, %v4145_v44 }
 0x186   :  { %v1534_v36 = vpop.f32.mrf.mxu2  ;;  %v319_v1 = vadd.f32 %v4020_v14, %v4145_v44  ;;  %v147_v5 = vperm.slane %v139_v32, 0  ;;  %v151_v6 = vperm.slane %v143_v3, 0  ;;  %v767_v20 = vpack.c.bf16 %v639_v19, %v639_v19 }
 0x187   :  { %v2227_v58 = vmax.f32 %v1921_v11, 0.0  ;;  %2751 = vadd.xlane.f32.xlu2 %v2615_v57  ;;  %2875 = vadd.xlane.f32.xlu1 %v2677_v12  ;;  %v2547_v25 = vunpack.c.l.bf16 %v2417_v10  ;;  %v1535_v47 = vadd.f32 %v4251_v21, %v1534_v36  ;;  %v1178_v10 = vpack.c.b16 %v1105_v2, %v1104_v43 }
 0x188   :  { %v1376_v26 = vpop.f32.mrf.mxu0  ;;  %v2078_v27 = vpop.f32.mrf.mxu3  ;;  %v638_v36 = vmax.f32 %v254_v52, 0.0  ;;  %v702_v8 = vmax.f32 %v318_v0, 0.0  ;;  %v1043_v0 = vunpack.c.l.b16 %v767_v20 }
 0x189   :  { %v2355_v33 = vpack.c.bf16 %v2227_v58, %v2227_v58  ;;  %v1377_v34 = vadd.f32 %v4251_v21, %v1376_v26  ;;  %v2079_v40 = vadd.f32 %v4173_v62, %v2078_v27  ;;  %v2678_v51 = vmul.f32 %v4190_v28, %v2547_v25 }
 0x18a   :  { %v1719_v11 = vmax.f32 %v1535_v47, 0.0  ;;  %v703_v58 = vmax.f32 %v319_v1, 0.0  ;;  %v165_v25 = vpack.i.b16 %v147_v5, %v147_v5  ;;  %v181_v26 = vpack.i.b16 %v151_v6, %v151_v6 }
 0x18b   :  { %v2485_v24 = vunpack.c.l.bf16 %v2355_v33  ;;  %v1656_v45 = vmax.f32 %v1377_v34, 0.0  ;;  %v2290_v46 = vmax.f32 %v2079_v40, 0.0  ;;  %v766_v40 = vpack.c.bf16 %v638_v36, %v638_v36 }
 0x18c   :  { %v1923_v50 = vpop.f32.mrf.mxu1  ;;  %v183_v47 = vperm.slane %v181_v26, 0 }
 0x18d   :  { %v2418_v54 = vpack.c.bf16 %v2290_v46, %v2290_v46  ;;  %v1924_v55 = vadd.f32 %v4173_v62, %v1923_v50  ;;  %v2616_v56 = vmul.f32 %v4190_v28, %v2485_v24  ;;  %v1770_v59 = vpack.c.bf16 %v1656_v45, %v1655_v35 }
 0x18e   :  { %v1536_v63 = vpop.f32.mrf.mxu2  ;;  %v830_v24 = vpack.c.bf16 %v702_v8, %v702_v8  ;;  %v831_v45 = vpack.c.bf16 %v703_v58, %v703_v58  ;;  %v167_v46 = vperm.slane %v165_v25, 0 }
 0x18f   :  { %v2228_v7 = vmax.f32 %v1924_v55, 0.0  ;;  %v1537_v9 = vadd.f32 %v4251_v21, %v1536_v63  ;;  %2877 = vadd.xlane.f32.xlu2 %v2678_v51  ;;  %2753 = vadd.xlane.f32.xlu0 %v2616_v56  ;;  %v2548_v22 = vunpack.c.l.bf16 %v2418_v54  ;;  %v1042_v55 = vunpack.c.l.b16 %v766_v40 }
 0x190   :  { %1962 = vmatmul.bf16.gmra.mxu1 %v1770_v59  ;;  %v1379_v57 = vpop.f32.mrf.mxu0  ;;  %v2080_v12 = vpop.f32.mrf.mxu3  ;;  %v1106_v1 = vunpack.c.l.b16 %v830_v24  ;;  %v1107_v5 = vunpack.c.l.b16 %v831_v45  ;;  %v4303_v6 = vunpack.c.l.bf16 %v167_v46 }
 0x191   :  { %v2356_v23 = vpack.c.bf16 %v2228_v7, %v2228_v7  ;;  %v1720_v4 = vmax.f32 %v1537_v9, 0.0  ;;  %v2081_v44 = vadd.f32 %v4173_v62, %v2080_v12  ;;  %v2679_v3 = vmul.f32 %v4190_v28, %v2548_v22 }
 0x192   :  { %v1380_v50 = vadd.f32 %v4251_v21, %v1379_v57  ;;  %v4305_v7 = vunpack.c.l.bf16 %v183_v47  ;;  %v256_v8 = vadd.f32 %v3928_v15, %v4303_v6  ;;  %v257_v58 = vadd.f32 %v3930_v16, %v4303_v6 }
 0x193   :  { %v2486_v27 = vunpack.c.l.bf16 %v2356_v23  ;;  %v2291_v33 = vmax.f32 %v2081_v44, 0.0  ;;  %1418 = vmatmul.bf16.gmra.mxu0 %v1146_v37  ;;  %1578 = vmatmul.bf16.gmra.mxu2 %v1178_v10  ;;  %v1802_v31 = vpack.c.bf16 %v1720_v4, %v1719_v11 }
 0x194   :  { %v1925_v34 = vpop.f32.mrf.mxu1  ;;  %v1657_v9 = vmax.f32 %v1380_v50, 0.0  ;;  %v320_v25 = vadd.f32 %v3928_v15, %v4305_v7  ;;  %v321_v26 = vadd.f32 %v3930_v16, %v4305_v7  ;;  %v640_v15 = vmax.f32 %v256_v8, 0.0 }
 0x195   :  { %v2419_v43 = vpack.c.bf16 %v2291_v33, %v2291_v33  ;;  %v1926_v2 = vadd.f32 %v4173_v62, %v1925_v34  ;;  %2122 = vmatmul.bf16.gmra.mxu3 %v1802_v31  ;;  %v2617_v32 = vmul.f32 %v4190_v28, %v2486_v27  ;;  %v1147_v31 = vpack.c.b16 %v1043_v0, %v1042_v55 }
 0x196   :  { %v1539_v35 = vpop.f32.mrf.mxu2  ;;  %v1179_v34 = vpack.c.b16 %v1107_v5, %v1106_v1  ;;  %v641_v24 = vmax.f32 %v257_v58, 0.0  ;;  %v704_v45 = vmax.f32 %v320_v25, 0.0  ;;  %v705_v16 = vmax.f32 %v321_v26, 0.0 }
 0x197   :  { %v2229_v51 = vmax.f32 %v1926_v2, 0.0  ;;  %2755 = vadd.xlane.f32.xlu1 %v2617_v32  ;;  %2879 = vadd.xlane.f32.xlu0 %v2679_v3  ;;  %v2549_v52 = vunpack.c.l.bf16 %v2419_v43  ;;  %v1540_v57 = vadd.f32 %v4251_v21, %v1539_v35 }
 0x198   :  { %v1381_v53 = vpop.f32.mrf.mxu0  ;;  %v2083_v54 = vpop.f32.mrf.mxu3  ;;  %v832_v0 = vpack.c.bf16 %v704_v45, %v704_v45  ;;  %v833_v1 = vpack.c.bf16 %v705_v16, %v705_v16 }
 0x199   :  { %v2357_v56 = vpack.c.bf16 %v2229_v51, %v2229_v51  ;;  %v1382_v59 = vadd.f32 %v4251_v21, %v1381_v53  ;;  %v2084_v63 = vadd.f32 %v4173_v62, %v2083_v54  ;;  %v2680_v36 = vmul.f32 %v4190_v28, %v2549_v52 }
 0x19a   :  { %v1721_v40 = vmax.f32 %v1540_v57, 0.0 }
 0x19b   :  { %v2487_v37 = vunpack.c.l.bf16 %v2357_v56  ;;  %v1658_v10 = vmax.f32 %v1382_v59, 0.0  ;;  %v2292_v11 = vmax.f32 %v2084_v63, 0.0  ;;  %v768_v59 = vpack.c.bf16 %v640_v15, %v640_v15 }
 0x19c   :  { %v1928_v12 = vpop.f32.mrf.mxu1  ;;  %v769_v63 = vpack.c.bf16 %v641_v24, %v641_v24 }
 0x19d   :  { %v2420_v19 = vpack.c.bf16 %v2292_v11, %v2292_v11  ;;  %v1929_v22 = vadd.f32 %v4173_v62, %v1928_v12  ;;  %v2618_v23 = vmul.f32 %v4190_v28, %v2487_v37  ;;  %v1771_v4 = vpack.c.bf16 %v1658_v10, %v1657_v9 }
 0x19e   :  { %v1541_v44 = vpop.f32.mrf.mxu2 }
 0x19f   :  { %v2230_v27 = vmax.f32 %v1929_v22, 0.0  ;;  %v1542_v33 = vadd.f32 %v4251_v21, %v1541_v44  ;;  %2757 = vadd.xlane.f32.xlu2 %v2618_v23  ;;  %2881 = vadd.xlane.f32.xlu1 %v2680_v36  ;;  %v2550_v2 = vunpack.c.l.bf16 %v2420_v19  ;;  %v1044_v19 = vunpack.c.l.b16 %v768_v59 }
 0x1a0   :  { %1967 = vmatmul.bf16.gmra.mxu1 %v1771_v4  ;;  %v1384_v20 = vpop.f32.mrf.mxu0  ;;  %v2085_v43 = vpop.f32.mrf.mxu3  ;;  %v1045_v22 = vunpack.c.l.b16 %v769_v63  ;;  %v1108_v23 = vunpack.c.l.b16 %v832_v0  ;;  %v1109_v4 = vunpack.c.l.b16 %v833_v1 }
 0x1a1   :  { %v2358_v32 = vpack.c.bf16 %v2230_v27, %v2230_v27  ;;  %v1722_v3 = vmax.f32 %v1542_v33, 0.0  ;;  %v2086_v35 = vadd.f32 %v4173_v62, %v2085_v43  ;;  %v2681_v54 = vmul.f32 %v4190_v28, %v2550_v2 }
 0x1a2   :  { %v1385_v5 = vadd.f32 %v4251_v21, %v1384_v20  ;;  %v1148_v45 = vpack.c.b16 %v1045_v22, %v1044_v19  ;;  %v1180_v16 = vpack.c.b16 %v1109_v4, %v1108_v23  ;;  %v260_v22 = vadd.f32 %v3956_v60, %v4303_v6 }
 0x1a3   :  { %v2488_v46 = vunpack.c.l.bf16 %v2358_v32  ;;  %v2293_v47 = vmax.f32 %v2086_v35, 0.0  ;;  %1423 = vmatmul.bf16.gmra.mxu0 %v1147_v31  ;;  %1583 = vmatmul.bf16.gmra.mxu2 %v1179_v34  ;;  %v1803_v50 = vpack.c.bf16 %v1722_v3, %v1721_v40  ;;  %v258_v31 = vadd.f32 %v3944_v38, %v4303_v6 }
 0x1a4   :  { %v1930_v51 = vpop.f32.mrf.mxu1  ;;  %v1659_v44 = vmax.f32 %v1385_v5, 0.0  ;;  %v259_v34 = vadd.f32 %v3946_v39, %v4303_v6  ;;  %v322_v3 = vadd.f32 %v3944_v38, %v4305_v7  ;;  %v323_v35 = vadd.f32 %v3946_v39, %v4305_v7 }
 0x1a5   :  { %v2421_v52 = vpack.c.bf16 %v2293_v47, %v2293_v47  ;;  %v1931_v53 = vadd.f32 %v4173_v62, %v1930_v51  ;;  %2127 = vmatmul.bf16.gmra.mxu3 %v1803_v50  ;;  %v2619_v55 = vmul.f32 %v4190_v28, %v2488_v46  ;;  %v642_v51 = vmax.f32 %v258_v31, 0.0 }
 0x1a6   :  { %v1544_v56 = vpop.f32.mrf.mxu2  ;;  %v707_v39 = vmax.f32 %v323_v35, 0.0  ;;  %v3248_v4 = vlaneseq  ;;  %v324_v35 = vadd.f32 %v3956_v60, %v4305_v7 }
 0x1a7   :  { %v2231_v9 = vmax.f32 %v1931_v53, 0.0  ;;  %2883 = vadd.xlane.f32.xlu2 %v2681_v54  ;;  %2759 = vadd.xlane.f32.xlu0 %v2619_v55  ;;  %v2551_v37 = vunpack.c.l.bf16 %v2421_v52  ;;  %v1545_v26 = vadd.f32 %v4251_v21, %v1544_v56  ;;  %v643_v52 = vmax.f32 %v259_v34, 0.0 }
 0x1a8   :  { %v1386_v10 = vpop.f32.mrf.mxu0  ;;  %v2088_v11 = vpop.f32.mrf.mxu3  ;;  %v706_v56 = vmax.f32 %v322_v3, 0.0  ;;  %v770_v5 = vpack.c.bf16 %v642_v51, %v642_v51  ;;  %v835_v19 = vpack.c.bf16 %v707_v39, %v707_v39  ;;  %v644_v3 = vmax.f32 %v260_v22, 0.0 }
 0x1a9   :  { %v2359_v57 = vpack.c.bf16 %v2231_v9, %v2231_v9  ;;  %v1387_v12 = vadd.f32 %v4251_v21, %v1386_v10  ;;  %v2089_v36 = vadd.f32 %v4173_v62, %v2088_v11  ;;  %v2682_v33 = vmul.f32 %v4190_v28, %v2551_v37 }
 0x1aa   :  { %v1723_v46 = vmax.f32 %v1545_v26, 0.0  ;;  %v771_v9 = vpack.c.bf16 %v643_v52, %v643_v52  ;;  %v1046_v26 = vunpack.c.l.b16 %v770_v5  ;;  %v325_v52 = vadd.f32 %v3958_v61, %v4305_v7 }
 0x1ab   :  { %v2489_v8 = vunpack.c.l.bf16 %v2359_v57  ;;  %v1660_v58 = vmax.f32 %v1387_v12, 0.0  ;;  %v2294_v25 = vmax.f32 %v2089_v36, 0.0  ;;  %v834_v36 = vpack.c.bf16 %v706_v56, %v706_v56 }
 0x1ac   :  { %v1933_v27 = vpop.f32.mrf.mxu1 }
 0x1ad   :  { %v2422_v40 = vpack.c.bf16 %v2294_v25, %v2294_v25  ;;  %v1934_v20 = vadd.f32 %v4173_v62, %v1933_v27  ;;  %v2620_v43 = vmul.f32 %v4190_v28, %v2489_v8  ;;  %v1772_v2 = vpack.c.bf16 %v1660_v58, %v1659_v44 }
 0x1ae   :  { %v1546_v32 = vpop.f32.mrf.mxu2  ;;  %v261_v44 = vadd.f32 %v3958_v61, %v4303_v6  ;;  %v4352_v25 = vstv %s5189_s7  ;;  %v1047_v27 = vunpack.c.l.b16 %v771_v9 }
 0x1af   :  { %v2232_v15 = vmax.f32 %v1934_v20, 0.0  ;;  %v1547_v24 = vadd.f32 %v4251_v21, %v1546_v32  ;;  %2761 = vadd.xlane.f32.xlu1 %v2620_v43  ;;  %2885 = vadd.xlane.f32.xlu0 %v2682_v33  ;;  %v2552_v53 = vunpack.c.l.bf16 %v2422_v40  ;;  %v4358_v40 = vld [vmem:[%s5187_s5] ss:$0 sm:$0xff]  ;;  %v1111_v32 = vunpack.c.l.b16 %v835_v19 }
 0x1b0   :  { %1972 = vmatmul.bf16.gmra.mxu1 %v1772_v2  ;;  %v1389_v47 = vpop.f32.mrf.mxu0  ;;  %v2090_v50 = vpop.f32.mrf.mxu3  ;;  %v1110_v2 = vunpack.c.l.b16 %v834_v36  ;;  %v1149_v51 = vpack.c.b16 %v1047_v27, %v1046_v26  ;;  %v709_v19 = vmax.f32 %v325_v52, 0.0 }
 0x1b1   :  { %v2360_v54 = vpack.c.bf16 %v2232_v15, %v2232_v15  ;;  %v1724_v55 = vmax.f32 %v1547_v24, 0.0  ;;  %v2091_v38 = vadd.f32 %v4173_v62, %v2090_v50  ;;  %v2683_v57 = vmul.f32 %v4190_v28, %v2552_v53 }
 0x1b2   :  { %v1181_v5 = vpack.c.b16 %v1111_v32, %v1110_v2  ;;  %v263_v2 = vadd.f32 %v3970_v30, %v4303_v6 }
 0x1b3   :  { %v2490_v59 = vunpack.c.l.bf16 %v2360_v54  ;;  %v2295_v63 = vmax.f32 %v2091_v38, 0.0  ;;  %1428 = vmatmul.bf16.gmra.mxu0 %v1148_v45  ;;  %1588 = vmatmul.bf16.gmra.mxu2 %v1180_v16  ;;  %v1804_v0 = vpack.c.bf16 %v1724_v55, %v1723_v46  ;;  %v645_v16 = vmax.f32 %v261_v44, 0.0 }
 0x1b4   :  { %v1935_v1 = vpop.f32.mrf.mxu1 }
 0x1b5   :  { %v2423_v37 = vpack.c.bf16 %v2295_v63, %v2295_v63  ;;  %v1936_v10 = vadd.f32 %v4173_v62, %v1935_v1  ;;  %2132 = vmatmul.bf16.gmra.mxu3 %v1804_v0  ;;  %v2621_v11 = vmul.f32 %v4190_v28, %v2490_v59  ;;  %v1390_v62 = vadd.f32 %v4251_v21, %v1389_v47 }
 0x1b6   :  { %v1549_v12 = vpop.f32.mrf.mxu2  ;;  %v4363_v47 = vand.u32 127, %v3248_v4  ;;  %v772_v59 = vpack.c.bf16 %v644_v3, %v644_v3  ;;  %v708_v63 = vmax.f32 %v324_v35, 0.0  ;;  %v773_v61 = vpack.c.bf16 %v645_v16, %v645_v16 }
 0x1b7   :  { %v2233_v23 = vmax.f32 %v1936_v10, 0.0  ;;  %2763 = vadd.xlane.f32.xlu2 %v2621_v11  ;;  %2887 = vadd.xlane.f32.xlu1 %v2683_v57  ;;  %v2553_v33 = vunpack.c.l.bf16 %v2423_v37  ;;  %v1661_v46 = vmax.f32 %v1390_v62, 0.0  ;;  %v1550_v60 = vadd.f32 %v4251_v21, %v1549_v12 }
 0x1b8   :  { %v1391_v8 = vpop.f32.mrf.mxu0  ;;  %v2093_v58 = vpop.f32.mrf.mxu3  ;;  %v1048_v4 = vunpack.c.l.b16 %v772_v59  ;;  %v836_v44 = vpack.c.bf16 %v708_v63, %v708_v63  ;;  %v262_v62 = vadd.f32 %v3968_v29, %v4303_v6  ;;  %v1049_v27 = vunpack.c.l.b16 %v773_v61 }
 0x1b9   :  { %v2361_v31 = vpack.c.bf16 %v2233_v23, %v2233_v23  ;;  %v1392_v34 = vadd.f32 %v4251_v21, %v1391_v8  ;;  %v2094_v20 = vadd.f32 %v4358_v40, %v2093_v58  ;;  %v2684_v55 = vmul.f32 %v4190_v28, %v2553_v33 }
 0x1ba   :  { %v2736_v43 = vpop.xlane.xlu0 %2735  ;;  %v1725_v22 = vmax.f32 %v1550_v60, 0.0  ;;  %v646_v16 = vmax.f32 %v262_v62, 0.0 }
 0x1bb   :  { %v2491_v15 = vunpack.c.l.bf16 %v2361_v31  ;;  %v1662_v24 = vmax.f32 %v1392_v34, 0.0  ;;  %v2296_v45 = vmax.f32 %v2094_v20, 0.0  ;;  %v2992_v37 = vadd.f32 %v4352_v25, %v2736_v43  ;;  %v4384_v20 = vld [vmem:[%s5188_s6] ss:$0 sm:$0xff] }
 0x1bc   :  { %v1938_v50 = vpop.f32.mrf.mxu1 }
 0x1bd   :  { %v2424_v53 = vpack.c.bf16 %v2296_v45, %v2296_v45  ;;  %v1939_v54 = vadd.f32 %v4358_v40, %v1938_v50  ;;  %v2622_v38 = vmul.f32 %v4190_v28, %v2491_v15  ;;  %v1773_v39 = vpack.c.bf16 %v1662_v24, %v1661_v46 }
 0x1be   :  { %v1551_v56 = vpop.f32.mrf.mxu2  ;;  %v4374_v28 = vadd.s32 4294967288, %v4363_v47  ;;  %v3250_v33 = vperm.slane %v2992_v37, %v4363_v47  ;;  %v837_v45 = vpack.c.bf16 %v709_v19, %v709_v19  ;;  %v326_v46 = vadd.f32 %v3968_v29, %v4305_v7 }
 0x1bf   :  { %v2234_v0 = vmax.f32 %v1939_v54, 0.0  ;;  %v1552_v1 = vadd.f32 %v4251_v21, %v1551_v56  ;;  %2889 = vadd.xlane.f32.xlu2 %v2684_v55  ;;  %2765 = vadd.xlane.f32.xlu0 %v2622_v38  ;;  %v2554_v9 = vunpack.c.l.bf16 %v2424_v53  ;;  %v327_v50 = vadd.f32 %v3970_v30, %v4305_v7 }
 0x1c0   :  { %1977 = vmatmul.bf16.gmra.mxu1 %v1773_v39  ;;  %v1394_v10 = vpop.f32.mrf.mxu0  ;;  %v2095_v11 = vpop.f32.mrf.mxu3  ;;  %v4401_v56 = vadd.s32 4294967280, %v4363_v47  ;;  %v1150_v39 = vpack.c.b16 %v1049_v27, %v1048_v4  ;;  %v647_v29 = vmax.f32 %v263_v2, 0.0  ;;  %v710_v61 = vmax.f32 %v326_v46, 0.0 }
 0x1c1   :  { %v2362_v57 = vpack.c.bf16 %v2234_v0, %v2234_v0  ;;  %v1726_v12 = vmax.f32 %v1552_v1, 0.0  ;;  %v2096_v36 = vadd.f32 %v4358_v40, %v2095_v11  ;;  %v2685_v43 = vmul.f32 %v4384_v20, %v2554_v9 }
 0x1c2   :  { %v2738_v23 = vpop.xlane.xlu0 %2737  ;;  %v1112_v0 = vunpack.c.l.b16 %v836_v44  ;;  %v1113_v1 = vunpack.c.l.b16 %v837_v45  ;;  %v711_v9 = vmax.f32 %v327_v50, 0.0  ;;  %v4413_v27 = vadd.s32 4294967272, %v4363_v47 }
 0x1c3   :  { %v2492_v8 = vunpack.c.l.bf16 %v2362_v57  ;;  %v2297_v58 = vmax.f32 %v2096_v36, 0.0  ;;  %v2993_v26 = vadd.f32 %v4352_v25, %v2738_v23  ;;  %1433 = vmatmul.bf16.gmra.mxu0 %v1149_v51  ;;  %1593 = vmatmul.bf16.gmra.mxu2 %v1181_v5  ;;  %v1805_v34 = vpack.c.bf16 %v1726_v12, %v1725_v22 }
 0x1c4   :  { %v1940_v31 = vpop.f32.mrf.mxu1  ;;  %v1395_v51 = vadd.f32 %v4251_v21, %v1394_v10  ;;  %v4405_v5 = vpack.c.bf16 %v646_v16, %v646_v16  ;;  %v775_v22 = vpack.c.bf16 %v647_v29, %v647_v29 }
 0x1c5   :  { %v2425_v32 = vpack.c.bf16 %v2297_v58, %v2297_v58  ;;  %v3252_v3 = vperm.slane %v2993_v26, %v4374_v28  ;;  %v1941_v35 = vadd.f32 %v4358_v40, %v1940_v31  ;;  %v2623_v15 = vmul.f32 %v4384_v20, %v2492_v8  ;;  %2137 = vmatmul.bf16.gmra.mxu3 %v1805_v34 }
 0x1c6   :  { %v1554_v24 = vpop.f32.mrf.mxu2  ;;  %v1663_v37 = vmax.f32 %v1395_v51, 0.0  ;;  %v1182_v26 = vpack.c.b16 %v1113_v1, %v1112_v0  ;;  %v1051_v46 = vunpack.c.l.b16 %v775_v22 }
 0x1c7   :  { %v4398_v52 = vsel %vm3253_vm4, %v3252_v3, %v3250_v33  ;;  %v2235_v53 = vmax.f32 %v1941_v35, 0.0  ;;  %v2864_v54 = vpop.xlane.xlu1 %2863  ;;  %2891 = vadd.xlane.f32.xlu0 %v2685_v43  ;;  %2767 = vadd.xlane.f32.xlu1 %v2623_v15  ;;  %v2555_v55 = vunpack.c.l.bf16 %v2425_v32  ;;  %v1555_v12 = vadd.f32 %v4251_v21, %v1554_v24 }
 0x1c8   :  { %v1396_v38 = vpop.f32.mrf.mxu0  ;;  %v2098_v60 = vpop.f32.mrf.mxu3  ;;  %v3056_v8 = vadd.f32 %v4352_v25, %v2864_v54  ;;  %v838_v33 = vpack.c.bf16 %v710_v61, %v710_v61  ;;  %v1050_v32 = vunpack.c.l.b16 %v4405_v5  ;;  %v839_v3 = vpack.c.bf16 %v711_v9, %v711_v9 }
 0x1c9   :  { %v2363_v59 = vpack.c.bf16 %v2235_v53, %v2235_v53  ;;  %v1397_v30 = vadd.f32 %v4251_v21, %v1396_v38  ;;  %v2099_v63 = vadd.f32 %v4358_v40, %v2098_v60  ;;  %v2686_v19 = vmul.f32 %v4384_v20, %v2555_v55 }
 0x1ca   :  { %v1727_v35 = vmax.f32 %v1555_v12, 0.0  ;;  %v3404_v55 = vperm.slane %v3056_v8, %v4363_v47  ;;  %v1114_v29 = vunpack.c.l.b16 %v838_v33  ;;  %v1115_v0 = vunpack.c.l.b16 %v839_v3 }
 0x1cb   :  { %v2493_v10 = vunpack.c.l.bf16 %v2363_v59  ;;  %v1664_v11 = vmax.f32 %v1397_v30, 0.0  ;;  %v2298_v57 = vmax.f32 %v2099_v63, 0.0  ;;  %v264_v9 = vadd.f32 %v3980_v48, %v4303_v6 }
 0x1cc   :  { %v1943_v36 = vpop.f32.mrf.mxu1 }
 0x1cd   :  { %v2426_v23 = vpack.c.bf16 %v2298_v57, %v2298_v57  ;;  %v1944_v4 = vadd.f32 %v4358_v40, %v1943_v36  ;;  %v1774_v44 = vpack.c.bf16 %v1664_v11, %v1663_v37  ;;  %v2624_v62 = vmul.f32 %v4384_v20, %v2493_v10 }
 0x1ce   :  { %v1556_v58 = vpop.f32.mrf.mxu2  ;;  %v2866_v34 = vpop.xlane.xlu2 %2865  ;;  %v265_v37 = vadd.f32 %v3982_v49, %v4303_v6 }
 0x1cf   :  { %v2236_v31 = vmax.f32 %v1944_v4, 0.0  ;;  %v1557_v43 = vadd.f32 %v4251_v21, %v1556_v58  ;;  %v2740_v2 = vpop.xlane.xlu1 %2739  ;;  %2769 = vadd.xlane.f32.xlu2 %v2624_v62  ;;  %2893 = vadd.xlane.f32.xlu1 %v2686_v19  ;;  %v3057_v15 = vadd.f32 %v4352_v25, %v2866_v34  ;;  %v2556_v50 = vunpack.c.l.bf16 %v2426_v23 }
 0x1d0   :  { %v2994_v24 = vadd.f32 %v4352_v25, %v2740_v2  ;;  %1982 = vmatmul.bf16.gmra.mxu1 %v1774_v44  ;;  %v1399_v45 = vpop.f32.mrf.mxu0  ;;  %v2100_v16 = vpop.f32.mrf.mxu3  ;;  %v1151_v4 = vpack.c.b16 %v1051_v46, %v1050_v32  ;;  %v1183_v44 = vpack.c.b16 %v1115_v0, %v1114_v29  ;;  %v328_v62 = vadd.f32 %v3980_v48, %v4305_v7 }
 0x1d1   :  { %v2364_v51 = vpack.c.bf16 %v2236_v31, %v2236_v31  ;;  %v1728_v53 = vmax.f32 %v1557_v43, 0.0  ;;  %v2101_v54 = vadd.f32 %v4358_v40, %v2100_v16  ;;  %v3405_v38 = vperm.slane %v3057_v15, %v4374_v28 }
 0x1d2   :  { %v3256_v60 = vperm.slane %v2994_v24, %v4401_v56  ;;  %v2687_v57 = vmul.f32 %v4384_v20, %v2556_v50  ;;  %v1400_v12 = vadd.f32 %v4251_v21, %v1399_v45  ;;  %v648_v31 = vmax.f32 %v264_v9, 0.0 }
 0x1d3   :  { %v2494_v59 = vunpack.c.l.bf16 %v2364_v51  ;;  %v2299_v30 = vmax.f32 %v2101_v54, 0.0  ;;  %1438 = vmatmul.bf16.gmra.mxu0 %v1150_v39  ;;  %1598 = vmatmul.bf16.gmra.mxu2 %v1182_v26  ;;  %v1806_v63 = vpack.c.bf16 %v1728_v53, %v1727_v35  ;;  %v3406_v1 = vsel %vm3253_vm4, %v3405_v38, %v3404_v55 }
 0x1d4   :  { %v3258_v5 = vsel %vm3257_vm5, %v3256_v60, %v4398_v52  ;;  %v1945_v61 = vpop.f32.mrf.mxu1  ;;  %v4435_v52 = vadd.s32 4294967264, %v4363_v47  ;;  %v649_v34 = vmax.f32 %v265_v37, 0.0  ;;  %v1665_v15 = vmax.f32 %v1400_v12, 0.0 }
 0x1d5   :  { %v2427_v10 = vpack.c.bf16 %v2299_v30, %v2299_v30  ;;  %v1946_v11 = vadd.f32 %v4358_v40, %v1945_v61  ;;  %v2625_v39 = vmul.f32 %v4384_v20, %v2494_v59  ;;  %2142 = vmatmul.bf16.gmra.mxu3 %v1806_v63  ;;  %v329_v45 = vadd.f32 %v3982_v49, %v4305_v7 }
 0x1d6   :  { %v1559_v36 = vpop.f32.mrf.mxu2  ;;  %v4450_v38 = vpack.c.bf16 %v648_v31, %v648_v31  ;;  %v712_v60 = vmax.f32 %v328_v62, 0.0 }
 0x1d7   :  { %v2237_v19 = vmax.f32 %v1946_v11, 0.0  ;;  %v2742_v22 = vpop.xlane.xlu1 %2741  ;;  %v2868_v23 = vpop.xlane.xlu0 %2867  ;;  %2771 = vadd.xlane.f32.xlu0 %v2625_v39  ;;  %2895 = vadd.xlane.f32.xlu2 %v2687_v57  ;;  %v2557_v43 = vunpack.c.l.bf16 %v2427_v10  ;;  %v1560_v63 = vadd.f32 %v4251_v21, %v1559_v36  ;;  %v777_v39 = vpack.c.bf16 %v649_v34, %v649_v34 }
 0x1d8   :  { %v2995_v8 = vadd.f32 %v4352_v25, %v2742_v22  ;;  %v3058_v58 = vadd.f32 %v4352_v25, %v2868_v23  ;;  %v1401_v26 = vpop.f32.mrf.mxu0  ;;  %v2103_v33 = vpop.f32.mrf.mxu3  ;;  %v4461_v36 = vadd.s32 4294967256, %v4363_v47  ;;  %v1052_v22 = vunpack.c.l.b16 %v4450_v38 }
 0x1d9   :  { %v2365_v2 = vpack.c.bf16 %v2237_v19, %v2237_v19  ;;  %v1402_v3 = vadd.f32 %v4251_v21, %v1401_v26  ;;  %v2104_v35 = vadd.f32 %v4358_v40, %v2103_v33  ;;  %v2688_v49 = vmul.f32 %v4384_v20, %v2557_v43 }
 0x1da   :  { %v3260_v32 = vperm.slane %v2995_v8, %v4413_v27  ;;  %v3407_v24 = vperm.slane %v3058_v58, %v4401_v56  ;;  %v2744_v48 = vpop.xlane.xlu2 %2743  ;;  %v1729_v58 = vmax.f32 %v1560_v63, 0.0 }
 0x1db   :  { %v2495_v16 = vunpack.c.l.bf16 %v2365_v2  ;;  %v1666_v46 = vmax.f32 %v1402_v3, 0.0  ;;  %v2300_v50 = vmax.f32 %v2104_v35, 0.0  ;;  %v2996_v51 = vadd.f32 %v4352_v25, %v2744_v48 }
 0x1dc   :  { %v3262_v53 = vsel %vm3261_vm6, %v3260_v32, %v3258_v5  ;;  %v3408_v54 = vsel %vm3257_vm5, %v3407_v24, %v3406_v1  ;;  %v1948_v55 = vpop.f32.mrf.mxu1  ;;  %v713_v5 = vmax.f32 %v329_v45, 0.0  ;;  %v1053_v35 = vunpack.c.l.b16 %v777_v39 }
 0x1dd   :  { %v3264_v29 = vperm.slane %v2996_v51, %v4435_v52  ;;  %v1949_v59 = vadd.f32 %v4358_v40, %v1948_v55  ;;  %v1775_v30 = vpack.c.bf16 %v1666_v46, %v1665_v15  ;;  %v2428_v0 = vpack.c.bf16 %v2300_v50, %v2300_v50 }
 0x1de   :  { %v1561_v61 = vpop.f32.mrf.mxu2  ;;  %v2626_v9 = vmul.f32 %v4384_v20, %v2495_v16  ;;  %v841_v34 = vpack.c.bf16 %v713_v5, %v713_v5  ;;  %v266_v48 = vadd.f32 %v3992_v17, %v4303_v6  ;;  %v267_v45 = vadd.f32 %v3994_v18, %v4303_v6 }
 0x1df   :  { %v3266_v1 = vsel %vm3265_vm7, %v3264_v29, %v3262_v53  ;;  %v2238_v37 = vmax.f32 %v1949_v59, 0.0  ;;  %v1562_v10 = vadd.f32 %v4251_v21, %v1561_v61  ;;  %v2870_v11 = vpop.xlane.xlu1 %2869  ;;  %2897 = vadd.xlane.f32.xlu0 %v2688_v49  ;;  %v840_v21 = vpack.c.bf16 %v712_v60, %v712_v60 }
 0x1e0   :  { %v3059_v57 = vadd.f32 %v4352_v25, %v2870_v11  ;;  %1987 = vmatmul.bf16.gmra.mxu1 %v1775_v30  ;;  %2773 = vadd.xlane.f32.xlu1 %v2626_v9  ;;  %v1404_v12 = vpop.f32.mrf.mxu0  ;;  %v2105_v19 = vpop.f32.mrf.mxu3  ;;  %v2558_v26 = vunpack.c.l.bf16 %v2428_v0  ;;  %v1117_v38 = vunpack.c.l.b16 %v841_v34  ;;  %v4484_v49 = vadd.s32 4294967248, %v4363_v47 }
 0x1e1   :  { %v2366_v23 = vpack.c.bf16 %v2238_v37, %v2238_v37  ;;  %v1730_v62 = vmax.f32 %v1562_v10, 0.0  ;;  %v2106_v8 = vadd.f32 %v4358_v40, %v2105_v19  ;;  %v1116_v55 = vunpack.c.l.b16 %v840_v21 }
 0x1e2   :  { %v3409_v33 = vperm.slane %v3059_v57, %v4413_v27  ;;  %v2746_v31 = vpop.xlane.xlu2 %2745  ;;  %v650_v63 = vmax.f32 %v266_v48, 0.0  ;;  %v651_v0 = vmax.f32 %v267_v45, 0.0  ;;  %v1152_v39 = vpack.c.b16 %v1053_v35, %v1052_v22 }
 0x1e3   :  { %v2496_v43 = vunpack.c.l.bf16 %v2366_v23  ;;  %v2301_v2 = vmax.f32 %v2106_v8, 0.0  ;;  %v2997_v3 = vadd.f32 %v4352_v25, %v2746_v31  ;;  %1443 = vmatmul.bf16.gmra.mxu0 %v1151_v4  ;;  %1603 = vmatmul.bf16.gmra.mxu2 %v1183_v44  ;;  %v1807_v24 = vpack.c.bf16 %v1730_v62, %v1729_v58  ;;  %v4478_v4 = vld [vmem:[%s5185_s3] ss:$0 sm:$0xff] }
 0x1e4   :  { %v3410_v15 = vsel %vm3261_vm6, %v3409_v33, %v3408_v54  ;;  %v1950_v32 = vpop.f32.mrf.mxu1  ;;  %v1405_v44 = vadd.f32 %v4478_v4, %v1404_v12  ;;  %v2689_v54 = vmul.f32 %v4384_v20, %v2558_v26  ;;  %v1184_v57 = vpack.c.b16 %v1117_v38, %v1116_v55 }
 0x1e5   :  { %v2429_v16 = vpack.c.bf16 %v2301_v2, %v2301_v2  ;;  %v3268_v46 = vperm.slane %v2997_v3, %v4461_v36  ;;  %v1951_v50 = vadd.f32 %v4358_v40, %v1950_v32  ;;  %v2627_v51 = vmul.f32 %v4384_v20, %v2496_v43  ;;  %2147 = vmatmul.bf16.gmra.mxu3 %v1807_v24 }
 0x1e6   :  { %v1564_v53 = vpop.f32.mrf.mxu2  ;;  %v1667_v10 = vmax.f32 %v1405_v44, 0.0  ;;  %v330_v12 = vadd.f32 %v3992_v17, %v4305_v7  ;;  %v4492_v26 = vpack.c.bf16 %v650_v63, %v650_v63  ;;  %v4494_v33 = vpack.c.bf16 %v651_v0, %v651_v0 }
 0x1e7   :  { %v3270_v60 = vsel %vm3269_vm8, %v3268_v46, %v3266_v1  ;;  %v2239_v29 = vmax.f32 %v1951_v50, 0.0  ;;  %2775 = vadd.xlane.f32.xlu2 %v2627_v51  ;;  %v2559_v61 = vunpack.c.l.bf16 %v2429_v16  ;;  %v331_v31 = vadd.f32 %v3994_v18, %v4305_v7 }
 0x1e8   :  { %2899 = vadd.xlane.f32.xlu1 %v2689_v54  ;;  %v1406_v59 = vpop.f32.mrf.mxu0  ;;  %v2108_v30 = vpop.f32.mrf.mxu3  ;;  %v1565_v2 = vadd.f32 %v4478_v4, %v1564_v53  ;;  %v714_v16 = vmax.f32 %v330_v12, 0.0  ;;  %v4508_v44 = vadd.s32 4294967240, %v4363_v47  ;;  %v1054_v63 = vunpack.c.l.b16 %v4492_v26 }
 0x1e9   :  { %v2367_v9 = vpack.c.bf16 %v2239_v29, %v2239_v29  ;;  %v1407_v5 = vadd.f32 %v4478_v4, %v1406_v59  ;;  %v2109_v37 = vadd.f32 %v4358_v40, %v2108_v30  ;;  %v2690_v43 = vmul.f32 %v4384_v20, %v2559_v61 }
 0x1ea   :  { %v2872_v11 = vpop.xlane.xlu2 %2871  ;;  %v2748_v1 = vpop.xlane.xlu0 %2747  ;;  %v715_v53 = vmax.f32 %v331_v31, 0.0  ;;  %v268_v12 = vadd.f32 %v4004_v41, %v4303_v6  ;;  %v269_v26 = vadd.f32 %v4006_v42, %v4303_v6 }
 0x1eb   :  { %v2497_v19 = vunpack.c.l.bf16 %v2367_v9  ;;  %v1668_v23 = vmax.f32 %v1407_v5, 0.0  ;;  %v2302_v62 = vmax.f32 %v2109_v37, 0.0  ;;  %v3060_v8 = vadd.f32 %v4352_v25, %v2872_v11 }
 0x1ec   :  { %v2998_v21 = vadd.f32 %v4352_v25, %v2748_v1  ;;  %v1953_v58 = vpop.f32.mrf.mxu1  ;;  %v842_v5 = vpack.c.bf16 %v714_v16, %v714_v16  ;;  %v843_v1 = vpack.c.bf16 %v715_v53, %v715_v53  ;;  %v653_v53 = vmax.f32 %v269_v26, 0.0 }
 0x1ed   :  { %v3411_v22 = vperm.slane %v3060_v8, %v4435_v52  ;;  %v1954_v34 = vadd.f32 %v4358_v40, %v1953_v58  ;;  %v1776_v17 = vpack.c.bf16 %v1668_v23, %v1667_v10  ;;  %v2430_v3 = vpack.c.bf16 %v2302_v62, %v2302_v62 }
 0x1ee   :  { %v3272_v35 = vperm.slane %v2998_v21, %v4484_v49  ;;  %v1566_v32 = vpop.f32.mrf.mxu2  ;;  %v2628_v24 = vmul.f32 %v4384_v20, %v2497_v19 }
 0x1ef   :  { %v3412_v48 = vsel %vm3265_vm7, %v3411_v22, %v3410_v15  ;;  %v2240_v45 = vmax.f32 %v1954_v34, 0.0  ;;  %v1567_v18 = vadd.f32 %v4478_v4, %v1566_v32  ;;  %2901 = vadd.xlane.f32.xlu2 %v2690_v43  ;;  %v1731_v15 = vmax.f32 %v1565_v2, 0.0 }
 0x1f0   :  { %v3274_v46 = vsel %vm3273_vm9, %v3272_v35, %v3270_v60  ;;  %1992 = vmatmul.bf16.gmra.mxu1 %v1776_v17  ;;  %2777 = vadd.xlane.f32.xlu0 %v2628_v24  ;;  %v1409_v50 = vpop.f32.mrf.mxu0  ;;  %v2110_v51 = vpop.f32.mrf.mxu3  ;;  %v2560_v29 = vunpack.c.l.bf16 %v2430_v3  ;;  %v1055_v60 = vunpack.c.l.b16 %v4494_v33  ;;  %v4527_v22 = vadd.s32 4294967232, %v4363_v47 }
 0x1f1   :  { %v2368_v54 = vpack.c.bf16 %v2240_v45, %v2240_v45  ;;  %v1732_v55 = vmax.f32 %v1567_v18, 0.0  ;;  %v2111_v38 = vadd.f32 %v4358_v40, %v2110_v51  ;;  %v1410_v21 = vadd.f32 %v4478_v4, %v1409_v50 }
 0x1f2   :  { %v2750_v59 = vpop.xlane.xlu1 %2749  ;;  %v2874_v30 = vpop.xlane.xlu0 %2873  ;;  %v2691_v58 = vmul.f32 %v4384_v20, %v2560_v29  ;;  %v1153_v3 = vpack.c.b16 %v1055_v60, %v1054_v63  ;;  %v1118_v35 = vunpack.c.l.b16 %v842_v5  ;;  %v1119_v18 = vunpack.c.l.b16 %v843_v1 }
 0x1f3   :  { %v2498_v0 = vunpack.c.l.bf16 %v2368_v54  ;;  %v2303_v61 = vmax.f32 %v2111_v38, 0.0  ;;  %v2999_v9 = vadd.f32 %v4352_v25, %v2750_v59  ;;  %1448 = vmatmul.bf16.gmra.mxu0 %v1152_v39  ;;  %1608 = vmatmul.bf16.gmra.mxu2 %v1184_v57  ;;  %v3061_v37 = vadd.f32 %v4352_v25, %v2874_v30 }
 0x1f4   :  { %v1955_v10 = vpop.f32.mrf.mxu1  ;;  %v1808_v11 = vpack.c.bf16 %v1732_v55, %v1731_v15  ;;  %v1669_v16 = vmax.f32 %v1410_v21, 0.0  ;;  %v652_v51 = vmax.f32 %v268_v12, 0.0  ;;  %v332_v54 = vadd.f32 %v4004_v41, %v4305_v7 }
 0x1f5   :  { %v2431_v19 = vpack.c.bf16 %v2303_v61, %v2303_v61  ;;  %v3276_v23 = vperm.slane %v2999_v9, %v4508_v44  ;;  %v1956_v62 = vadd.f32 %v4358_v40, %v1955_v10  ;;  %v2629_v8 = vmul.f32 %v4384_v20, %v2498_v0 }
 0x1f6   :  { %v3413_v39 = vperm.slane %v3061_v37, %v4461_v36  ;;  %2152 = vmatmul.bf16.gmra.mxu3 %v1808_v11  ;;  %v1569_v57 = vpop.f32.mrf.mxu2  ;;  %v333_v63 = vadd.f32 %v4006_v42, %v4305_v7  ;;  %v1185_v11 = vpack.c.b16 %v1119_v18, %v1118_v35  ;;  %v780_v1 = vpack.c.bf16 %v652_v51, %v652_v51 }
 0x1f7   :  { %v3278_v33 = vsel %vm3277_vm10, %v3276_v23, %v3274_v46  ;;  %v2241_v31 = vmax.f32 %v1956_v62, 0.0  ;;  %2779 = vadd.xlane.f32.xlu1 %v2629_v8  ;;  %v2561_v34 = vunpack.c.l.bf16 %v2431_v19  ;;  %v1570_v29 = vadd.f32 %v4478_v4, %v1569_v57 }
 0x1f8   :  { %v3414_v17 = vsel %vm3269_vm8, %v3413_v39, %v3412_v48  ;;  %2903 = vadd.xlane.f32.xlu0 %v2691_v58  ;;  %v1411_v43 = vpop.f32.mrf.mxu0  ;;  %v2113_v2 = vpop.f32.mrf.mxu3  ;;  %v781_v42 = vpack.c.bf16 %v653_v53, %v653_v53  ;;  %v716_v39 = vmax.f32 %v332_v54, 0.0  ;;  %v717_v57 = vmax.f32 %v333_v63, 0.0 }
 0x1f9   :  { %v2369_v32 = vpack.c.bf16 %v2241_v31, %v2241_v31  ;;  %v1412_v24 = vadd.f32 %v4478_v4, %v1411_v43  ;;  %v2114_v45 = vadd.f32 %v4358_v40, %v2113_v2  ;;  %v2692_v30 = vmul.f32 %v4384_v20, %v2561_v34 }
 0x1fa   :  { %v2752_v46 = vpop.xlane.xlu2 %2751  ;;  %v2876_v50 = vpop.xlane.xlu1 %2875  ;;  %v1733_v58 = vmax.f32 %v1570_v29, 0.0  ;;  %v4549_v2 = vadd.s32 4294967224, %v4363_v47  ;;  %v4561_v63 = vadd.s32 4294967216, %v4363_v47 }
 0x1fb   :  { %v2499_v48 = vunpack.c.l.bf16 %v2369_v32  ;;  %v1670_v55 = vmax.f32 %v1412_v24, 0.0  ;;  %v2304_v38 = vmax.f32 %v2114_v45, 0.0  ;;  %v3000_v15 = vadd.f32 %v4352_v25, %v2752_v46 }
 0x1fc   :  { %v3062_v59 = vadd.f32 %v4352_v25, %v2876_v50  ;;  %v1056_v45 = vunpack.c.l.b16 %v780_v1  ;;  %v1057_v46 = vunpack.c.l.b16 %v781_v42  ;;  %v844_v50 = vpack.c.bf16 %v716_v39, %v716_v39 }
 0x1fd   :  { %v1777_v60 = vpack.c.bf16 %v1670_v55, %v1669_v16  ;;  %v2432_v0 = vpack.c.bf16 %v2304_v38, %v2304_v38  ;;  %v3280_v61 = vperm.slane %v3000_v15, %v4527_v22  ;;  %v1958_v9 = vpop.f32.mrf.mxu1  ;;  %v2630_v41 = vmul.f32 %v4384_v20, %v2499_v48 }
 0x1fe   :  { %v3415_v5 = vperm.slane %v3062_v59, %v4484_v49  ;;  %v1959_v37 = vadd.f32 %v4358_v40, %v1958_v9  ;;  %v1571_v10 = vpop.f32.mrf.mxu2  ;;  %v845_v55 = vpack.c.bf16 %v717_v57, %v717_v57 }
 0x1ff   :  { %v3282_v12 = vsel %vm3281_vm11, %v3280_v61, %v3278_v33  ;;  %v1572_v19 = vadd.f32 %v4478_v4, %v1571_v10  ;;  %2781 = vadd.xlane.f32.xlu2 %v2630_v41  ;;  %2905 = vadd.xlane.f32.xlu1 %v2692_v30  ;;  %v2562_v26 = vunpack.c.l.bf16 %v2432_v0  ;;  %v4565_v41 = vadd.s32 4294967208, %v4363_v47 }
 0x200   :  { %v3416_v23 = vsel %vm3273_vm9, %v3415_v5, %v3414_v17  ;;  %v2242_v62 = vmax.f32 %v1959_v37, 0.0  ;;  %1997 = vmatmul.bf16.gmra.mxu1 %v1777_v60  ;;  %v1414_v8 = vpop.f32.mrf.mxu0  ;;  %v2115_v21 = vpop.f32.mrf.mxu3  ;;  %v1154_v5 = vpack.c.b16 %v1057_v46, %v1056_v45  ;;  %v1121_v1 = vunpack.c.l.b16 %v845_v55 }
 0x201   :  { %v1734_v31 = vmax.f32 %v1572_v19, 0.0  ;;  %v2116_v34 = vadd.f32 %v4358_v40, %v2115_v21  ;;  %v1415_v51 = vadd.f32 %v4478_v4, %v1414_v8  ;;  %v2693_v48 = vmul.f32 %v4384_v20, %v2562_v26 }
 0x202   :  { %v2370_v43 = vpack.c.bf16 %v2242_v62, %v2242_v62  ;;  %v2878_v33 = vpop.xlane.xlu2 %2877  ;;  %v2754_v35 = vpop.xlane.xlu0 %2753 }
 0x203   :  { %v1809_v32 = vpack.c.bf16 %v1734_v31, %v1733_v58  ;;  %v2305_v17 = vmax.f32 %v2116_v34, 0.0  ;;  %v3063_v24 = vadd.f32 %v4352_v25, %v2878_v33  ;;  %1453 = vmatmul.bf16.gmra.mxu0 %v1153_v3  ;;  %1613 = vmatmul.bf16.gmra.mxu2 %v1185_v11  ;;  %v3001_v16 = vadd.f32 %v4352_v25, %v2754_v35 }
 0x204   :  { %v2500_v18 = vunpack.c.l.bf16 %v2370_v43  ;;  %v1120_v11 = vunpack.c.l.b16 %v844_v50  ;;  %v1671_v19 = vmax.f32 %v1415_v51, 0.0  ;;  %v271_v31 = vadd.f32 %v4020_v14, %v4303_v6 }
 0x205   :  { %v3417_v53 = vperm.slane %v3063_v24, %v4508_v44  ;;  %v1960_v54 = vpop.f32.mrf.mxu1  ;;  %v2433_v38 = vpack.c.bf16 %v2305_v17, %v2305_v17  ;;  %v3284_v15 = vperm.slane %v3001_v16, %v4549_v2  ;;  %v334_v34 = vadd.f32 %v4018_v13, %v4305_v7 }
 0x206   :  { %v1961_v3 = vadd.f32 %v4358_v40, %v1960_v54  ;;  %2157 = vmatmul.bf16.gmra.mxu3 %v1809_v32  ;;  %v1574_v29 = vpop.f32.mrf.mxu2  ;;  %v2631_v59 = vmul.f32 %v4384_v20, %v2500_v18  ;;  %v335_v43 = vadd.f32 %v4020_v14, %v4305_v7  ;;  %v1186_v46 = vpack.c.b16 %v1121_v1, %v1120_v11 }
 0x207   :  { %v3418_v30 = vsel %vm3277_vm10, %v3417_v53, %v3416_v23  ;;  %2907 = vadd.xlane.f32.xlu2 %v2693_v48  ;;  %v3286_v60 = vsel %vm3285_vm12, %v3284_v15, %v3282_v12  ;;  %v2563_v42 = vunpack.c.l.bf16 %v2433_v38  ;;  %v270_v12 = vadd.f32 %v4018_v13, %v4303_v6 }
 0x208   :  { %v2243_v0 = vmax.f32 %v1961_v3, 0.0  ;;  %2783 = vadd.xlane.f32.xlu0 %v2631_v59  ;;  %v1416_v61 = vpop.f32.mrf.mxu0  ;;  %v2118_v9 = vpop.f32.mrf.mxu3  ;;  %v1575_v33 = vadd.f32 %v4478_v4, %v1574_v29  ;;  %v655_v55 = vmax.f32 %v271_v31, 0.0  ;;  %v718_v38 = vmax.f32 %v334_v34, 0.0 }
 0x209   :  { %v1417_v37 = vadd.f32 %v4478_v4, %v1416_v61  ;;  %v2119_v10 = vadd.f32 %v4358_v40, %v2118_v9  ;;  %v2694_v16 = vmul.f32 %v4384_v20, %v2563_v42  ;;  %v654_v48 = vmax.f32 %v270_v12, 0.0 }
 0x20a   :  { %v2371_v23 = vpack.c.bf16 %v2243_v0, %v2243_v0  ;;  %v2756_v62 = vpop.xlane.xlu1 %2755  ;;  %v2880_v8 = vpop.xlane.xlu0 %2879  ;;  %v1735_v15 = vmax.f32 %v1575_v33, 0.0  ;;  %v719_v59 = vmax.f32 %v335_v43, 0.0  ;;  %v783_v42 = vpack.c.bf16 %v655_v55, %v655_v55 }
 0x20b   :  { %v1672_v21 = vmax.f32 %v1417_v37, 0.0  ;;  %v2306_v39 = vmax.f32 %v2119_v10, 0.0  ;;  %v3002_v57 = vadd.f32 %v4352_v25, %v2756_v62  ;;  %v3064_v58 = vadd.f32 %v4352_v25, %v2880_v8 }
 0x20c   :  { %v2501_v26 = vunpack.c.l.bf16 %v2371_v23  ;;  %v846_v12 = vpack.c.bf16 %v718_v38, %v718_v38 }
 0x20d   :  { %v1778_v35 = vpack.c.bf16 %v1672_v21, %v1671_v19  ;;  %v3288_v32 = vperm.slane %v3002_v57, %v4561_v63  ;;  %v3419_v17 = vperm.slane %v3064_v58, %v4527_v22  ;;  %v1963_v24 = vpop.f32.mrf.mxu1  ;;  %v2434_v13 = vpack.c.bf16 %v2306_v39, %v2306_v39 }
 0x20e   :  { %v1964_v45 = vadd.f32 %v4358_v40, %v1963_v24  ;;  %v1576_v18 = vpop.f32.mrf.mxu2  ;;  %v2632_v6 = vmul.f32 %v4384_v20, %v2501_v26  ;;  %v782_v19 = vpack.c.bf16 %v654_v48, %v654_v48  ;;  %v847_v21 = vpack.c.bf16 %v719_v59, %v719_v59 }
 0x20f   :  { %v3290_v50 = vsel %vm3289_vm13, %v3288_v32, %v3286_v60  ;;  %v3420_v14 = vsel %vm3281_vm11, %v3419_v17, %v3418_v30  ;;  %v1577_v7 = vadd.f32 %v4478_v4, %v1576_v18  ;;  %v2564_v61 = vunpack.c.l.bf16 %v2434_v13 }
 0x210   :  { %v2244_v51 = vmax.f32 %v1964_v45, 0.0  ;;  %2002 = vmatmul.bf16.gmra.mxu1 %v1778_v35  ;;  %2909 = vadd.xlane.f32.xlu0 %v2694_v16  ;;  %v1419_v53 = vpop.f32.mrf.mxu0  ;;  %v2120_v54 = vpop.f32.mrf.mxu3  ;;  %v4600_v17 = vadd.s32 4294967200, %v4363_v47  ;;  %v1058_v24 = vunpack.c.l.b16 %v782_v19  ;;  %v1059_v16 = vunpack.c.l.b16 %v783_v42 }
 0x211   :  { %v1736_v3 = vmax.f32 %v1577_v7, 0.0  ;;  %2785 = vadd.xlane.f32.xlu1 %v2632_v6  ;;  %v2121_v29 = vadd.f32 %v4358_v40, %v2120_v54  ;;  %v1420_v23 = vadd.f32 %v4478_v4, %v1419_v53  ;;  %v2695_v34 = vmul.f32 %v4384_v20, %v2564_v61 }
 0x212   :  { %v2372_v0 = vpack.c.bf16 %v2244_v51, %v2244_v51  ;;  %v2758_v60 = vpop.xlane.xlu2 %2757  ;;  %v2882_v30 = vpop.xlane.xlu1 %2881  ;;  %v1122_v6 = vunpack.c.l.b16 %v846_v12  ;;  %v1123_v51 = vunpack.c.l.b16 %v847_v21 }
 0x213   :  { %v1810_v9 = vpack.c.bf16 %v1736_v3, %v1735_v15  ;;  %v2307_v37 = vmax.f32 %v2121_v29, 0.0  ;;  %v3003_v10 = vadd.f32 %v4352_v25, %v2758_v60  ;;  %1458 = vmatmul.bf16.gmra.mxu0 %v1154_v5  ;;  %1618 = vmatmul.bf16.gmra.mxu2 %v1186_v46  ;;  %v3065_v1 = vadd.f32 %v4352_v25, %v2882_v30 }
 0x214   :  { %v2502_v11 = vunpack.c.l.bf16 %v2372_v0  ;;  %v1673_v46 = vmax.f32 %v1420_v23, 0.0 }
 0x215   :  { %v3292_v62 = vperm.slane %v3003_v10, %v4565_v41  ;;  %v1965_v8 = vpop.f32.mrf.mxu1  ;;  %v2435_v39 = vpack.c.bf16 %v2307_v37, %v2307_v37  ;;  %v3421_v57 = vperm.slane %v3065_v1, %v4549_v2  ;;  %v1155_v37 = vpack.c.b16 %v1059_v16, %v1058_v24 }
 0x216   :  { %v1966_v58 = vadd.f32 %v4358_v40, %v1965_v8  ;;  %2162 = vmatmul.bf16.gmra.mxu3 %v1810_v9  ;;  %v1579_v5 = vpop.f32.mrf.mxu2  ;;  %v2633_v26 = vmul.f32 %v4384_v20, %v2502_v11  ;;  %v1187_v10 = vpack.c.b16 %v1123_v51, %v1122_v6 }
 0x217   :  { %v3294_v31 = vsel %vm3293_vm14, %v3292_v62, %v3290_v50  ;;  %v3422_v43 = vsel %vm3285_vm12, %v3421_v57, %v3420_v14  ;;  %v2565_v13 = vunpack.c.l.bf16 %v2435_v39  ;;  %v1580_v15 = vadd.f32 %v4478_v4, %v1579_v5  ;;  %v4621_v57 = vld [vmem:[%s5187_s5] ss:$0 sm:$0xff] }
 0x218   :  { %v2245_v33 = vmax.f32 %v1966_v58, 0.0  ;;  %2787 = vadd.xlane.f32.xlu2 %v2633_v26  ;;  %v1421_v35 = vpop.f32.mrf.mxu0  ;;  %v2123_v32 = vpop.f32.mrf.mxu3 }
 0x219   :  { %2911 = vadd.xlane.f32.xlu1 %v2695_v34  ;;  %v1422_v45 = vadd.f32 %v4478_v4, %v1421_v35  ;;  %v2124_v18 = vadd.f32 %v4358_v40, %v2123_v32  ;;  %v2696_v42 = vmul.f32 %v4384_v20, %v2565_v13  ;;  %v1737_v12 = vmax.f32 %v1580_v15, 0.0 }
 0x21a   :  { %v2373_v50 = vpack.c.bf16 %v2245_v33, %v2245_v33  ;;  %v2884_v7 = vpop.xlane.xlu2 %2883  ;;  %v2760_v14 = vpop.xlane.xlu0 %2759  ;;  %v4637_v15 = vadd.s32 4294967184, %v4363_v47 }
 0x21b   :  { %v1674_v53 = vmax.f32 %v1422_v45, 0.0  ;;  %v2308_v54 = vmax.f32 %v2124_v18, 0.0  ;;  %v3066_v48 = vadd.f32 %v4352_v25, %v2884_v7  ;;  %v3004_v55 = vadd.f32 %v4352_v25, %v2760_v14 }
 0x21c   :  { %v2503_v38 = vunpack.c.l.bf16 %v2373_v50 }
 0x21d   :  { %v1779_v3 = vpack.c.bf16 %v1674_v53, %v1673_v46  ;;  %v2436_v29 = vpack.c.bf16 %v2308_v54, %v2308_v54  ;;  %v3423_v59 = vperm.slane %v3066_v48, %v4561_v63  ;;  %v3296_v0 = vperm.slane %v3004_v55, %v4600_v17  ;;  %v1968_v60 = vpop.f32.mrf.mxu1 }
 0x21e   :  { %v1969_v30 = vadd.f32 %v4358_v40, %v1968_v60  ;;  %v1581_v61 = vpop.f32.mrf.mxu2  ;;  %v2634_v9 = vmul.f32 %v4384_v20, %v2503_v38  ;;  %v4616_v40 = vadd.s32 4294967192, %v4363_v47 }
 0x21f   :  { %v3424_v11 = vsel %vm3289_vm13, %v3423_v59, %v3422_v43  ;;  %v3298_v1 = vsel %vm3297_vm15, %v3296_v0, %v3294_v31  ;;  %v1582_v19 = vadd.f32 %v4478_v4, %v1581_v61  ;;  %v2566_v21 = vunpack.c.l.bf16 %v2436_v29 }
 0x220   :  { %v2246_v23 = vmax.f32 %v1969_v30, 0.0  ;;  %2007 = vmatmul.bf16.gmra.mxu1 %v1779_v3  ;;  %2789 = vadd.xlane.f32.xlu0 %v2634_v9  ;;  %v1424_v62 = vpop.f32.mrf.mxu0  ;;  %v2125_v8 = vpop.f32.mrf.mxu3 }
 0x221   :  { %v1738_v39 = vmax.f32 %v1582_v19, 0.0  ;;  %2913 = vadd.xlane.f32.xlu2 %v2696_v42  ;;  %v2126_v58 = vadd.f32 %v4621_v57, %v2125_v8  ;;  %v1425_v24 = vadd.f32 %v4478_v4, %v1424_v62  ;;  %v2697_v16 = vmul.f32 %v4384_v20, %v2566_v21 }
 0x222   :  { %v2374_v5 = vpack.c.bf16 %v2246_v23, %v2246_v23  ;;  %v2762_v26 = vpop.xlane.xlu1 %2761  ;;  %v2886_v31 = vpop.xlane.xlu0 %2885 }
 0x223   :  { %v1811_v34 = vpack.c.bf16 %v1738_v39, %v1737_v12  ;;  %v2309_v43 = vmax.f32 %v2126_v58, 0.0  ;;  %v3005_v33 = vadd.f32 %v4352_v25, %v2762_v26  ;;  %1463 = vmatmul.bf16.gmra.mxu0 %v1155_v37  ;;  %1623 = vmatmul.bf16.gmra.mxu2 %v1187_v10  ;;  %v3067_v32 = vadd.f32 %v4352_v25, %v2886_v31  ;;  %v4648_v12 = vld [vmem:[%s5188_s6] ss:$0 sm:$0xff] }
 0x224   :  { %v2504_v35 = vunpack.c.l.bf16 %v2374_v5  ;;  %v1675_v3 = vmax.f32 %v1425_v24, 0.0 }
 0x225   :  { %v3300_v45 = vperm.slane %v3005_v33, %v4616_v40  ;;  %v1970_v18 = vpop.f32.mrf.mxu1  ;;  %v2437_v6 = vpack.c.bf16 %v2309_v43, %v2309_v43  ;;  %v3425_v46 = vperm.slane %v3067_v32, %v4565_v41 }
 0x226   :  { %v1971_v13 = vadd.f32 %v4621_v57, %v1970_v18  ;;  %2167 = vmatmul.bf16.gmra.mxu3 %v1811_v34  ;;  %v1584_v50 = vpop.f32.mrf.mxu2  ;;  %v2635_v7 = vmul.f32 %v4384_v20, %v2504_v35 }
 0x227   :  { %v3302_v14 = vsel %vm3301_vm0, %v3300_v45, %v3298_v1  ;;  %v3426_v51 = vsel %vm3293_vm14, %v3425_v46, %v3424_v11  ;;  %v2567_v29 = vunpack.c.l.bf16 %v2437_v6  ;;  %v1585_v10 = vadd.f32 %v4478_v4, %v1584_v50 }
 0x228   :  { %v2247_v53 = vmax.f32 %v1971_v13, 0.0  ;;  %2915 = vadd.xlane.f32.xlu0 %v2697_v16  ;;  %2791 = vadd.xlane.f32.xlu1 %v2635_v7  ;;  %v1426_v54 = vpop.f32.mrf.mxu0  ;;  %v2128_v48 = vpop.f32.mrf.mxu3  ;;  %v4657_v16 = vadd.s32 4294967176, %v4363_v47 }
 0x229   :  { %v1427_v55 = vadd.f32 %v4478_v4, %v1426_v54  ;;  %v2129_v38 = vadd.f32 %v4621_v57, %v2128_v48  ;;  %v2698_v26 = vmul.f32 %v4648_v12, %v2567_v29  ;;  %v1739_v33 = vmax.f32 %v1585_v10, 0.0 }
 0x22a   :  { %v2375_v59 = vpack.c.bf16 %v2247_v53, %v2247_v53  ;;  %v2764_v20 = vpop.xlane.xlu2 %2763  ;;  %v2888_v0 = vpop.xlane.xlu1 %2887 }
 0x22b   :  { %v1676_v60 = vmax.f32 %v1427_v55, 0.0  ;;  %v2310_v30 = vmax.f32 %v2129_v38, 0.0  ;;  %v3006_v61 = vadd.f32 %v4352_v25, %v2764_v20  ;;  %v3068_v9 = vadd.f32 %v4352_v25, %v2888_v0 }
 0x22c   :  { %v2505_v37 = vunpack.c.l.bf16 %v2375_v59 }
 0x22d   :  { %v1780_v11 = vpack.c.bf16 %v1676_v60, %v1675_v3  ;;  %v2438_v1 = vpack.c.bf16 %v2310_v30, %v2310_v30  ;;  %v3304_v19 = vperm.slane %v3006_v61, %v4637_v15  ;;  %v3427_v42 = vperm.slane %v3068_v9, %v4600_v17  ;;  %v1973_v23 = vpop.f32.mrf.mxu1 }
 0x22e   :  { %v1974_v62 = vadd.f32 %v4621_v57, %v1973_v23  ;;  %v1586_v8 = vpop.f32.mrf.mxu2  ;;  %v2636_v21 = vmul.f32 %v4648_v12, %v2505_v37 }
 0x22f   :  { %v3306_v39 = vsel %vm3305_vm3, %v3304_v19, %v3302_v14  ;;  %v3428_v58 = vsel %vm3297_vm15, %v3427_v42, %v3426_v51  ;;  %v1587_v5 = vadd.f32 %v4478_v4, %v1586_v8  ;;  %v2568_v35 = vunpack.c.l.bf16 %v2438_v1 }
 0x230   :  { %v2248_v31 = vmax.f32 %v1974_v62, 0.0  ;;  %2012 = vmatmul.bf16.gmra.mxu1 %v1780_v11  ;;  %2793 = vadd.xlane.f32.xlu2 %v2636_v21  ;;  %v1429_v34 = vpop.f32.mrf.mxu0  ;;  %v2130_v43 = vpop.f32.mrf.mxu3 }
 0x231   :  { %v1740_v32 = vmax.f32 %v1587_v5, 0.0  ;;  %2917 = vadd.xlane.f32.xlu1 %v2698_v26  ;;  %v2131_v24 = vadd.f32 %v4621_v57, %v2130_v43  ;;  %v2699_v54 = vmul.f32 %v4648_v12, %v2568_v35  ;;  %v1430_v59 = vadd.f32 %v4478_v4, %v1429_v34 }
 0x232   :  { %v2376_v45 = vpack.c.bf16 %v2248_v31, %v2248_v31  ;;  %v2890_v18 = vpop.xlane.xlu2 %2889  ;;  %v2766_v6 = vpop.xlane.xlu0 %2765 }
 0x233   :  { %v1812_v46 = vpack.c.bf16 %v1740_v32, %v1739_v33  ;;  %v2311_v13 = vmax.f32 %v2131_v24, 0.0  ;;  %v3069_v50 = vadd.f32 %v4352_v25, %v2890_v18  ;;  %v3007_v14 = vadd.f32 %v4352_v25, %v2766_v6 }
 0x234   :  { %v2506_v7 = vunpack.c.l.bf16 %v2376_v45  ;;  %v1677_v42 = vmax.f32 %v1430_v59, 0.0 }
 0x235   :  { %v3429_v51 = vperm.slane %v3069_v50, %v4616_v40  ;;  %v1975_v53 = vpop.f32.mrf.mxu1  ;;  %v2439_v48 = vpack.c.bf16 %v2311_v13, %v2311_v13  ;;  %v3308_v55 = vperm.slane %v3007_v14, %v4657_v16 }
 0x236   :  { %v1976_v38 = vadd.f32 %v4621_v57, %v1975_v53  ;;  %2172 = vmatmul.bf16.gmra.mxu3 %v1812_v46  ;;  %v1589_v3 = vpop.f32.mrf.mxu2  ;;  %v2637_v29 = vmul.f32 %v4648_v12, %v2506_v7 }
 0x237   :  { %v3430_v20 = vsel %vm3301_vm0, %v3429_v51, %v3428_v58  ;;  %v4669_v0 = vsel %vm3309_vm1, %v3308_v55, %v3306_v39  ;;  %v2569_v10 = vunpack.c.l.bf16 %v2439_v48  ;;  %v1590_v39 = vadd.f32 %v4478_v4, %v1589_v3 }
 0x238   :  { %v2249_v60 = vmax.f32 %v1976_v38, 0.0  ;;  %2795 = vadd.xlane.f32.xlu0 %v2637_v29  ;;  %2919 = vadd.xlane.f32.xlu2 %v2699_v54  ;;  %v1431_v30 = vpop.f32.mrf.mxu0  ;;  %v2133_v61 = vpop.f32.mrf.mxu3 }
 0x239   :  { %v1432_v9 = vadd.f32 %v4478_v4, %v1431_v30  ;;  %v2134_v37 = vadd.f32 %v4621_v57, %v2133_v61  ;;  %v2700_v43 = vmul.f32 %v4648_v12, %v2569_v10  ;;  %v1741_v46 = vmax.f32 %v1590_v39, 0.0 }
 0x23a   :  { %v2377_v11 = vpack.c.bf16 %v2249_v60, %v2249_v60  ;;  %v2892_v1 = vpop.xlane.xlu0 %2891  ;;  %v2768_v19 = vpop.xlane.xlu1 %2767 }
 0x23b   :  { %v1678_v23 = vmax.f32 %v1432_v9, 0.0  ;;  %v2312_v62 = vmax.f32 %v2134_v37, 0.0  ;;  %v3070_v8 = vadd.f32 %v4352_v25, %v2892_v1  ;;  %v3008_v13 = vadd.f32 %v4352_v25, %v2768_v19 }
 0x23c   :  { %v2507_v21 = vunpack.c.l.bf16 %v2377_v11 }
 0x23d   :  { %v1781_v58 = vpack.c.bf16 %v1678_v23, %v1677_v42  ;;  %v3431_v5 = vperm.slane %v3070_v8, %v4637_v15  ;;  %v1978_v26 = vpop.f32.mrf.mxu1  ;;  %v2440_v35 = vpack.c.bf16 %v2312_v62, %v2312_v62  ;;  %v3311_v59 = vperm.slane %v3008_v13, %v4363_v47 }
 0x23e   :  { %v1979_v31 = vadd.f32 %v4621_v57, %v1978_v26  ;;  %v1591_v34 = vpop.f32.mrf.mxu2  ;;  %v2638_v33 = vmul.f32 %v4648_v12, %v2507_v21 }
 0x23f   :  { %v3432_v32 = vsel %vm3305_vm3, %v3431_v5, %v3430_v20  ;;  %v1592_v24 = vadd.f32 %v4478_v4, %v1591_v34  ;;  %v2570_v54 = vunpack.c.l.bf16 %v2440_v35 }
 0x240   :  { %v2250_v45 = vmax.f32 %v1979_v31, 0.0  ;;  %2017 = vmatmul.bf16.gmra.mxu1 %v1781_v58  ;;  %2921 = vadd.xlane.f32.xlu0 %v2700_v43  ;;  %v1434_v18 = vpop.f32.mrf.mxu0  ;;  %v2135_v6 = vpop.f32.mrf.mxu3 }
 0x241   :  { %v1742_v50 = vmax.f32 %v1592_v24, 0.0  ;;  %2797 = vadd.xlane.f32.xlu1 %v2638_v33  ;;  %v2136_v7 = vadd.f32 %v4621_v57, %v2135_v6  ;;  %v1435_v10 = vadd.f32 %v4478_v4, %v1434_v18  ;;  %v2701_v19 = vmul.f32 %v4648_v12, %v2570_v54 }
 0x242   :  { %v2378_v14 = vpack.c.bf16 %v2250_v45, %v2250_v45  ;;  %v2770_v51 = vpop.xlane.xlu2 %2769  ;;  %v2894_v53 = vpop.xlane.xlu1 %2893 }
 0x243   :  { %v1813_v48 = vpack.c.bf16 %v1742_v50, %v1741_v46  ;;  %v2313_v55 = vmax.f32 %v2136_v7, 0.0  ;;  %v3009_v38 = vadd.f32 %v4352_v25, %v2770_v51  ;;  %v3071_v29 = vadd.f32 %v4352_v25, %v2894_v53 }
 0x244   :  { %v2508_v3 = vunpack.c.l.bf16 %v2378_v14  ;;  %v1679_v26 = vmax.f32 %v1435_v10, 0.0 }
 0x245   :  { %v3312_v20 = vperm.slane %v3009_v38, %v4374_v28  ;;  %v1980_v60 = vpop.f32.mrf.mxu1  ;;  %v3433_v30 = vperm.slane %v3071_v29, %v4657_v16  ;;  %v2441_v11 = vpack.c.bf16 %v2313_v55, %v2313_v55 }
 0x246   :  { %v1981_v61 = vadd.f32 %v4621_v57, %v1980_v60  ;;  %2177 = vmatmul.bf16.gmra.mxu3 %v1813_v48  ;;  %v1594_v9 = vpop.f32.mrf.mxu2  ;;  %v2639_v37 = vmul.f32 %v4648_v12, %v2508_v3 }
 0x247   :  { %v3313_v1 = vsel %vm3253_vm4, %v3312_v20, %v3311_v59  ;;  %v4694_v42 = vsel %vm3309_vm1, %v3433_v30, %v3432_v32  ;;  %v2571_v31 = vunpack.c.l.bf16 %v2441_v11  ;;  %v1595_v32 = vadd.f32 %v4478_v4, %v1594_v9 }
 0x248   :  { %v2251_v23 = vmax.f32 %v1981_v61, 0.0  ;;  %2799 = vadd.xlane.f32.xlu2 %v2639_v37  ;;  %v1436_v62 = vpop.f32.mrf.mxu0  ;;  %v2138_v21 = vpop.f32.mrf.mxu3 }
 0x249   :  { %2923 = vadd.xlane.f32.xlu1 %v2701_v19  ;;  %v1437_v8 = vadd.f32 %v4478_v4, %v1436_v62  ;;  %v2139_v58 = vadd.f32 %v4621_v57, %v2138_v21  ;;  %v2702_v53 = vmul.f32 %v4648_v12, %v2571_v31  ;;  %v1743_v55 = vmax.f32 %v1595_v32, 0.0 }
 0x24a   :  { %v2379_v39 = vpack.c.bf16 %v2251_v23, %v2251_v23  ;;  %v2772_v5 = vpop.xlane.xlu0 %2771  ;;  %v2896_v46 = vpop.xlane.xlu2 %2895 }
 0x24b   :  { %v1680_v34 = vmax.f32 %v1437_v8, 0.0  ;;  %v3010_v43 = vadd.f32 %v4352_v25, %v2772_v5  ;;  %v2314_v35 = vmax.f32 %v2139_v58, 0.0  ;;  %v3072_v38 = vadd.f32 %v4352_v25, %v2896_v46 }
 0x24c   :  { %v2509_v33 = vunpack.c.l.bf16 %v2379_v39 }
 0x24d   :  { %v1782_v24 = vpack.c.bf16 %v1680_v34, %v1679_v26  ;;  %v3314_v45 = vperm.slane %v3010_v43, %v4401_v56  ;;  %v1983_v18 = vpop.f32.mrf.mxu1  ;;  %v2442_v6 = vpack.c.bf16 %v2314_v35, %v2314_v35  ;;  %v3435_v19 = vperm.slane %v3072_v38, %v4363_v47 }
 0x24e   :  { %v1984_v13 = vadd.f32 %v4621_v57, %v1983_v18  ;;  %v1596_v50 = vpop.f32.mrf.mxu2  ;;  %v2640_v7 = vmul.f32 %v4648_v12, %v2509_v33 }
 0x24f   :  { %v3315_v14 = vsel %vm3257_vm5, %v3314_v45, %v3313_v1  ;;  %v1597_v51 = vadd.f32 %v4478_v4, %v1596_v50  ;;  %v2572_v59 = vunpack.c.l.bf16 %v2442_v6 }
 0x250   :  { %v2252_v54 = vmax.f32 %v1984_v13, 0.0  ;;  %2022 = vmatmul.bf16.gmra.mxu1 %v1782_v24  ;;  %2801 = vadd.xlane.f32.xlu0 %v2640_v7  ;;  %v1439_v48 = vpop.f32.mrf.mxu0  ;;  %v2140_v29 = vpop.f32.mrf.mxu3 }
 0x251   :  { %v1744_v3 = vmax.f32 %v1597_v51, 0.0  ;;  %2925 = vadd.xlane.f32.xlu2 %v2702_v53  ;;  %v2141_v60 = vadd.f32 %v4621_v57, %v2140_v29  ;;  %v2703_v58 = vmul.f32 %v4648_v12, %v2572_v59  ;;  %v1440_v26 = vadd.f32 %v4478_v4, %v1439_v48  ;;  %v4726_v48 = vld [vmem:[%s5185_s3] ss:$0 sm:$0xff] }
 0x252   :  { %v2380_v20 = vpack.c.bf16 %v2252_v54, %v2252_v54  ;;  %v2898_v30 = vpop.xlane.xlu0 %2897 }
 0x253   :  { %v1814_v61 = vpack.c.bf16 %v1744_v3, %v1743_v55  ;;  %v3073_v9 = vadd.f32 %v4352_v25, %v2898_v30  ;;  %v2774_v37 = vpop.xlane.xlu1 %2773  ;;  %v2315_v11 = vmax.f32 %v2141_v60, 0.0  ;;  %v1681_v46 = vmax.f32 %v1440_v26, 0.0 }
 0x254   :  { %v2510_v10 = vunpack.c.l.bf16 %v2380_v20  ;;  %v3011_v1 = vadd.f32 %v4352_v25, %v2774_v37 }
 0x255   :  { %v3436_v23 = vperm.slane %v3073_v9, %v4374_v28  ;;  %v1985_v62 = vpop.f32.mrf.mxu1  ;;  %v2443_v31 = vpack.c.bf16 %v2315_v11, %v2315_v11 }
 0x256   :  { %v3316_v8 = vperm.slane %v3011_v1, %v4413_v27  ;;  %v1986_v21 = vadd.f32 %v4621_v57, %v1985_v62  ;;  %2182 = vmatmul.bf16.gmra.mxu3 %v1814_v61  ;;  %v1599_v39 = vpop.f32.mrf.mxu2  ;;  %v2641_v5 = vmul.f32 %v4648_v12, %v2510_v10 }
 0x257   :  { %v3437_v34 = vsel %vm3253_vm4, %v3436_v23, %v3435_v19  ;;  %v2573_v13 = vunpack.c.l.bf16 %v2443_v31 }
 0x258   :  { %v3317_v43 = vsel %vm3261_vm6, %v3316_v8, %v3315_v14  ;;  %v2253_v33 = vmax.f32 %v1986_v21, 0.0  ;;  %2927 = vadd.xlane.f32.xlu0 %v2703_v58  ;;  %2803 = vadd.xlane.f32.xlu1 %v2641_v5  ;;  %v1441_v35 = vpop.f32.mrf.mxu0  ;;  %v2143_v24 = vpop.f32.mrf.mxu3 }
 0x259   :  { %v1442_v32 = vadd.f32 %v4478_v4, %v1441_v35  ;;  %v2144_v18 = vadd.f32 %v4621_v57, %v2143_v24  ;;  %v1600_v4 = vadd.f32 %v4726_v48, %v1599_v39  ;;  %v2704_v37 = vmul.f32 %v4648_v12, %v2573_v13 }
 0x25a   :  { %v2381_v45 = vpack.c.bf16 %v2253_v33, %v2253_v33  ;;  %v2776_v6 = vpop.xlane.xlu2 %2775 }
 0x25b   :  { %v1682_v50 = vmax.f32 %v1442_v32, 0.0  ;;  %v3012_v7 = vadd.f32 %v4352_v25, %v2776_v6  ;;  %v2900_v51 = vpop.xlane.xlu1 %2899  ;;  %v2316_v54 = vmax.f32 %v2144_v18, 0.0  ;;  %v1745_v19 = vmax.f32 %v1600_v4, 0.0 }
 0x25c   :  { %v2511_v53 = vunpack.c.l.bf16 %v2381_v45  ;;  %v3074_v14 = vadd.f32 %v4352_v25, %v2900_v51 }
 0x25d   :  { %v1783_v55 = vpack.c.bf16 %v1682_v50, %v1681_v46  ;;  %v3318_v38 = vperm.slane %v3012_v7, %v4435_v52  ;;  %v1988_v3 = vpop.f32.mrf.mxu1  ;;  %v2444_v29 = vpack.c.bf16 %v2316_v54, %v2316_v54 }
 0x25e   :  { %v3438_v59 = vperm.slane %v3074_v14, %v4401_v56  ;;  %v1989_v20 = vadd.f32 %v4621_v57, %v1988_v3  ;;  %v1601_v60 = vpop.f32.mrf.mxu2  ;;  %v2642_v30 = vmul.f32 %v4648_v12, %v2511_v53 }
 0x25f   :  { %v3319_v61 = vsel %vm3265_vm7, %v3318_v38, %v3317_v43  ;;  %v1602_v9 = vadd.f32 %v4726_v48, %v1601_v60  ;;  %v2574_v23 = vunpack.c.l.bf16 %v2444_v29 }
 0x260   :  { %v3439_v10 = vsel %vm3257_vm5, %v3438_v59, %v3437_v34  ;;  %v2254_v11 = vmax.f32 %v1989_v20, 0.0  ;;  %2027 = vmatmul.bf16.gmra.mxu1 %v1783_v55  ;;  %2805 = vadd.xlane.f32.xlu2 %v2642_v30  ;;  %v1444_v1 = vpop.f32.mrf.mxu0  ;;  %v2145_v8 = vpop.f32.mrf.mxu3 }
 0x261   :  { %v1746_v62 = vmax.f32 %v1602_v9, 0.0  ;;  %2929 = vadd.xlane.f32.xlu1 %v2704_v37  ;;  %v2146_v39 = vadd.f32 %v4621_v57, %v2145_v8  ;;  %v2705_v24 = vmul.f32 %v4648_v12, %v2574_v23  ;;  %v1445_v50 = vadd.f32 %v4726_v48, %v1444_v1 }
 0x262   :  { %v2382_v21 = vpack.c.bf16 %v2254_v11, %v2254_v11  ;;  %v2902_v58 = vpop.xlane.xlu2 %2901 }
 0x263   :  { %v1815_v5 = vpack.c.bf16 %v1746_v62, %v1745_v19  ;;  %v2778_v26 = vpop.xlane.xlu0 %2777  ;;  %v3075_v31 = vadd.f32 %v4352_v25, %v2902_v58  ;;  %v2317_v33 = vmax.f32 %v2146_v39, 0.0  ;;  %v1683_v59 = vmax.f32 %v1445_v50, 0.0 }
 0x264   :  { %v2512_v43 = vunpack.c.l.bf16 %v2382_v21  ;;  %v3013_v34 = vadd.f32 %v4352_v25, %v2778_v26 }
 0x265   :  { %v3440_v35 = vperm.slane %v3075_v31, %v4413_v27  ;;  %v1990_v32 = vpop.f32.mrf.mxu1  ;;  %v2445_v45 = vpack.c.bf16 %v2317_v33, %v2317_v33 }
 0x266   :  { %v3320_v18 = vperm.slane %v3013_v34, %v4461_v36  ;;  %v1991_v6 = vadd.f32 %v4621_v57, %v1990_v32  ;;  %2187 = vmatmul.bf16.gmra.mxu3 %v1815_v5  ;;  %v1604_v46 = vpop.f32.mrf.mxu2  ;;  %v2643_v13 = vmul.f32 %v4648_v12, %v2512_v43 }
 0x267   :  { %v3441_v7 = vsel %vm3261_vm6, %v3440_v35, %v3439_v10  ;;  %v2575_v55 = vunpack.c.l.bf16 %v2445_v45  ;;  %v1605_v10 = vadd.f32 %v4726_v48, %v1604_v46 }
 0x268   :  { %v3321_v51 = vsel %vm3269_vm8, %v3320_v18, %v3319_v61  ;;  %v2255_v53 = vmax.f32 %v1991_v6, 0.0  ;;  %2807 = vadd.xlane.f32.xlu0 %v2643_v13  ;;  %2931 = vadd.xlane.f32.xlu2 %v2705_v24  ;;  %v1446_v54 = vpop.f32.mrf.mxu0  ;;  %v2148_v4 = vpop.f32.mrf.mxu3 }
 0x269   :  { %v1447_v14 = vadd.f32 %v4726_v48, %v1446_v54  ;;  %v2149_v3 = vadd.f32 %v4621_v57, %v2148_v4  ;;  %v2706_v21 = vmul.f32 %v4648_v12, %v2575_v55  ;;  %v1747_v34 = vmax.f32 %v1605_v10, 0.0 }
 0x26a   :  { %v2383_v38 = vpack.c.bf16 %v2255_v53, %v2255_v53  ;;  %v2780_v29 = vpop.xlane.xlu1 %2779 }
 0x26b   :  { %v1684_v20 = vmax.f32 %v1447_v14, 0.0  ;;  %v2904_v60 = vpop.xlane.xlu0 %2903  ;;  %v3014_v30 = vadd.f32 %v4352_v25, %v2780_v29  ;;  %v2318_v37 = vmax.f32 %v2149_v3, 0.0 }
 0x26c   :  { %v2513_v9 = vunpack.c.l.bf16 %v2383_v38  ;;  %v3076_v61 = vadd.f32 %v4352_v25, %v2904_v60 }
 0x26d   :  { %v1784_v11 = vpack.c.bf16 %v1684_v20, %v1683_v59  ;;  %v3322_v1 = vperm.slane %v3014_v30, %v4484_v49  ;;  %v1993_v19 = vpop.f32.mrf.mxu1  ;;  %v2446_v58 = vpack.c.bf16 %v2318_v37, %v2318_v37 }
 0x26e   :  { %v3442_v23 = vperm.slane %v3076_v61, %v4435_v52  ;;  %v1994_v62 = vadd.f32 %v4621_v57, %v1993_v19  ;;  %v1606_v8 = vpop.f32.mrf.mxu2  ;;  %v2644_v39 = vmul.f32 %v4648_v12, %v2513_v9 }
 0x26f   :  { %v3323_v5 = vsel %vm3273_vm9, %v3322_v1, %v3321_v51  ;;  %v1607_v26 = vadd.f32 %v4726_v48, %v1606_v8  ;;  %v2576_v46 = vunpack.c.l.bf16 %v2446_v58 }
 0x270   :  { %v3443_v31 = vsel %vm3265_vm7, %v3442_v23, %v3441_v7  ;;  %v2256_v43 = vmax.f32 %v1994_v62, 0.0  ;;  %2032 = vmatmul.bf16.gmra.mxu1 %v1784_v11  ;;  %2933 = vadd.xlane.f32.xlu0 %v2706_v21  ;;  %v1449_v33 = vpop.f32.mrf.mxu0  ;;  %v2150_v32 = vpop.f32.mrf.mxu3 }
 0x271   :  { %v1748_v35 = vmax.f32 %v1607_v26, 0.0  ;;  %2809 = vadd.xlane.f32.xlu1 %v2644_v39  ;;  %v2151_v45 = vadd.f32 %v4621_v57, %v2150_v32  ;;  %v1450_v55 = vadd.f32 %v4726_v48, %v1449_v33  ;;  %v2707_v30 = vmul.f32 %v4648_v12, %v2576_v46 }
 0x272   :  { %v2384_v24 = vpack.c.bf16 %v2256_v43, %v2256_v43  ;;  %v2782_v18 = vpop.xlane.xlu2 %2781  ;;  %v2906_v6 = vpop.xlane.xlu1 %2905 }
 0x273   :  { %v1816_v13 = vpack.c.bf16 %v1748_v35, %v1747_v34  ;;  %v3015_v50 = vadd.f32 %v4352_v25, %v2782_v18  ;;  %v3077_v51 = vadd.f32 %v4352_v25, %v2906_v6  ;;  %v2319_v53 = vmax.f32 %v2151_v45, 0.0 }
 0x274   :  { %v2514_v7 = vunpack.c.l.bf16 %v2384_v24  ;;  %v1685_v23 = vmax.f32 %v1450_v55, 0.0 }
 0x275   :  { %v3324_v54 = vperm.slane %v3015_v50, %v4508_v44  ;;  %v3444_v14 = vperm.slane %v3077_v51, %v4461_v36  ;;  %v1995_v4 = vpop.f32.mrf.mxu1  ;;  %v2447_v59 = vpack.c.bf16 %v2319_v53, %v2319_v53 }
 0x276   :  { %v1996_v38 = vadd.f32 %v4621_v57, %v1995_v4  ;;  %2192 = vmatmul.bf16.gmra.mxu3 %v1816_v13  ;;  %v1609_v3 = vpop.f32.mrf.mxu2  ;;  %v2645_v29 = vmul.f32 %v4648_v12, %v2514_v7 }
 0x277   :  { %v3325_v20 = vsel %vm3277_vm10, %v3324_v54, %v3323_v5  ;;  %v3445_v60 = vsel %vm3269_vm8, %v3444_v14, %v3443_v31  ;;  %v2577_v62 = vunpack.c.l.bf16 %v2447_v59  ;;  %v1610_v31 = vadd.f32 %v4726_v48, %v1609_v3 }
 0x278   :  { %v2257_v9 = vmax.f32 %v1996_v38, 0.0  ;;  %2811 = vadd.xlane.f32.xlu2 %v2645_v29  ;;  %v1451_v37 = vpop.f32.mrf.mxu0 }
 0x279   :  { %2935 = vadd.xlane.f32.xlu1 %v2707_v30  ;;  %v1452_v61 = vadd.f32 %v4726_v48, %v1451_v37  ;;  %v2153_v10 = vpop.f32.mrf.mxu3  ;;  %v2708_v13 = vmul.f32 %v4648_v12, %v2577_v62  ;;  %v1749_v53 = vmax.f32 %v1610_v31, 0.0 }
 0x27a   :  { %v2385_v11 = vpack.c.bf16 %v2257_v9, %v2257_v9  ;;  %v2154_v1 = vadd.f32 %v4621_v57, %v2153_v10  ;;  %v2908_v19 = vpop.xlane.xlu2 %2907 }
 0x27b   :  { %v1686_v8 = vmax.f32 %v1452_v61, 0.0  ;;  %v2784_v21 = vpop.xlane.xlu0 %2783  ;;  %v3078_v39 = vadd.f32 %v4352_v25, %v2908_v19 }
 0x27c   :  { %v2515_v58 = vunpack.c.l.bf16 %v2385_v11  ;;  %v2320_v5 = vmax.f32 %v2154_v1, 0.0  ;;  %v3016_v26 = vadd.f32 %v4352_v25, %v2784_v21 }
 0x27d   :  { %v1785_v43 = vpack.c.bf16 %v1686_v8, %v1685_v23  ;;  %v3446_v33 = vperm.slane %v3078_v39, %v4484_v49  ;;  %v1998_v34 = vpop.f32.mrf.mxu1 }
 0x27e   :  { %v2448_v35 = vpack.c.bf16 %v2320_v5, %v2320_v5  ;;  %v3326_v32 = vperm.slane %v3016_v26, %v4527_v22  ;;  %v1999_v24 = vadd.f32 %v4621_v57, %v1998_v34  ;;  %v1611_v45 = vpop.f32.mrf.mxu2  ;;  %v2646_v18 = vmul.f32 %v4648_v12, %v2515_v58 }
 0x27f   :  { %v3447_v6 = vsel %vm3273_vm9, %v3446_v33, %v3445_v60  ;;  %v1612_v46 = vadd.f32 %v4726_v48, %v1611_v45 }
 0x280   :  { %v3327_v50 = vsel %vm3281_vm11, %v3326_v32, %v3325_v20  ;;  %v2258_v51 = vmax.f32 %v1999_v24, 0.0  ;;  %2037 = vmatmul.bf16.gmra.mxu1 %v1785_v43  ;;  %2813 = vadd.xlane.f32.xlu0 %v2646_v18  ;;  %v1454_v7 = vpop.f32.mrf.mxu0  ;;  %v2578_v4 = vunpack.c.l.bf16 %v2448_v35 }
 0x281   :  { %v1750_v54 = vmax.f32 %v1612_v46, 0.0  ;;  %2937 = vadd.xlane.f32.xlu2 %v2708_v13  ;;  %v2155_v14 = vpop.f32.mrf.mxu3  ;;  %v1455_v23 = vadd.f32 %v4726_v48, %v1454_v7 }
 0x282   :  { %v2386_v55 = vpack.c.bf16 %v2258_v51, %v2258_v51  ;;  %v2156_v38 = vadd.f32 %v4621_v57, %v2155_v14  ;;  %v2709_v1 = vmul.f32 %v4648_v12, %v2578_v4 }
 0x283   :  { %v1817_v3 = vpack.c.bf16 %v1750_v54, %v1749_v53  ;;  %v2910_v29 = vpop.xlane.xlu0 %2909  ;;  %v1687_v34 = vmax.f32 %v1455_v23, 0.0 }
 0x284   :  { %v2516_v59 = vunpack.c.l.bf16 %v2386_v55  ;;  %v2321_v60 = vmax.f32 %v2156_v38, 0.0  ;;  %v3079_v30 = vadd.f32 %v4352_v25, %v2910_v29  ;;  %v2786_v9 = vpop.xlane.xlu1 %2785 }
 0x285   :  { %v3017_v20 = vadd.f32 %v4352_v25, %v2786_v9  ;;  %v2000_v37 = vpop.f32.mrf.mxu1 }
 0x286   :  { %v3448_v61 = vperm.slane %v3079_v30, %v4508_v44  ;;  %v2001_v10 = vadd.f32 %v4621_v57, %v2000_v37  ;;  %2197 = vmatmul.bf16.gmra.mxu3 %v1817_v3  ;;  %v1614_v11 = vpop.f32.mrf.mxu2  ;;  %v2647_v19 = vmul.f32 %v4648_v12, %v2516_v59  ;;  %v2449_v62 = vpack.c.bf16 %v2321_v60, %v2321_v60 }
 0x287   :  { %v3328_v8 = vperm.slane %v3017_v20, %v4549_v2  ;;  %v1615_v13 = vadd.f32 %v4726_v48, %v1614_v11 }
 0x288   :  { %v3449_v21 = vsel %vm3277_vm10, %v3448_v61, %v3447_v6  ;;  %v2259_v39 = vmax.f32 %v2001_v10, 0.0  ;;  %2939 = vadd.xlane.f32.xlu0 %v2709_v1  ;;  %2815 = vadd.xlane.f32.xlu1 %v2647_v19  ;;  %v1456_v58 = vpop.f32.mrf.mxu0  ;;  %v2579_v35 = vunpack.c.l.bf16 %v2449_v62 }
 0x289   :  { %v3329_v5 = vsel %vm3285_vm12, %v3328_v8, %v3327_v50  ;;  %v1457_v26 = vadd.f32 %v4726_v48, %v1456_v58  ;;  %v2158_v31 = vpop.f32.mrf.mxu3  ;;  %v1751_v9 = vmax.f32 %v1615_v13, 0.0 }
 0x28a   :  { %v2387_v43 = vpack.c.bf16 %v2259_v39, %v2259_v39  ;;  %v2159_v33 = vadd.f32 %v4621_v57, %v2158_v31  ;;  %v2710_v29 = vmul.f32 %v4648_v12, %v2579_v35 }
 0x28b   :  { %v1688_v32 = vmax.f32 %v1457_v26, 0.0  ;;  %v2788_v24 = vpop.xlane.xlu2 %2787 }
 0x28c   :  { %v2517_v45 = vunpack.c.l.bf16 %v2387_v43  ;;  %v2322_v18 = vmax.f32 %v2159_v33, 0.0  ;;  %v3018_v6 = vadd.f32 %v4352_v25, %v2788_v24  ;;  %v2912_v46 = vpop.xlane.xlu1 %2911 }
 0x28d   :  { %v1786_v51 = vpack.c.bf16 %v1688_v32, %v1687_v34  ;;  %v3080_v50 = vadd.f32 %v4352_v25, %v2912_v46  ;;  %v2003_v7 = vpop.f32.mrf.mxu1 }
 0x28e   :  { %v2450_v53 = vpack.c.bf16 %v2322_v18, %v2322_v18  ;;  %v3330_v54 = vperm.slane %v3018_v6, %v4561_v63  ;;  %v2004_v14 = vadd.f32 %v4621_v57, %v2003_v7  ;;  %v1616_v4 = vpop.f32.mrf.mxu2  ;;  %v2648_v55 = vmul.f32 %v4648_v12, %v2517_v45 }
 0x28f   :  { %v3450_v38 = vperm.slane %v3080_v50, %v4527_v22  ;;  %v1617_v3 = vadd.f32 %v4726_v48, %v1616_v4 }
 0x290   :  { %v3331_v59 = vsel %vm3289_vm13, %v3330_v54, %v3329_v5  ;;  %v2260_v60 = vmax.f32 %v2004_v14, 0.0  ;;  %2042 = vmatmul.bf16.gmra.mxu1 %v1786_v51  ;;  %2817 = vadd.xlane.f32.xlu2 %v2648_v55  ;;  %v1459_v30 = vpop.f32.mrf.mxu0  ;;  %v2580_v20 = vunpack.c.l.bf16 %v2450_v53 }
 0x291   :  { %v3451_v37 = vsel %vm3281_vm11, %v3450_v38, %v3449_v21  ;;  %v1752_v61 = vmax.f32 %v1617_v3, 0.0  ;;  %2941 = vadd.xlane.f32.xlu1 %v2710_v29  ;;  %v2160_v10 = vpop.f32.mrf.mxu3  ;;  %v1460_v32 = vadd.f32 %v4726_v48, %v1459_v30 }
 0x292   :  { %v2388_v11 = vpack.c.bf16 %v2260_v60, %v2260_v60  ;;  %v2161_v1 = vadd.f32 %v4621_v57, %v2160_v10  ;;  %v2711_v31 = vmul.f32 %v4648_v12, %v2580_v20 }
 0x293   :  { %v1818_v19 = vpack.c.bf16 %v1752_v61, %v1751_v9  ;;  %v2790_v23 = vpop.xlane.xlu0 %2789  ;;  %v1689_v54 = vmax.f32 %v1460_v32, 0.0 }
 0x294   :  { %v2518_v62 = vunpack.c.l.bf16 %v2388_v11  ;;  %v2323_v8 = vmax.f32 %v2161_v1, 0.0  ;;  %v3019_v39 = vadd.f32 %v4352_v25, %v2790_v23  ;;  %v2914_v58 = vpop.xlane.xlu2 %2913 }
 0x295   :  { %v3081_v5 = vadd.f32 %v4352_v25, %v2914_v58  ;;  %v2005_v26 = vpop.f32.mrf.mxu1 }
 0x296   :  { %v2451_v43 = vpack.c.bf16 %v2323_v8, %v2323_v8  ;;  %v3332_v21 = vperm.slane %v3019_v39, %v4565_v41  ;;  %v2006_v33 = vadd.f32 %v4621_v57, %v2005_v26  ;;  %2202 = vmatmul.bf16.gmra.mxu3 %v1818_v19  ;;  %v1619_v34 = vpop.f32.mrf.mxu2  ;;  %v2649_v35 = vmul.f32 %v4648_v12, %v2518_v62 }
 0x297   :  { %v3452_v24 = vperm.slane %v3081_v5, %v4549_v2  ;;  %v1620_v60 = vadd.f32 %v4726_v48, %v1619_v34 }
 0x298   :  { %v3333_v45 = vsel %vm3293_vm14, %v3332_v21, %v3331_v59  ;;  %v2261_v18 = vmax.f32 %v2006_v33, 0.0  ;;  %2819 = vadd.xlane.f32.xlu0 %v2649_v35  ;;  %2943 = vadd.xlane.f32.xlu2 %v2711_v31  ;;  %v1461_v6 = vpop.f32.mrf.mxu0  ;;  %v2581_v50 = vunpack.c.l.bf16 %v2451_v43 }
 0x299   :  { %v3453_v46 = vsel %vm3285_vm12, %v3452_v24, %v3451_v37  ;;  %v1462_v13 = vadd.f32 %v4726_v48, %v1461_v6  ;;  %v2163_v51 = vpop.f32.mrf.mxu3  ;;  %v1753_v5 = vmax.f32 %v1620_v60, 0.0 }
 0x29a   :  { %v2389_v7 = vpack.c.bf16 %v2261_v18, %v2261_v18  ;;  %v2164_v53 = vadd.f32 %v4621_v57, %v2163_v51  ;;  %v2712_v11 = vmul.f32 %v4648_v12, %v2581_v50 }
 0x29b   :  { %v1690_v14 = vmax.f32 %v1462_v13, 0.0  ;;  %v2916_v4 = vpop.xlane.xlu0 %2915  ;;  %v2792_v55 = vpop.xlane.xlu1 %2791 }
 0x29c   :  { %v2519_v38 = vunpack.c.l.bf16 %v2389_v7  ;;  %v2324_v3 = vmax.f32 %v2164_v53, 0.0  ;;  %v3082_v29 = vadd.f32 %v4352_v25, %v2916_v4  ;;  %v3020_v59 = vadd.f32 %v4352_v25, %v2792_v55 }
 0x29d   :  { %v1787_v30 = vpack.c.bf16 %v1690_v14, %v1689_v54  ;;  %v2008_v9 = vpop.f32.mrf.mxu1 }
 0x29e   :  { %v3454_v20 = vperm.slane %v3082_v29, %v4561_v63  ;;  %v3334_v37 = vperm.slane %v3020_v59, %v4600_v17  ;;  %v2009_v61 = vadd.f32 %v4621_v57, %v2008_v9  ;;  %v1621_v10 = vpop.f32.mrf.mxu2  ;;  %v2452_v1 = vpack.c.bf16 %v2324_v3, %v2324_v3  ;;  %v4848_v9 = vld [vmem:[%s5187_s5] ss:$0 sm:$0xff] }
 0x29f   :  { %v1622_v19 = vadd.f32 %v4726_v48, %v1621_v10  ;;  %v2650_v23 = vmul.f32 %v4648_v12, %v2519_v38 }
 0x2a0   :  { %v3455_v62 = vsel %vm3289_vm13, %v3454_v20, %v3453_v46  ;;  %v3335_v8 = vsel %vm3297_vm15, %v3334_v37, %v3333_v45  ;;  %v2262_v39 = vmax.f32 %v2009_v61, 0.0  ;;  %2047 = vmatmul.bf16.gmra.mxu1 %v1787_v30  ;;  %2945 = vadd.xlane.f32.xlu0 %v2712_v11  ;;  %v1464_v58 = vpop.f32.mrf.mxu0  ;;  %v2582_v33 = vunpack.c.l.bf16 %v2452_v1 }
 0x2a1   :  { %v1754_v26 = vmax.f32 %v1622_v19, 0.0  ;;  %2821 = vadd.xlane.f32.xlu1 %v2650_v23  ;;  %v2165_v31 = vpop.f32.mrf.mxu3  ;;  %v1465_v54 = vadd.f32 %v4726_v48, %v1464_v58 }
 0x2a2   :  { %v2390_v43 = vpack.c.bf16 %v2262_v39, %v2262_v39  ;;  %v2166_v21 = vadd.f32 %v4621_v57, %v2165_v31  ;;  %v2713_v4 = vmul.f32 %v4648_v12, %v2582_v33 }
 0x2a3   :  { %v1819_v34 = vpack.c.bf16 %v1754_v26, %v1753_v5  ;;  %v2794_v35 = vpop.xlane.xlu2 %2793  ;;  %v1691_v37 = vmax.f32 %v1465_v54, 0.0 }
 0x2a4   :  { %v2520_v32 = vunpack.c.l.bf16 %v2390_v43  ;;  %v2325_v24 = vmax.f32 %v2166_v21, 0.0  ;;  %v3021_v18 = vadd.f32 %v4352_v25, %v2794_v35  ;;  %v2918_v6 = vpop.xlane.xlu1 %2917 }
 0x2a5   :  { %v3083_v45 = vadd.f32 %v4352_v25, %v2918_v6  ;;  %v2010_v46 = vpop.f32.mrf.mxu1 }
 0x2a6   :  { %v2453_v13 = vpack.c.bf16 %v2325_v24, %v2325_v24  ;;  %v3336_v51 = vperm.slane %v3021_v18, %v4616_v40  ;;  %v2011_v50 = vadd.f32 %v4621_v57, %v2010_v46  ;;  %2207 = vmatmul.bf16.gmra.mxu3 %v1819_v34  ;;  %v1624_v7 = vpop.f32.mrf.mxu2  ;;  %v2651_v53 = vmul.f32 %v4648_v12, %v2520_v32 }
 0x2a7   :  { %v3456_v14 = vperm.slane %v3083_v45, %v4565_v41 }
 0x2a8   :  { %v3337_v55 = vsel %vm3301_vm0, %v3336_v51, %v3335_v8  ;;  %v2263_v38 = vmax.f32 %v2011_v50, 0.0  ;;  %2823 = vadd.xlane.f32.xlu2 %v2651_v53  ;;  %v1466_v3 = vpop.f32.mrf.mxu0  ;;  %v2583_v29 = vunpack.c.l.bf16 %v2453_v13  ;;  %v1625_v8 = vadd.f32 %v4726_v48, %v1624_v7 }
 0x2a9   :  { %v3457_v59 = vsel %vm3293_vm14, %v3456_v14, %v3455_v62  ;;  %2947 = vadd.xlane.f32.xlu1 %v2713_v4  ;;  %v1467_v57 = vadd.f32 %v4726_v48, %v1466_v3  ;;  %v2168_v60 = vpop.f32.mrf.mxu3 }
 0x2aa   :  { %v2391_v30 = vpack.c.bf16 %v2263_v38, %v2263_v38  ;;  %v2169_v20 = vadd.f32 %v4848_v9, %v2168_v60  ;;  %v2714_v5 = vmul.f32 %v4648_v12, %v2583_v29  ;;  %v1755_v6 = vmax.f32 %v1625_v8, 0.0 }
 0x2ab   :  { %v1692_v61 = vmax.f32 %v1467_v57, 0.0  ;;  %v2796_v10 = vpop.xlane.xlu0 %2795  ;;  %v2920_v11 = vpop.xlane.xlu2 %2919 }
 0x2ac   :  { %v2521_v1 = vunpack.c.l.bf16 %v2391_v30  ;;  %v2326_v19 = vmax.f32 %v2169_v20, 0.0  ;;  %v3022_v23 = vadd.f32 %v4352_v25, %v2796_v10  ;;  %v3084_v62 = vadd.f32 %v4352_v25, %v2920_v11 }
 0x2ad   :  { %v1788_v39 = vpack.c.bf16 %v1692_v61, %v1691_v37  ;;  %v2013_v58 = vpop.f32.mrf.mxu1 }
 0x2ae   :  { %v2454_v26 = vpack.c.bf16 %v2326_v19, %v2326_v19  ;;  %v3338_v31 = vperm.slane %v3022_v23, %v4637_v15  ;;  %v3458_v43 = vperm.slane %v3084_v62, %v4600_v17  ;;  %v2014_v21 = vadd.f32 %v4848_v9, %v2013_v58  ;;  %v1626_v33 = vpop.f32.mrf.mxu2 }
 0x2af   :  { %v1627_v34 = vadd.f32 %v4726_v48, %v1626_v33  ;;  %v2652_v35 = vmul.f32 %v4648_v12, %v2521_v1 }
 0x2b0   :  { %v3339_v32 = vsel %vm3305_vm3, %v3338_v31, %v3337_v55  ;;  %v3459_v24 = vsel %vm3297_vm15, %v3458_v43, %v3457_v59  ;;  %v2264_v18 = vmax.f32 %v2014_v21, 0.0  ;;  %2052 = vmatmul.bf16.gmra.mxu1 %v1788_v39  ;;  %2949 = vadd.xlane.f32.xlu2 %v2714_v5  ;;  %v2584_v45 = vunpack.c.l.bf16 %v2454_v26  ;;  %v4882_v43 = vld [vmem:[%s5188_s6] ss:$0 sm:$0xff]  ;;  %s3852_s6 = smov [#allocation11]  }
 0x2b1   :  { %v1756_v46 = vmax.f32 %v1627_v34, 0.0  ;;  %2825 = vadd.xlane.f32.xlu0 %v2652_v35  ;;  %v2170_v13 = vpop.f32.mrf.mxu3  ;;  %s3546_s23 = sshll.u32 %s3852_s6, 4  ;;  %s3547_s23 = int_to_ptr.vmem [resolvable:$true] %s3546_s23 }
 0x2b2   :  { %v2392_v51 = vpack.c.bf16 %v2264_v18, %v2264_v18  ;;  %v2171_v50 = vadd.f32 %v4848_v9, %v2170_v13  ;;  %v2715_v3 = vmul.f32 %v4648_v12, %v2584_v45 }
 0x2b3   :  { %v1820_v7 = vpack.c.bf16 %v1756_v46, %v1755_v6  ;;  %v2922_v53 = vpop.xlane.xlu0 %2921 }
 0x2b4   :  { %v2522_v48 = vunpack.c.l.bf16 %v2392_v51  ;;  %v2327_v54 = vmax.f32 %v2171_v50, 0.0  ;;  %v3085_v14 = vadd.f32 %v4352_v25, %v2922_v53  ;;  %v2798_v4 = vpop.xlane.xlu1 %2797 }
 0x2b5   :  { %v3023_v55 = vadd.f32 %v4352_v25, %v2798_v4  ;;  %v2015_v38 = vpop.f32.mrf.mxu1 }
 0x2b6   :  { %v2455_v29 = vpack.c.bf16 %v2327_v54, %v2327_v54  ;;  %v3460_v59 = vperm.slane %v3085_v14, %v4616_v40  ;;  %v2016_v57 = vadd.f32 %v4848_v9, %v2015_v38  ;;  %2212 = vmatmul.bf16.gmra.mxu3 %v1820_v7  ;;  %v2653_v60 = vmul.f32 %v4648_v12, %v2522_v48 }
 0x2b7   :  { %v3340_v30 = vperm.slane %v3023_v55, %v4657_v16 }
 0x2b8   :  { %v3461_v20 = vsel %vm3301_vm0, %v3460_v59, %v3459_v24  ;;  %v2265_v37 = vmax.f32 %v2016_v57, 0.0  ;;  %2951 = vadd.xlane.f32.xlu2 %v2715_v3  ;;  %2827 = vadd.xlane.f32.xlu1 %v2653_v60  ;;  %v2585_v11 = vunpack.c.l.bf16 %v2455_v29 }
 0x2b9   :  { %v3341_v61 = vsel %vm3309_vm1, %v3340_v30, %v3339_v32  ;;  %v2173_v10 = vpop.f32.mrf.mxu3 }
 0x2ba   :  { %v4874_v1 = vsel %vm100_vm2, %v3341_v61, %v4669_v0  ;;  %v2393_v19 = vpack.c.bf16 %v2265_v37, %v2265_v37  ;;  %v2174_v23 = vadd.f32 %v4848_v9, %v2173_v10  ;;  %v2716_v21 = vmul.f32 %v4882_v43, %v2585_v11 }
 0x2bb   :  { %v2800_v62 = vpop.xlane.xlu2 %2799  ;;  %vm5193_vm2 = vcmask 1042434  }
 0x2bc   :  { %v2523_v12 = vunpack.c.l.bf16 %v2393_v19  ;;  %v2328_v8 = vmax.f32 %v2174_v23, 0.0  ;;  %v2924_v39 = vpop.xlane.xlu1 %2923  ;;  %v3024_v18 = vadd.f32 %v4352_v25, %v2800_v62 }
 0x2bd   :  { %v3086_v58 = vadd.f32 %v4352_v25, %v2924_v39  ;;  %v2018_v5 = vpop.f32.mrf.mxu1 }
 0x2be   :  { %v2456_v26 = vpack.c.bf16 %v2328_v8, %v2328_v8  ;;  %v2019_v31 = vadd.f32 %v4848_v9, %v2018_v5  ;;  %v2654_v0 = vmul.f32 %v4882_v43, %v2523_v12  ;;  %v3342_v53 = vperm.slane %v3024_v18, %v4363_v47 }
 0x2bf   :  { %v3462_v33 = vperm.slane %v3086_v58, %v4637_v15 }
 0x2c0   :  { %v2586_v34 = vunpack.c.l.bf16 %v2456_v26  ;;  %v2266_v35 = vmax.f32 %v2019_v31, 0.0  ;;  %2829 = vadd.xlane.f32.xlu2 %v2654_v0  ;;  %2953 = vadd.xlane.f32.xlu1 %v2716_v21 }
 0x2c1   :  { %v3463_v32 = vsel %vm3305_vm3, %v3462_v33, %v3461_v20  ;;  %v4888_v24 = vpop.f32.mrf.mxu3 }
 0x2c2   :  { %v2394_v6 = vpack.c.bf16 %v2266_v35, %v2266_v35  ;;  %v2717_v45 = vmul.f32 %v4882_v43, %v2586_v34 }
 0x2c3   :  { %v2802_v46 = vpop.xlane.xlu0 %2801 }
 0x2c4   :  { %v3025_v13 = vadd.f32 %v4352_v25, %v2802_v46  ;;  %v2926_v51 = vpop.xlane.xlu2 %2925  ;;  %2955 = vadd.xlane.f32.xlu0 %v2717_v45  ;;  %v2524_v48 = vunpack.c.l.bf16 %v2394_v6 }
 0x2c5   :  { %v3087_v50 = vadd.f32 %v4352_v25, %v2926_v51  ;;  %v2020_v7 = vpop.f32.mrf.mxu1 }
 0x2c6   :  { %v3343_v54 = vperm.slane %v3025_v13, %v4374_v28  ;;  %v2021_v14 = vadd.f32 %v4848_v9, %v2020_v7  ;;  %v2655_v60 = vmul.f32 %v4882_v43, %v2524_v48 }
 0x2c7   :  { %v3464_v4 = vperm.slane %v3087_v50, %v4657_v16 }
 0x2c8   :  { %v3344_v55 = vsel %vm3253_vm4, %v3343_v54, %v3342_v53  ;;  %v2267_v38 = vmax.f32 %v2021_v14, 0.0 }
 0x2c9   :  { %v4900_v3 = vsel %vm3309_vm1, %v3464_v4, %v3463_v32  ;;  %v2178_v29 = vpop.f32.mrf.mxu3 }
 0x2ca   :  { %v2395_v59 = vpack.c.bf16 %v2267_v38, %v2267_v38  ;;  %v2179_v57 = vadd.f32 %v4848_v9, %v2178_v29 }
 0x2cb   :  { %v2804_v30 = vpop.xlane.xlu1 %2803  ;;  %v2928_v8 = vpop.xlane.xlu0 %2927 }
 0x2cc   :  { %v2525_v20 = vunpack.c.l.bf16 %v2395_v59  ;;  %v2330_v37 = vmax.f32 %v2179_v57, 0.0  ;;  %v3026_v61 = vadd.f32 %v4352_v25, %v2804_v30  ;;  %2831 = vadd.xlane.f32.xlu0 %v2655_v60  ;;  %v3088_v21 = vadd.f32 %v4352_v25, %v2928_v8 }
 0x2cd   :  { %v2023_v10 = vpop.f32.mrf.mxu1 }
 0x2ce   :  { %v2458_v11 = vpack.c.bf16 %v2330_v37, %v2330_v37  ;;  %v3345_v19 = vperm.slane %v3026_v61, %v4401_v56  ;;  %v2024_v23 = vadd.f32 %v4848_v9, %v2023_v10  ;;  %v2656_v62 = vmul.f32 %v4882_v43, %v2525_v20 }
 0x2cf   :  { %v3466_v7 = vperm.slane %v3088_v21, %v4363_v47 }
 0x2d0   :  { %v2588_v12 = vunpack.c.l.bf16 %v2458_v11  ;;  %v3346_v39 = vsel %vm3257_vm5, %v3345_v19, %v3344_v55  ;;  %v2268_v58 = vmax.f32 %v2024_v23, 0.0  ;;  %2833 = vadd.xlane.f32.xlu1 %v2656_v62 }
 0x2d1   :  { %v2180_v5 = vpop.f32.mrf.mxu3 }
 0x2d2   :  { %v2396_v26 = vpack.c.bf16 %v2268_v58, %v2268_v58  ;;  %v2181_v31 = vadd.f32 %v4848_v9, %v2180_v5  ;;  %v2719_v0 = vmul.f32 %v4882_v43, %v2588_v12 }
 0x2d3   :  { %v2806_v33 = vpop.xlane.xlu2 %2805 }
 0x2d4   :  { %v2526_v34 = vunpack.c.l.bf16 %v2396_v26  ;;  %v2331_v35 = vmax.f32 %v2181_v31, 0.0  ;;  %v3027_v32 = vadd.f32 %v4352_v25, %v2806_v33  ;;  %v2930_v18 = vpop.xlane.xlu1 %2929  ;;  %2959 = vadd.xlane.f32.xlu0 %v2719_v0 }
 0x2d5   :  { %v3089_v6 = vadd.f32 %v4352_v25, %v2930_v18  ;;  %v2025_v45 = vpop.f32.mrf.mxu1 }
 0x2d6   :  { %v2459_v46 = vpack.c.bf16 %v2331_v35, %v2331_v35  ;;  %v3347_v13 = vperm.slane %v3027_v32, %v4413_v27  ;;  %v2026_v51 = vadd.f32 %v4848_v9, %v2025_v45  ;;  %v2657_v50 = vmul.f32 %v4882_v43, %v2526_v34 }
 0x2d7   :  { %v3467_v53 = vperm.slane %v3089_v6, %v4374_v28 }
 0x2d8   :  { %v2589_v48 = vunpack.c.l.bf16 %v2459_v46  ;;  %v3348_v54 = vsel %vm3261_vm6, %v3347_v13, %v3346_v39  ;;  %v2269_v14 = vmax.f32 %v2026_v51, 0.0  ;;  %2835 = vadd.xlane.f32.xlu2 %v2657_v50 }
 0x2d9   :  { %v3468_v4 = vsel %vm3253_vm4, %v3467_v53, %v3466_v7  ;;  %v2183_v55 = vpop.f32.mrf.mxu3 }
 0x2da   :  { %v2397_v38 = vpack.c.bf16 %v2269_v14, %v2269_v14  ;;  %v2184_v29 = vadd.f32 %v4848_v9, %v2183_v55  ;;  %v2720_v59 = vmul.f32 %v4882_v43, %v2589_v48 }
 0x2db   :  { %v2808_v57 = vpop.xlane.xlu0 %2807  ;;  %v2932_v60 = vpop.xlane.xlu2 %2931 }
 0x2dc   :  { %v2527_v30 = vunpack.c.l.bf16 %v2397_v38  ;;  %v2332_v20 = vmax.f32 %v2184_v29, 0.0  ;;  %v3028_v37 = vadd.f32 %v4352_v25, %v2808_v57  ;;  %v3090_v61 = vadd.f32 %v4352_v25, %v2932_v60  ;;  %2961 = vadd.xlane.f32.xlu1 %v2720_v59 }
 0x2dd   :  { %v2028_v10 = vpop.f32.mrf.mxu1 }
 0x2de   :  { %v2460_v11 = vpack.c.bf16 %v2332_v20, %v2332_v20  ;;  %v3349_v19 = vperm.slane %v3028_v37, %v4435_v52  ;;  %v3469_v23 = vperm.slane %v3090_v61, %v4401_v56  ;;  %v2029_v62 = vadd.f32 %v4848_v9, %v2028_v10 }
 0x2df   :  { %v2658_v12 = vmul.f32 %v4882_v43, %v2527_v30 }
 0x2e0   :  { %v2590_v8 = vunpack.c.l.bf16 %v2460_v11  ;;  %v3350_v39 = vsel %vm3265_vm7, %v3349_v19, %v3348_v54  ;;  %v3470_v58 = vsel %vm3257_vm5, %v3469_v23, %v3468_v4  ;;  %v2270_v5 = vmax.f32 %v2029_v62, 0.0 }
 0x2e1   :  { %2837 = vadd.xlane.f32.xlu0 %v2658_v12  ;;  %v2185_v26 = vpop.f32.mrf.mxu3 }
 0x2e2   :  { %v2398_v31 = vpack.c.bf16 %v2270_v5, %v2270_v5  ;;  %v2186_v0 = vadd.f32 %v4848_v9, %v2185_v26  ;;  %v2721_v21 = vmul.f32 %v4882_v43, %v2590_v8 }
 0x2e3   :  { %v2934_v33 = vpop.xlane.xlu0 %2933 }
 0x2e4   :  { %v2528_v34 = vunpack.c.l.bf16 %v2398_v31  ;;  %v2333_v35 = vmax.f32 %v2186_v0, 0.0  ;;  %v3091_v32 = vadd.f32 %v4352_v25, %v2934_v33  ;;  %v2810_v18 = vpop.xlane.xlu1 %2809  ;;  %2963 = vadd.xlane.f32.xlu2 %v2721_v21 }
 0x2e5   :  { %v3029_v6 = vadd.f32 %v4352_v25, %v2810_v18  ;;  %v2030_v45 = vpop.f32.mrf.mxu1 }
 0x2e6   :  { %v2461_v46 = vpack.c.bf16 %v2333_v35, %v2333_v35  ;;  %v3471_v13 = vperm.slane %v3091_v32, %v4413_v27  ;;  %v2031_v51 = vadd.f32 %v4848_v9, %v2030_v45  ;;  %v2659_v50 = vmul.f32 %v4882_v43, %v2528_v34 }
 0x2e7   :  { %v3351_v7 = vperm.slane %v3029_v6, %v4461_v36 }
 0x2e8   :  { %v2591_v53 = vunpack.c.l.bf16 %v2461_v46  ;;  %v3472_v48 = vsel %vm3261_vm6, %v3471_v13, %v3470_v58  ;;  %v2271_v54 = vmax.f32 %v2031_v51, 0.0  ;;  %2839 = vadd.xlane.f32.xlu1 %v2659_v50 }
 0x2e9   :  { %v3352_v14 = vsel %vm3269_vm8, %v3351_v7, %v3350_v39  ;;  %v2188_v4 = vpop.f32.mrf.mxu3 }
 0x2ea   :  { %v2399_v55 = vpack.c.bf16 %v2271_v54, %v2271_v54  ;;  %v2189_v38 = vadd.f32 %v4848_v9, %v2188_v4  ;;  %v2722_v29 = vmul.f32 %v4882_v43, %v2591_v53 }
 0x2eb   :  { %v2812_v59 = vpop.xlane.xlu2 %2811 }
 0x2ec   :  { %v2529_v57 = vunpack.c.l.bf16 %v2399_v55  ;;  %v2334_v60 = vmax.f32 %v2189_v38, 0.0  ;;  %v3030_v30 = vadd.f32 %v4352_v25, %v2812_v59  ;;  %v2936_v20 = vpop.xlane.xlu1 %2935  ;;  %2965 = vadd.xlane.f32.xlu0 %v2722_v29 }
 0x2ed   :  { %v3092_v37 = vadd.f32 %v4352_v25, %v2936_v20  ;;  %v2033_v61 = vpop.f32.mrf.mxu1 }
 0x2ee   :  { %v2462_v10 = vpack.c.bf16 %v2334_v60, %v2334_v60  ;;  %v3353_v11 = vperm.slane %v3030_v30, %v4484_v49  ;;  %v2034_v19 = vadd.f32 %v4848_v9, %v2033_v61  ;;  %v2660_v23 = vmul.f32 %v4882_v43, %v2529_v57 }
 0x2ef   :  { %v3473_v62 = vperm.slane %v3092_v37, %v4435_v52 }
 0x2f0   :  { %v2592_v12 = vunpack.c.l.bf16 %v2462_v10  ;;  %v3354_v8 = vsel %vm3273_vm9, %v3353_v11, %v3352_v14  ;;  %v2272_v39 = vmax.f32 %v2034_v19, 0.0  ;;  %2841 = vadd.xlane.f32.xlu2 %v2660_v23 }
 0x2f1   :  { %v3474_v58 = vsel %vm3265_vm7, %v3473_v62, %v3472_v48  ;;  %v2190_v5 = vpop.f32.mrf.mxu3 }
 0x2f2   :  { %v2400_v26 = vpack.c.bf16 %v2272_v39, %v2272_v39  ;;  %v2191_v31 = vadd.f32 %v4848_v9, %v2190_v5  ;;  %v2723_v0 = vmul.f32 %v4882_v43, %v2592_v12 }
 0x2f3   :  { %v2814_v21 = vpop.xlane.xlu0 %2813 }
 0x2f4   :  { %v2530_v33 = vunpack.c.l.bf16 %v2400_v26  ;;  %v2335_v34 = vmax.f32 %v2191_v31, 0.0  ;;  %v3031_v35 = vadd.f32 %v4352_v25, %v2814_v21  ;;  %v2938_v32 = vpop.xlane.xlu2 %2937  ;;  %2967 = vadd.xlane.f32.xlu1 %v2723_v0 }
 0x2f5   :  { %v3093_v18 = vadd.f32 %v4352_v25, %v2938_v32  ;;  %v2035_v6 = vpop.f32.mrf.mxu1 }
 0x2f6   :  { %v2463_v45 = vpack.c.bf16 %v2335_v34, %v2335_v34  ;;  %v3355_v46 = vperm.slane %v3031_v35, %v4508_v44  ;;  %v2036_v13 = vadd.f32 %v4848_v9, %v2035_v6  ;;  %v2661_v51 = vmul.f32 %v4882_v43, %v2530_v33 }
 0x2f7   :  { %v3475_v50 = vperm.slane %v3093_v18, %v4461_v36 }
 0x2f8   :  { %v2593_v7 = vunpack.c.l.bf16 %v2463_v45  ;;  %v3356_v53 = vsel %vm3277_vm10, %v3355_v46, %v3354_v8  ;;  %v2273_v48 = vmax.f32 %v2036_v13, 0.0  ;;  %2843 = vadd.xlane.f32.xlu0 %v2661_v51 }
 0x2f9   :  { %v3476_v54 = vsel %vm3269_vm8, %v3475_v50, %v3474_v58  ;;  %v2193_v14 = vpop.f32.mrf.mxu3 }
 0x2fa   :  { %v2401_v4 = vpack.c.bf16 %v2273_v48, %v2273_v48  ;;  %v2194_v55 = vadd.f32 %v4848_v9, %v2193_v14  ;;  %v2724_v38 = vmul.f32 %v4882_v43, %v2593_v7 }
 0x2fb   :  { %v2940_v29 = vpop.xlane.xlu0 %2939  ;;  %v2816_v59 = vpop.xlane.xlu1 %2815 }
 0x2fc   :  { %v2531_v57 = vunpack.c.l.bf16 %v2401_v4  ;;  %v2336_v60 = vmax.f32 %v2194_v55, 0.0  ;;  %v3094_v30 = vadd.f32 %v4352_v25, %v2940_v29  ;;  %v3032_v20 = vadd.f32 %v4352_v25, %v2816_v59  ;;  %2969 = vadd.xlane.f32.xlu2 %v2724_v38 }
 0x2fd   :  { %v2038_v37 = vpop.f32.mrf.mxu1 }
 0x2fe   :  { %v2464_v61 = vpack.c.bf16 %v2336_v60, %v2336_v60  ;;  %v3477_v10 = vperm.slane %v3094_v30, %v4484_v49  ;;  %v3357_v11 = vperm.slane %v3032_v20, %v4527_v22  ;;  %v2039_v19 = vadd.f32 %v4848_v9, %v2038_v37 }
 0x2ff   :  { %v2662_v23 = vmul.f32 %v4882_v43, %v2531_v57 }
 0x300   :  { %v2594_v62 = vunpack.c.l.bf16 %v2464_v61  ;;  %v3478_v12 = vsel %vm3273_vm9, %v3477_v10, %v3476_v54  ;;  %v3358_v8 = vsel %vm3281_vm11, %v3357_v11, %v3356_v53  ;;  %v2274_v39 = vmax.f32 %v2039_v19, 0.0 }
 0x301   :  { %2845 = vadd.xlane.f32.xlu1 %v2662_v23  ;;  %v2195_v58 = vpop.f32.mrf.mxu3 }
 0x302   :  { %v2402_v5 = vpack.c.bf16 %v2274_v39, %v2274_v39  ;;  %v2196_v26 = vadd.f32 %v4848_v9, %v2195_v58  ;;  %v2725_v31 = vmul.f32 %v4882_v43, %v2594_v62 }
 0x303   :  { %v2818_v0 = vpop.xlane.xlu2 %2817 }
 0x304   :  { %v2532_v21 = vunpack.c.l.bf16 %v2402_v5  ;;  %v2337_v33 = vmax.f32 %v2196_v26, 0.0  ;;  %v3033_v34 = vadd.f32 %v4352_v25, %v2818_v0  ;;  %v2942_v35 = vpop.xlane.xlu1 %2941  ;;  %2971 = vadd.xlane.f32.xlu0 %v2725_v31 }
 0x305   :  { %v3095_v32 = vadd.f32 %v4352_v25, %v2942_v35  ;;  %v2040_v18 = vpop.f32.mrf.mxu1 }
 0x306   :  { %v2465_v6 = vpack.c.bf16 %v2337_v33, %v2337_v33  ;;  %v3359_v45 = vperm.slane %v3033_v34, %v4549_v2  ;;  %v2041_v46 = vadd.f32 %v4848_v9, %v2040_v18  ;;  %v2663_v13 = vmul.f32 %v4882_v43, %v2532_v21 }
 0x307   :  { %v3479_v51 = vperm.slane %v3095_v32, %v4508_v44 }
 0x308   :  { %v2595_v50 = vunpack.c.l.bf16 %v2465_v6  ;;  %v3360_v7 = vsel %vm3285_vm12, %v3359_v45, %v3358_v8  ;;  %v2275_v53 = vmax.f32 %v2041_v46, 0.0  ;;  %2847 = vadd.xlane.f32.xlu2 %v2663_v13 }
 0x309   :  { %v3480_v48 = vsel %vm3277_vm10, %v3479_v51, %v3478_v12  ;;  %v2198_v54 = vpop.f32.mrf.mxu3 }
 0x30a   :  { %v2403_v14 = vpack.c.bf16 %v2275_v53, %v2275_v53  ;;  %v2199_v4 = vadd.f32 %v4848_v9, %v2198_v54  ;;  %v2726_v55 = vmul.f32 %v4882_v43, %v2595_v50 }
 0x30b   :  { %v2820_v38 = vpop.xlane.xlu0 %2819  ;;  %v2944_v29 = vpop.xlane.xlu2 %2943 }
 0x30c   :  { %v2533_v59 = vunpack.c.l.bf16 %v2403_v14  ;;  %v2338_v57 = vmax.f32 %v2199_v4, 0.0  ;;  %v3034_v60 = vadd.f32 %v4352_v25, %v2820_v38  ;;  %v3096_v30 = vadd.f32 %v4352_v25, %v2944_v29  ;;  %2973 = vadd.xlane.f32.xlu1 %v2726_v55 }
 0x30d   :  { %v2043_v20 = vpop.f32.mrf.mxu1 }
 0x30e   :  { %v2466_v37 = vpack.c.bf16 %v2338_v57, %v2338_v57  ;;  %v3361_v61 = vperm.slane %v3034_v60, %v4561_v63  ;;  %v3481_v10 = vperm.slane %v3096_v30, %v4527_v22  ;;  %v2044_v11 = vadd.f32 %v4848_v9, %v2043_v20 }
 0x30f   :  { %v2664_v19 = vmul.f32 %v4882_v43, %v2533_v59 }
 0x310   :  { %v2596_v23 = vunpack.c.l.bf16 %v2466_v37  ;;  %v3362_v62 = vsel %vm3289_vm13, %v3361_v61, %v3360_v7  ;;  %v3482_v12 = vsel %vm3281_vm11, %v3481_v10, %v3480_v48  ;;  %v2276_v8 = vmax.f32 %v2044_v11, 0.0 }
 0x311   :  { %2849 = vadd.xlane.f32.xlu0 %v2664_v19  ;;  %v2200_v39 = vpop.f32.mrf.mxu3 }
 0x312   :  { %v2404_v58 = vpack.c.bf16 %v2276_v8, %v2276_v8  ;;  %v2201_v5 = vadd.f32 %v4848_v9, %v2200_v39  ;;  %v2727_v26 = vmul.f32 %v4882_v43, %v2596_v23 }
 0x313   :  { %v2946_v31 = vpop.xlane.xlu0 %2945 }
 0x314   :  { %v2534_v0 = vunpack.c.l.bf16 %v2404_v58  ;;  %v2339_v21 = vmax.f32 %v2201_v5, 0.0  ;;  %v3097_v33 = vadd.f32 %v4352_v25, %v2946_v31  ;;  %v2822_v34 = vpop.xlane.xlu1 %2821  ;;  %2975 = vadd.xlane.f32.xlu2 %v2727_v26 }
 0x315   :  { %v3035_v35 = vadd.f32 %v4352_v25, %v2822_v34  ;;  %v2045_v32 = vpop.f32.mrf.mxu1 }
 0x316   :  { %v2467_v18 = vpack.c.bf16 %v2339_v21, %v2339_v21  ;;  %v3483_v6 = vperm.slane %v3097_v33, %v4549_v2  ;;  %v2046_v45 = vadd.f32 %v4848_v9, %v2045_v32  ;;  %v2665_v46 = vmul.f32 %v4882_v43, %v2534_v0 }
 0x317   :  { %v3363_v13 = vperm.slane %v3035_v35, %v4565_v41 }
 0x318   :  { %v2597_v51 = vunpack.c.l.bf16 %v2467_v18  ;;  %v3484_v50 = vsel %vm3285_vm12, %v3483_v6, %v3482_v12  ;;  %v2277_v7 = vmax.f32 %v2046_v45, 0.0  ;;  %2851 = vadd.xlane.f32.xlu1 %v2665_v46 }
 0x319   :  { %v3364_v53 = vsel %vm3293_vm14, %v3363_v13, %v3362_v62  ;;  %v2203_v48 = vpop.f32.mrf.mxu3 }
 0x31a   :  { %v2405_v54 = vpack.c.bf16 %v2277_v7, %v2277_v7  ;;  %v2204_v14 = vadd.f32 %v4848_v9, %v2203_v48  ;;  %v2728_v4 = vmul.f32 %v4882_v43, %v2597_v51 }
 0x31b   :  { %v2824_v55 = vpop.xlane.xlu2 %2823 }
 0x31c   :  { %v2535_v38 = vunpack.c.l.bf16 %v2405_v54  ;;  %v2340_v29 = vmax.f32 %v2204_v14, 0.0  ;;  %v3036_v59 = vadd.f32 %v4352_v25, %v2824_v55  ;;  %v2948_v57 = vpop.xlane.xlu1 %2947  ;;  %2977 = vadd.xlane.f32.xlu0 %v2728_v4 }
 0x31d   :  { %v3098_v60 = vadd.f32 %v4352_v25, %v2948_v57  ;;  %v2048_v30 = vpop.f32.mrf.mxu1 }
 0x31e   :  { %v2468_v20 = vpack.c.bf16 %v2340_v29, %v2340_v29  ;;  %v3365_v37 = vperm.slane %v3036_v59, %v4600_v17  ;;  %v2049_v61 = vadd.f32 %v4848_v9, %v2048_v30  ;;  %v2666_v10 = vmul.f32 %v4882_v43, %v2535_v38 }
 0x31f   :  { %v3485_v11 = vperm.slane %v3098_v60, %v4561_v63 }
 0x320   :  { %v2598_v19 = vunpack.c.l.bf16 %v2468_v20  ;;  %v3366_v23 = vsel %vm3297_vm15, %v3365_v37, %v3364_v53  ;;  %v2278_v62 = vmax.f32 %v2049_v61, 0.0  ;;  %2853 = vadd.xlane.f32.xlu2 %v2666_v10 }
 0x321   :  { %v3486_v12 = vsel %vm3289_vm13, %v3485_v11, %v3484_v50  ;;  %v2205_v8 = vpop.f32.mrf.mxu3 }
 0x322   :  { %v2406_v39 = vpack.c.bf16 %v2278_v62, %v2278_v62  ;;  %v2206_v58 = vadd.f32 %v4848_v9, %v2205_v8  ;;  %v2729_v5 = vmul.f32 %v4882_v43, %v2598_v19 }
 0x323   :  { %v2950_v26 = vpop.xlane.xlu2 %2949 }
 0x324   :  { %v2536_v31 = vunpack.c.l.bf16 %v2406_v39  ;;  %v2341_v0 = vmax.f32 %v2206_v58, 0.0  ;;  %v2826_v21 = vpop.xlane.xlu0 %2825  ;;  %v3099_v33 = vadd.f32 %v4352_v25, %v2950_v26  ;;  %2979 = vadd.xlane.f32.xlu1 %v2729_v5 }
 0x325   :  { %v3037_v34 = vadd.f32 %v4352_v25, %v2826_v21  ;;  %v2050_v35 = vpop.f32.mrf.mxu1 }
 0x326   :  { %v2469_v32 = vpack.c.bf16 %v2341_v0, %v2341_v0  ;;  %v3487_v18 = vperm.slane %v3099_v33, %v4565_v41  ;;  %v2051_v6 = vadd.f32 %v4848_v9, %v2050_v35  ;;  %v2667_v45 = vmul.f32 %v4882_v43, %v2536_v31 }
 0x327   :  { %v3367_v46 = vperm.slane %v3037_v34, %v4616_v40 }
 0x328   :  { %v3488_v13 = vsel %vm3293_vm14, %v3487_v18, %v3486_v12  ;;  %v2279_v51 = vmax.f32 %v2051_v6, 0.0  ;;  %2855 = vadd.xlane.f32.xlu0 %v2667_v45  ;;  %v2599_v50 = vunpack.c.l.bf16 %v2469_v32  ;;  %v2176_v12 = vadd.f32 %v4848_v9, %v4888_v24 }
 0x329   :  { %v3368_v7 = vsel %vm3301_vm0, %v3367_v46, %v3366_v23  ;;  %v2208_v53 = vpop.f32.mrf.mxu3 }
 0x32a   :  { %v2407_v48 = vpack.c.bf16 %v2279_v51, %v2279_v51  ;;  %v2209_v54 = vadd.f32 %v4848_v9, %v2208_v53  ;;  %v2730_v60 = vmul.f32 %v4882_v43, %v2599_v50  ;;  %v2329_v34 = vmax.f32 %v2176_v12, 0.0 }
 0x32b   :  { %v2952_v14 = vpop.xlane.xlu2 %2951  ;;  %v2828_v4 = vpop.xlane.xlu1 %2827 }
 0x32c   :  { %v2537_v55 = vunpack.c.l.bf16 %v2407_v48  ;;  %v2342_v38 = vmax.f32 %v2209_v54, 0.0  ;;  %v3100_v29 = vadd.f32 %v4352_v25, %v2952_v14  ;;  %v3038_v59 = vadd.f32 %v4352_v25, %v2828_v4 }
 0x32d   :  { %v2053_v57 = vpop.f32.mrf.mxu1  ;;  %v2457_v53 = vpack.c.bf16 %v2329_v34, %v2329_v34 }
 0x32e   :  { %v2470_v30 = vpack.c.bf16 %v2342_v38, %v2342_v38  ;;  %v3489_v20 = vperm.slane %v3100_v29, %v4600_v17  ;;  %v3369_v37 = vperm.slane %v3038_v59, %v4637_v15  ;;  %v2054_v61 = vadd.f32 %v4848_v9, %v2053_v57 }
 0x32f   :  { %v2668_v10 = vmul.f32 %v4882_v43, %v2537_v55 }
 0x330   :  { %v2600_v11 = vunpack.c.l.bf16 %v2470_v30  ;;  %v3490_v19 = vsel %vm3297_vm15, %v3489_v20, %v3488_v13  ;;  %v3370_v23 = vsel %vm3305_vm3, %v3369_v37, %v3368_v7  ;;  %v2280_v62 = vmax.f32 %v2054_v61, 0.0  ;;  %2981 = vadd.xlane.f32.xlu0 %v2730_v60 }
 0x331   :  { %2857 = vadd.xlane.f32.xlu1 %v2668_v10  ;;  %v2210_v8 = vpop.f32.mrf.mxu3 }
 0x332   :  { %v2408_v39 = vpack.c.bf16 %v2280_v62, %v2280_v62  ;;  %v2211_v58 = vadd.f32 %v4848_v9, %v2210_v8  ;;  %v2731_v5 = vmul.f32 %v4882_v43, %v2600_v11 }
 0x333   :  { %v2830_v26 = vpop.xlane.xlu2 %2829  ;;  %v2954_v31 = vpop.xlane.xlu1 %2953 }
 0x334   :  { %v2343_v0 = vmax.f32 %v2211_v58, 0.0  ;;  %v3039_v21 = vadd.f32 %v4352_v25, %v2830_v26  ;;  %v3101_v33 = vadd.f32 %v4352_v25, %v2954_v31  ;;  %2983 = vadd.xlane.f32.xlu2 %v2731_v5  ;;  %v2538_v35 = vunpack.c.l.bf16 %v2408_v39 }
 0x335   :  { %v2055_v32 = vpop.f32.mrf.mxu1 }
 0x336   :  { %v2471_v18 = vpack.c.bf16 %v2343_v0, %v2343_v0  ;;  %v3371_v24 = vperm.slane %v3039_v21, %v4657_v16  ;;  %v3491_v6 = vperm.slane %v3101_v33, %v4616_v40  ;;  %v2056_v45 = vadd.f32 %v4848_v9, %v2055_v32 }
 0x337   :  { %v2956_v46 = vpop.xlane.xlu0 %2955  ;;  %v2669_v38 = vmul.f32 %v4882_v43, %v2538_v35 }
 0x338   :  { %v2601_v13 = vunpack.c.l.bf16 %v2471_v18  ;;  %v3372_v51 = vsel %vm3309_vm1, %v3371_v24, %v3370_v23  ;;  %v3492_v50 = vsel %vm3301_vm0, %v3491_v6, %v3490_v19  ;;  %v2281_v7 = vmax.f32 %v2056_v45, 0.0 }
 0x339   :  { %v5044_v48 = vsel %vm5193_vm2, %v3372_v51, %v4874_v1  ;;  %v3102_v54 = vadd.f32 %v4352_v25, %v2956_v46  ;;  %v2213_v14 = vpop.f32.mrf.mxu3  ;;  %v2587_v1 = vunpack.c.l.bf16 %v2457_v53 }
 0x33a   :  { %v2409_v4 = vpack.c.bf16 %v2281_v7, %v2281_v7  ;;  %v2214_v55 = vadd.f32 %v4848_v9, %v2213_v14  ;;  %v2732_v29 = vmul.f32 %v4882_v43, %v2601_v13 }
 0x33b   :  { %v3493_v59 = vperm.slane %v3102_v54, %v4637_v15  ;;  %v2718_v19 = vmul.f32 %v4882_v43, %v2587_v1 }
 0x33c   :  { %v2539_v57 = vunpack.c.l.bf16 %v2409_v4  ;;  %v2344_v60 = vmax.f32 %v2214_v55, 0.0  ;;  %2859 = vadd.xlane.f32.xlu2 %v2669_v38  ;;  %2985 = vadd.xlane.f32.xlu1 %v2732_v29 }
 0x33d   :  { %v5052_v30 = vsel %vm3305_vm3, %v3493_v59, %v3492_v50 }
 0x33e   :  { %v2472_v20 = vpack.c.bf16 %v2344_v60, %v2344_v60  ;;  %v2670_v37 = vmul.f32 %v4882_v43, %v2539_v57 }
 0x33f   :  { %v2832_v58 = vpop.xlane.xlu0 %2831 }
 0x340   :  { %2861 = vadd.xlane.f32.xlu0 %v2670_v37  ;;  %v2602_v10 = vunpack.c.l.bf16 %v2472_v20  ;;  %v3040_v55 = vadd.f32 %v4352_v25, %v2832_v58 }
 0x341   :  { %v2215_v61 = vpop.f32.mrf.mxu3 }
 0x342   :  { %v2216_v11 = vadd.f32 %v4848_v9, %v2215_v61  ;;  %v2733_v12 = vmul.f32 %v4882_v43, %v2602_v10  ;;  %v3373_v20 = vperm.slane %v3040_v55, %v4363_v47 }
 0x343   :  { %v2834_v26 = vpop.xlane.xlu1 %2833 }
 0x344   :  { %v2345_v23 = vmax.f32 %v2216_v11, 0.0  ;;  %2957 = vadd.xlane.f32.xlu2 %v2718_v19  ;;  %v3041_v54 = vadd.f32 %v4352_v25, %v2834_v26 }
 0x346   :  { %v2473_v62 = vpack.c.bf16 %v2345_v23, %v2345_v23  ;;  %v3374_v59 = vperm.slane %v3041_v54, %v4374_v28 }
 0x347   :  { %v2960_v5 = vpop.xlane.xlu0 %2959 }
 0x348   :  { %v2603_v8 = vunpack.c.l.bf16 %v2473_v62  ;;  %2987 = vadd.xlane.f32.xlu0 %v2733_v12  ;;  %v3375_v23 = vsel %vm3253_vm4, %v3374_v59, %v3373_v20 }
 0x34a   :  { %v2734_v39 = vmul.f32 %v4882_v43, %v2603_v8  ;;  %v3104_v8 = vadd.f32 %v4352_v25, %v2960_v5 }
 0x34b   :  { %v2836_v31 = vpop.xlane.xlu2 %2835 }
 0x34c   :  { %2989 = vadd.xlane.f32.xlu1 %v2734_v39  ;;  %v3042_v4 = vadd.f32 %v4352_v25, %v2836_v31  ;;  %v3497_v59 = vperm.slane %v3104_v8, %v4363_v47 }
 0x34e   :  { %v3376_v60 = vperm.slane %v3042_v4, %v4401_v56 }
 0x34f   :  { %v2962_v21 = vpop.xlane.xlu1 %2961 }
 0x350   :  { %v3105_v37 = vadd.f32 %v4352_v25, %v2962_v21  ;;  %v3377_v39 = vsel %vm3257_vm5, %v3376_v60, %v3375_v23 }
 0x352   :  { %v3498_v31 = vperm.slane %v3105_v37, %v4374_v28 }
 0x354   :  { %v2838_v0 = vpop.xlane.xlu0 %2837  ;;  %v3499_v37 = vsel %vm3253_vm4, %v3498_v31, %v3497_v59  ;;  %vm3531_vm4 = vcmask 1044484  }
 0x355   :  { %v3043_v29 = vadd.f32 %v4352_v25, %v2838_v0 }
 0x357   :  { %v2964_v33 = vpop.xlane.xlu2 %2963  ;;  %v3378_v11 = vperm.slane %v3043_v29, %v4413_v27 }
 0x358   :  { %v3106_v0 = vadd.f32 %v4352_v25, %v2964_v33 }
 0x35b   :  { %v2840_v34 = vpop.xlane.xlu1 %2839 }
 0x35c   :  { %v3044_v57 = vadd.f32 %v4352_v25, %v2840_v34 }
 0x35e   :  { %v3380_v62 = vperm.slane %v3044_v57, %v4435_v52 }
 0x35f   :  { %v2966_v9 = vpop.xlane.xlu0 %2965 }
 0x360   :  { %v3107_v5 = vadd.f32 %v4352_v25, %v2966_v9 }
 0x363   :  { %v2842_v35 = vpop.xlane.xlu2 %2841 }
 0x364   :  { %v3045_v1 = vadd.f32 %v4352_v25, %v2842_v35 }
 0x366   :  { %v3382_v58 = vperm.slane %v3045_v1, %v4461_v36  ;;  %v3502_v1 = vperm.slane %v3107_v5, %v4413_v27 }
 0x367   :  { %v2968_v18 = vpop.xlane.xlu1 %2967 }
 0x368   :  { %v3108_v28 = vadd.f32 %v4352_v25, %v2968_v18 }
 0x36b   :  { %v2844_v32 = vpop.xlane.xlu0 %2843 }
 0x36c   :  { %v3046_v61 = vadd.f32 %v4352_v25, %v2844_v32 }
 0x36e   :  { %v3384_v21 = vperm.slane %v3046_v61, %v4484_v49  ;;  %v3504_v61 = vperm.slane %v3108_v28, %v4435_v52 }
 0x36f   :  { %v2970_v24 = vpop.xlane.xlu2 %2969 }
 0x370   :  { %v3109_v55 = vadd.f32 %v4352_v25, %v2970_v24 }
 0x374   :  { %v2846_v45 = vpop.xlane.xlu1 %2845 }
 0x375   :  { %v3047_v19 = vadd.f32 %v4352_v25, %v2846_v45  ;;  %v3379_v45 = vsel %vm3261_vm6, %v3378_v11, %v3377_v39  ;;  %v3506_v11 = vperm.slane %v3109_v55, %v4461_v36 }
 0x377   :  { %v5059_v6 = vpop.xlane.xlu0 %2971 }
 0x37b   :  { %v2848_v46 = vpop.xlane.xlu2 %2847 }
 0x37c   :  { %v3048_v12 = vadd.f32 %v4352_v25, %v2848_v46  ;;  %v3386_v46 = vperm.slane %v3047_v19, %v4508_v44  ;;  %v3110_v19 = vadd.f32 %v4352_v25, %v5059_v6 }
 0x37e   :  { %v3388_v33 = vperm.slane %v3048_v12, %v4527_v22 }
 0x37f   :  { %v5061_v43 = vpop.xlane.xlu1 %2973 }
 0x380   :  { %v3111_v12 = vadd.f32 %v4352_v25, %v5061_v43 }
 0x382   :  { %v3510_v5 = vperm.slane %v3111_v12, %v4508_v44 }
 0x384   :  { %v2850_v13 = vpop.xlane.xlu0 %2849 }
 0x385   :  { %v3049_v26 = vadd.f32 %v4352_v25, %v2850_v13  ;;  %v3381_v13 = vsel %vm3265_vm7, %v3380_v62, %v3379_v45 }
 0x387   :  { %v5063_v51 = vpop.xlane.xlu2 %2975  ;;  %v3390_v29 = vperm.slane %v3049_v26, %v4549_v2 }
 0x388   :  { %v3112_v31 = vadd.f32 %v4352_v25, %v5063_v51 }
 0x38b   :  { %v2852_v7 = vpop.xlane.xlu1 %2851 }
 0x38c   :  { %v3050_v34 = vadd.f32 %v4352_v25, %v2852_v7  ;;  %v3383_v7 = vsel %vm3269_vm8, %v3382_v58, %v3381_v13 }
 0x38d   :  { %v3385_v57 = vsel %vm3273_vm9, %v3384_v21, %v3383_v7 }
 0x38e   :  { %v3392_v18 = vperm.slane %v3050_v34, %v4561_v63  ;;  %v3508_v34 = vperm.slane %v3110_v19, %v4484_v49 }
 0x38f   :  { %v5065_v50 = vpop.xlane.xlu0 %2977 }
 0x393   :  { %v2854_v53 = vpop.xlane.xlu2 %2853 }
 0x394   :  { %v3051_v54 = vadd.f32 %v4352_v25, %v2854_v53  ;;  %v3500_v53 = vperm.slane %v3106_v0, %v4401_v56  ;;  %v3113_v0 = vadd.f32 %v4352_v25, %v5065_v50 }
 0x396   :  { %v3394_v20 = vperm.slane %v3051_v54, %v4565_v41  ;;  %v3501_v62 = vsel %vm3257_vm5, %v3500_v53, %v3499_v37  ;;  %vm3533_vm5 = vcmask 1045509  }
 0x397   :  { %v5070_v38 = vpop.xlane.xlu1 %2979  ;;  %v3503_v58 = vsel %vm3261_vm6, %v3502_v1, %v3501_v62  ;;  %vm5194_vm6 = vcmask 1043459  }
 0x398   :  { %v3505_v26 = vsel %vm3265_vm7, %v3504_v61, %v3503_v58  ;;  %vm3535_vm7 = vcmask 1046534  }
 0x399   :  { %v3507_v21 = vsel %vm3269_vm8, %v3506_v11, %v3505_v26  ;;  %vm3537_vm8 = vcmask 1047559  }
 0x39b   :  { %v2856_v14 = vpop.xlane.xlu0 %2855 }
 0x39c   :  { %v3052_v4 = vadd.f32 %v4352_v25, %v2856_v14  ;;  %v3387_v14 = vsel %vm3277_vm10, %v3386_v46, %v3385_v57  ;;  %v3114_v46 = vadd.f32 %v4352_v25, %v5070_v38 }
 0x39d   :  { %v3389_v47 = vsel %vm3281_vm11, %v3388_v33, %v3387_v14  ;;  %v3512_v33 = vperm.slane %v3112_v31, %v4527_v22 }
 0x39e   :  { %v3396_v56 = vperm.slane %v3052_v4, %v4600_v17  ;;  %v3391_v27 = vsel %vm3285_vm12, %v3390_v29, %v3389_v47  ;;  %v3514_v4 = vperm.slane %v3113_v0, %v4549_v2  ;;  %v3509_v29 = vsel %vm3273_vm9, %v3508_v34, %v3507_v21 }
 0x39f   :  { %v3393_v52 = vsel %vm3289_vm13, %v3392_v18, %v3391_v27  ;;  %v3511_v59 = vsel %vm3277_vm10, %v3510_v5, %v3509_v29 }
 0x3a0   :  { %v3395_v36 = vsel %vm3293_vm14, %v3394_v20, %v3393_v52  ;;  %v3513_v57 = vsel %vm3281_vm11, %v3512_v33, %v3511_v59 }
 0x3a1   :  { %v3397_v43 = vsel %vm3297_vm15, %v3396_v56, %v3395_v36 }
 0x3a3   :  { %v2982_v35 = vpop.xlane.xlu0 %2981 }
 0x3a4   :  { %v2858_v32 = vpop.xlane.xlu1 %2857  ;;  %v3115_v50 = vadd.f32 %v4352_v25, %v2982_v35 }
 0x3a5   :  { %v3053_v9 = vadd.f32 %v4352_v25, %v2858_v32 }
 0x3a7   :  { %v5080_v10 = vpop.xlane.xlu2 %2983  ;;  %v3398_v23 = vperm.slane %v3053_v9, %v4616_v40  ;;  %v3516_v9 = vperm.slane %v3114_v46, %v4561_v63 }
 0x3a8   :  { %v3116_v44 = vadd.f32 %v4352_v25, %v5080_v10  ;;  %v3518_v10 = vperm.slane %v3115_v50, %v4565_v41 }
 0x3a9   :  { %v3399_v32 = vsel %vm3301_vm0, %v3398_v23, %v3397_v43 }
 0x3af   :  { %v2860_v60 = vpop.xlane.xlu2 %2859  ;;  %v2986_v54 = vpop.xlane.xlu1 %2985 }
 0x3b0   :  { %v3054_v24 = vadd.f32 %v4352_v25, %v2860_v60  ;;  %v3117_v7 = vadd.f32 %v4352_v25, %v2986_v54  ;;  %v3515_v60 = vsel %vm3285_vm12, %v3514_v4, %v3513_v57 }
 0x3b2   :  { %v3400_v8 = vperm.slane %v3054_v24, %v4637_v15  ;;  %v3522_v63 = vperm.slane %v3117_v7, %v4616_v40 }
 0x3b3   :  { %v2862_v39 = vpop.xlane.xlu0 %2861 }
 0x3b4   :  { %v3055_v6 = vadd.f32 %v4352_v25, %v2862_v39  ;;  %v3401_v51 = vsel %vm3305_vm3, %v3400_v8, %v3399_v32 }
 0x3b6   :  { %v3402_v45 = vperm.slane %v3055_v6, %v4657_v16 }
 0x3b7   :  { %v2958_v13 = vpop.xlane.xlu2 %2957 }
 0x3b8   :  { %v3403_v28 = vsel %vm3309_vm1, %v3402_v45, %v3401_v51  ;;  %v3103_v49 = vadd.f32 %v4352_v25, %v2958_v13 }
 0x3b9   :  { %v3530_v38 = vsel %vm5194_vm6, %v3403_v28, %v5044_v48 }
 0x3ba   :  { %v3495_v55 = vperm.slane %v3103_v49, %v4657_v16  ;;  %v3532_v35 = vsel %vm3531_vm4, %v4694_v42, %v3530_v38  ;;  %v3520_v42 = vperm.slane %v3116_v44, %v4600_v17 }
 0x3bb   :  { %v2988_v22 = vpop.xlane.xlu0 %2987  ;;  %v3534_v2 = vsel %vm3533_vm5, %v4900_v3, %v3532_v35  ;;  %v3517_v3 = vsel %vm3289_vm13, %v3516_v9, %v3515_v60 }
 0x3bc   :  { %v3496_v48 = vsel %vm3309_vm1, %v3495_v55, %v5052_v30  ;;  %v3118_v53 = vadd.f32 %v4352_v25, %v2988_v22  ;;  %v3519_v41 = vsel %vm3293_vm14, %v3518_v10, %v3517_v3 }
 0x3bd   :  { %v3536_v18 = vsel %vm3535_vm7, %v3496_v48, %v3534_v2  ;;  %v3521_v20 = vsel %vm3297_vm15, %v3520_v42, %v3519_v41 }
 0x3be   :  { %v3524_v1 = vperm.slane %v3118_v53, %v4637_v15  ;;  %v3523_v17 = vsel %vm3301_vm0, %v3522_v63, %v3521_v20 }
 0x3bf   :  { %v2990_v14 = vpop.xlane.xlu1 %2989 }
 0x3c0   :  { %v3119_v30 = vadd.f32 %v4352_v25, %v2990_v14  ;;  %v3525_v15 = vsel %vm3305_vm3, %v3524_v1, %v3523_v17 }
 0x3c2   :  { %v3526_v40 = vperm.slane %v3119_v30, %v4657_v16 }
 0x3c4   :  { %v3527_v24 = vsel %vm3309_vm1, %v3526_v40, %v3525_v15 }
 0x3c5   :  { %v3538_v25 = vsel %vm3537_vm8, %v3527_v24, %v3536_v18 }
 0x3c6   :  { %3540 = vst [vmem:[#allocation11] sm:$0xff] %v3538_v25 }
 0x3c7   :  { %3551 = dma.vmem_to_hbm [thread:$0]  %s3547_s23, 128, %s3549_s2, [#allocation5]  }
 0x3c8   :  { %3844 = dma.done.wait [#allocation5], 128  }
 0x3c9   :  { %3845 = vsyncadd [#allocation5], 4294967168 }
 0x3ca   :  { %3556 = vsyncpa [#allocation4], 1 }
 0x3cb   :  { %3557 = vsyncpa [#allocation7], 1 }
 0x3cc   :  { %3558 = vsyncpa [#allocation10], 1 }
 0x3cd   :  { %3559 = vsyncpa [#allocation5], 1 }

</bundles_post_ra>
